<compile_context>
chip_gen: v7x
topology: tpu7x:2x2x1
jax: 0.10.0
libtpu: 0.0.40
codegen_flags: <defaults>
</compile_context>

<pallas_src>
import functools
import math

import jax
import jax.numpy as jnp
import numpy as np
from jax.experimental import pallas as pl
from jax.experimental.pallas import tpu as pltpu

NEG_INF = -1e30   # stand-in for -inf (benign difference: fully-masked rows -> uniform)

# Prepared (kernel-facing) per-layer parameter keys, in kernel argument order.
PKEYS = ["wq_s", "wkv_s", "wo_s",
         "wq_c", "wkv_c", "wo_c",
         "w1", "b1", "w2", "b2",
         "g1", "be1", "g2", "be2", "g3", "be3"]


# ---------------------------------------------------------------------------
# Buffered(1) feature probe (single-buffer grid-invariant weights when available)
# ---------------------------------------------------------------------------
_BUFFERED_ONE_OK = None


def _probe_buffered_one():
    try:
        def k(x_ref, o_ref):
            o_ref[...] = x_ref[...] * 2.0

        f = pl.pallas_call(
            k,
            out_shape=jax.ShapeDtypeStruct((8, 128), jnp.float32),
            grid=(2,),
            in_specs=[pl.BlockSpec((8, 128), lambda i: (0, 0),
                                   pipeline_mode=pl.Buffered(1))],
            out_specs=pl.BlockSpec((8, 128), lambda i: (0, 0)),
        )
        out = jax.block_until_ready(f(jnp.ones((8, 128), jnp.float32)))
        return bool(np.allclose(np.asarray(out), 2.0))
    except Exception:
        return False


def _weight_spec_kwargs():
    """kwargs for grid-invariant BlockSpecs: Buffered(1) if this build supports it."""
    global _BUFFERED_ONE_OK
    if _BUFFERED_ONE_OK is None:
        _BUFFERED_ONE_OK = _probe_buffered_one()
    return {"pipeline_mode": pl.Buffered(1)} if _BUFFERED_ONE_OK else {}


# ---------------------------------------------------------------------------
# Shared math helpers
# ---------------------------------------------------------------------------
def _layer_norm(x, gamma, beta, eps=1e-5):
    mu = jnp.mean(x, axis=-1, keepdims=True)
    var = jnp.mean((x - mu) ** 2, axis=-1, keepdims=True)
    return (x - mu) * jax.lax.rsqrt(var + eps) * gamma + beta


# ---------------------------------------------------------------------------
# Pallas kernels
# ---------------------------------------------------------------------------
def decoder_block_kernel(xfull_ref, enc_ref, srcb_ref,
                         wq_s, wkv_s, wo_s,
                         wq_c, wkv_c, wo_c,
                         w1, b1, w2, b2,
                         g1, be1, g2, be2, g3, be3,
                         out_ref,
                         ks_ref, vs_ref, kc_ref, vc_ref,
                         *, num_heads, tq):
    T, E = xfull_ref.shape[1], xfull_ref.shape[2]
    S = enc_ref.shape[1]
    H = num_heads
    d = E // H
    scale = 1.0 / math.sqrt(d)
    qi = pl.program_id(1)

    def split_heads(a, L):
        # (L, E) f32 -> (H, L, d) bf16
        return jnp.transpose(a.reshape(L, H, d), (1, 0, 2)).astype(jnp.bfloat16)

    # ---- K/V hoist: computed once per (batch, layer), reused by every query tile ----
    @pl.when(qi == 0)
    def _():
        xf = xfull_ref[0].astype(jnp.bfloat16)                                   # (T, E)
        kv = jnp.dot(xf, wkv_s[...], preferred_element_type=jnp.float32)         # (T, 2E)
        ks_ref[...] = split_heads(kv[:, :E], T)
        vs_ref[...] = split_heads(kv[:, E:], T)
        ec = enc_ref[0].astype(jnp.bfloat16)                                     # (S, E)
        kvc = jnp.dot(ec, wkv_c[...], preferred_element_type=jnp.float32)        # (S, 2E)
        kc_ref[...] = split_heads(kvc[:, :E], S)
        vc_ref[...] = split_heads(kvc[:, E:], S)

    # ---- query tile: tile-aligned slice of the resident full sequence (no extra stream) ----
    q_start = pl.multiple_of(qi * tq, tq)
    xq = xfull_ref[0, pl.ds(q_start, tq), :]                                     # (tq, E) f32

    # ---- additive attention biases (causal bias generated in-kernel, VPU-only) ----
    rows = q_start + jax.lax.broadcasted_iota(jnp.int32, (tq, T), 0)
    cols = jax.lax.broadcasted_iota(jnp.int32, (tq, T), 1)
    fut_bias = jnp.where(rows >= cols, 0.0, NEG_INF).astype(jnp.float32)         # (tq, T)
    src_bias = srcb_ref[0]                                                       # (1, S) f32

    def attend(x_in, wq, k_heads, v_heads, wo, bias):
        # x_in: (tq, E) f32; k_heads/v_heads: (H, L, d) bf16; bias broadcastable to (H, tq, L).
        q = jnp.dot(x_in.astype(jnp.bfloat16), wq,
                    preferred_element_type=jnp.float32) * scale                  # fold 1/sqrt(d)
        qh = split_heads(q, tq)                                                  # (H, tq, d)
        logits = jax.lax.dot_general(
            qh, k_heads, dimension_numbers=(((2,), (2,)), ((0,), (0,))),
            preferred_element_type=jnp.float32)                                  # (H, tq, L)
        logits = logits + bias
        m = jnp.max(logits, axis=-1, keepdims=True)
        e = jnp.exp(logits - m)
        denom = jnp.sum(e, axis=-1, keepdims=True)
        attn = e * pl.reciprocal(denom, approx=True)                             # EUP slot
        ctx = jax.lax.dot_general(
            attn.astype(jnp.bfloat16), v_heads,
            dimension_numbers=(((2,), (1,)), ((0,), (0,))),
            preferred_element_type=jnp.float32)                                  # (H, tq, d)
        ctx = jnp.transpose(ctx, (1, 0, 2)).reshape(tq, E).astype(jnp.bfloat16)
        return jnp.dot(ctx, wo, preferred_element_type=jnp.float32)              # (tq, E)

    # self-attention + residual + LN1 (dropout == identity, eval mode)
    sa = attend(xq, wq_s[...], ks_ref[...], vs_ref[...], wo_s[...], fut_bias[None, :, :])
    x = _layer_norm(xq + sa, g1[...], be1[...])

    # cross-attention + residual + LN2
    ca = attend(x, wq_c[...], kc_ref[...], vc_ref[...], wo_c[...], src_bias[None, :, :])
    x = _layer_norm(x + ca, g2[...], be2[...])

    # feed-forward + residual + LN3 (bf16 matmuls, f32 accumulate)
    h = jnp.maximum(
        jnp.dot(x.astype(jnp.bfloat16), w1[...],
                preferred_element_type=jnp.float32) + b1[...], 0.0)
    ff = jnp.dot(h.astype(jnp.bfloat16), w2[...],
                 preferred_element_type=jnp.float32) + b2[...]
    x = _layer_norm(x + ff, g3[...], be3[...])

    out_ref[0] = x


def output_proj_kernel(x_ref, w_ref, out_ref):
    # logits_tile = x_tile @ emb_tile.T (contract emb's second dim -> no transposed copy)
    x = x_ref[...].astype(jnp.bfloat16)                                          # (tm, E)
    out_ref[...] = jax.lax.dot_general(
        x, w_ref[...], dimension_numbers=(((1,), (1,)), ((), ())),
        preferred_element_type=jnp.float32)                                      # (tm, tv)


# ---------------------------------------------------------------------------
# Tiling / VMEM helpers
# ---------------------------------------------------------------------------
def _pick_q_tile(T):
    for t in (256, 128):
        if T % t == 0:
            return t
    return T


def _pick_m_tile(M):
    for t in (256, 128):
        if M % t == 0:
            return t
    return M


def _pick_v_tile_and_pad(V):
    for t in (2048, 1024, 512, 256, 128):
        if V % t == 0:
            return t, V
    vp = ((V + 127) // 128) * 128          # pad vocab to a lane-dense multiple of 128
    for t in (2048, 1024, 512, 256):
        if vp % t == 0:
            return t, vp
    return 128, vp


def _clamp_vmem(nbytes):
    # floor well above the tiny-shape need; cap at 64 MiB (v7x physical VMEM per core).
    return int(min(64 * 2 ** 20, max(24 * 2 ** 20, nbytes)))


def _decoder_vmem_estimate(T, S, E, F, H, tq, params, single_buffered):
    wbytes = sum(int(np.prod(params[k].shape)) * params[k].dtype.itemsize for k in PKEYS)
    wbuf = 1 if single_buffered else 2
    act = 2 * (T * E + S * E + S + tq * E) * 4              # pipelined in/out buffers (f32)
    scratch = 2 * (T + S) * E * 2                           # bf16 K/V scratch
    inter = (3 * H * tq * max(T, S) * 4 + tq * F * 4        # logits/exp + FFN hidden
             + 2 * T * 2 * E * 4 + 6 * tq * E * 4)          # KV projection + misc tiles
    return _clamp_vmem(2 * (wbuf * wbytes + act + scratch + inter))


def _proj_vmem_estimate(tm, tv, E):
    return _clamp_vmem(4 * (tm * E * 4 + tv * E * 2 + tm * tv * 4))


def _full_spec(arr, extra):
    nd = arr.ndim
    return pl.BlockSpec(arr.shape, lambda n, qi: (0,) * nd, **extra)


# ---------------------------------------------------------------------------
# pallas_call wrappers
# ---------------------------------------------------------------------------
def decoder_block(x, enc, src_bias, p, num_heads, tq):
    N, T, E = x.shape
    S = enc.shape[1]
    H = num_heads
    d = E // H
    F = p["w1"].shape[1]
    n_q = T // tq
    wkw = _weight_spec_kwargs()   # Buffered(1) on grid-invariant weights when supported

    in_specs = [
        pl.BlockSpec((1, T, E), lambda n, qi: (n, 0, 0)),   # full target seq (q + self K/V src)
        pl.BlockSpec((1, S, E), lambda n, qi: (n, 0, 0)),   # encoder hidden states
        pl.BlockSpec((1, 1, S), lambda n, qi: (n, 0, 0)),   # source-padding additive bias
    ] + [_full_spec(p[k], wkw) for k in PKEYS]

    return pl.pallas_call(
        functools.partial(decoder_block_kernel, num_heads=H, tq=tq),
        out_shape=jax.ShapeDtypeStruct((N, T, E), jnp.float32),
        grid=(N, n_q),
        in_specs=in_specs,
        out_specs=pl.BlockSpec((1, tq, E), lambda n, qi: (n, qi, 0)),
        scratch_shapes=[pltpu.VMEM((H, T, d), jnp.bfloat16),   # self-attn K
                        pltpu.VMEM((H, T, d), jnp.bfloat16),   # self-attn V
                        pltpu.VMEM((H, S, d), jnp.bfloat16),   # cross-attn K
                        pltpu.VMEM((H, S, d), jnp.bfloat16)],  # cross-attn V
        compiler_params=pltpu.CompilerParams(
            # qi axis carries the K/V scratch -> "arbitrary"; batch axis megacore-parallel.
            dimension_semantics=("parallel", "arbitrary"),
            vmem_limit_bytes=_decoder_vmem_estimate(T, S, E, F, H, tq, p,
                                                    bool(_BUFFERED_ONE_OK))),
    )(x, enc, src_bias, *[p[k] for k in PKEYS])


def output_projection(x2d, emb_pad_bf16, tm, tv):
    M, E = x2d.shape
    Vp = emb_pad_bf16.shape[0]
    return pl.pallas_call(
        output_proj_kernel,
        out_shape=jax.ShapeDtypeStruct((M, Vp), jnp.float32),
        # vocab tile OUTER, row tile INNER -> each emb tile is fetched once and reused
        # across all N*T rows (no per-batch re-streaming of the table).
        grid=(Vp // tv, M // tm),
        in_specs=[pl.BlockSpec((tm, E), lambda vi, mi: (mi, 0)),
                  pl.BlockSpec((tv, E), lambda vi, mi: (vi, 0))],
        out_specs=pl.BlockSpec((tm, tv), lambda vi, mi: (mi, vi)),
        compiler_params=pltpu.CompilerParams(
            dimension_semantics=("parallel", "parallel"),
            vmem_limit_bytes=_proj_vmem_estimate(tm, tv, E)),
    )(x2d, emb_pad_bf16)


# ---------------------------------------------------------------------------
# One-time parameter preparation (bf16 casts, KV fusion, vocab padding) + forward
# ---------------------------------------------------------------------------
def sinusoidal_encoding(T, E):
    pos = np.arange(T, dtype=np.float32)[:, None]
    div = np.exp(np.arange(0, E, 2, dtype=np.float32) * (-math.log(10000.0) / E))
    pe = np.zeros((T, E), dtype=np.float32)
    pe[:, 0::2] = np.sin(pos * div)
    pe[:, 1::2] = np.cos(pos * div)
    return jnp.asarray(pe)


def prepare_params(emb, layers):
    """Hoisted out of the forward: cast weights to bf16 once, fuse K/V, pad the output table."""
    _weight_spec_kwargs()   # prime the Buffered(1) probe outside jit tracing
    prepped = []
    for p in layers:
        prepped.append(dict(
            wq_s=p["wq_s"].astype(jnp.bfloat16),
            wkv_s=jnp.concatenate([p["wk_s"], p["wv_s"]], axis=1).astype(jnp.bfloat16),
            wo_s=p["wo_s"].astype(jnp.bfloat16),
            wq_c=p["wq_c"].astype(jnp.bfloat16),
            wkv_c=jnp.concatenate([p["wk_c"], p["wv_c"]], axis=1).astype(jnp.bfloat16),
            wo_c=p["wo_c"].astype(jnp.bfloat16),
            w1=p["w1"].astype(jnp.bfloat16), b1=p["b1"],
            w2=p["w2"].astype(jnp.bfloat16), b2=p["b2"],
            g1=p["g1"], be1=p["be1"], g2=p["g2"], be2=p["be2"],
            g3=p["g3"], be3=p["be3"],
        ))
    V, _ = emb.shape
    _, Vp = _pick_v_tile_and_pad(V)
    emb_out = emb.astype(jnp.bfloat16)
    if Vp != V:
        emb_out = jnp.pad(emb_out, ((0, Vp - V), (0, 0)))
    return emb_out, prepped


@functools.partial(jax.jit, static_argnames=("num_heads",))
def transformer_decoder_forward(input_tokens, encoder_hidden_states, src_padding_mask,
                                emb, emb_out_bf16, layers, *, num_heads):
    N, T = input_tokens.shape
    V, E = emb.shape
    S = encoder_hidden_states.shape[1]
    assert E % num_heads == 0

    x = jnp.take(emb, input_tokens, axis=0) * math.sqrt(E)          # (N, T, E)
    x = x + sinusoidal_encoding(T, E)[None, :, :]
    # embedding dropout == identity (eval mode)

    # Source-padding mask -> additive bias, computed once and reused by every layer/head.
    src_bias = jnp.where(src_padding_mask, 0.0, NEG_INF).astype(jnp.float32).reshape(N, 1, S)

    tq = _pick_q_tile(T)
    for p in layers:
        x = decoder_block(x, encoder_hidden_states, src_bias, p, num_heads, tq)

    # Tied output projection: rows = N*T, vocab padded to a multiple of 128.
    tv, Vp = _pick_v_tile_and_pad(V)
    x2d = x.reshape(N * T, E)
    tm = _pick_m_tile(N * T)
    logits = output_projection(x2d, emb_out_bf16, tm, tv)
    return logits.reshape(N, T, Vp)[:, :, :V]


# ---------------------------------------------------------------------------
# Pure-JAX f32 reference (mirrors the PyTorch forward semantics)
# ---------------------------------------------------------------------------
def ref_forward(input_tokens, enc, src_padding_mask, future_mask, emb, layers, num_heads):
    N, T = input_tokens.shape
    E = emb.shape[1]
    d = E // num_heads
    x = jnp.take(emb, input_tokens, axis=0) * math.sqrt(E)
    x = x + sinusoidal_encoding(T, E)[None, :, :]
    srcm = src_padding_mask[:, None, None, :]      # (N,1,1,S)  True = keep
    futm = future_mask[None, None, :, :]           # (1,1,T,T)  True = keep

    def mha(q_in, kv_in, p, pre, mask):
        q = q_in @ p[f"wq_{pre}"]
        k = kv_in @ p[f"wk_{pre}"]
        v = kv_in @ p[f"wv_{pre}"]

        def split(a):
            Nb, L, _ = a.shape
            return a.reshape(Nb, L, num_heads, d).transpose(0, 2, 1, 3)

        qh, kh, vh = split(q), split(k), split(v)
        logits = jnp.einsum("nhtd,nhsd->nhts", qh, kh) / math.sqrt(d)
        logits = jnp.where(mask, logits, NEG_INF)
        attn = jax.nn.softmax(logits, axis=-1)
        o = jnp.einsum("nhts,nhsd->nhtd", attn, vh)
        o = o.transpose(0, 2, 1, 3).reshape(q_in.shape)
        return o @ p[f"wo_{pre}"]

    for p in layers:
        sa = mha(x, x, p, "s", futm)
        x = _layer_norm(x + sa, p["g1"], p["be1"])
        ca = mha(x, enc, p, "c", srcm)
        x = _layer_norm(x + ca, p["g2"], p["be2"])
        h = jnp.maximum(x @ p["w1"] + p["b1"], 0.0)
        ff = h @ p["w2"] + p["b2"]
        x = _layer_norm(x + ff, p["g3"], p["be3"])
    return jnp.einsum("nte,ve->ntv", x, emb)


# ---------------------------------------------------------------------------
# Deterministic parameter init (synthetic; shapes match the PyTorch module)
# ---------------------------------------------------------------------------
def init_params(key, vocab_size, E, F, num_layers):
    keys = jax.random.split(key, 1 + num_layers)
    emb = jax.random.normal(keys[0], (vocab_size, E), jnp.float32) * 0.02
    layers = []
    for l in range(num_layers):
        ks = jax.random.split(keys[1 + l], 12)
        w = lambda k, s: jax.random.normal(k, s, jnp.float32) * 0.05
        layers.append(dict(
            wq_s=w(ks[0], (E, E)), wk_s=w(ks[1], (E, E)),
            wv_s=w(ks[2], (E, E)), wo_s=w(ks[3], (E, E)),
            wq_c=w(ks[4], (E, E)), wk_c=w(ks[5], (E, E)),
            wv_c=w(ks[6], (E, E)), wo_c=w(ks[7], (E, E)),
            w1=w(ks[8], (E, F)), b1=w(ks[9], (1, F)),
            w2=w(ks[10], (F, E)), b2=w(ks[11], (1, E)),
            g1=jnp.ones((1, E), jnp.float32), be1=jnp.zeros((1, E), jnp.float32),
            g2=jnp.ones((1, E), jnp.float32), be2=jnp.zeros((1, E), jnp.float32),
            g3=jnp.ones((1, E), jnp.float32), be3=jnp.zeros((1, E), jnp.float32),
        ))
    return emb, layers


if __name__ == "__main__":
    # N=batch, T=target seq, S=source seq, E=hidden, F=ff_dim, H=heads, L=layers, V=vocab
    N, T, S, E, F, H, L, V = 2, 8, 16, 128, 256, 4, 2, 50

    key = jax.random.PRNGKey(0)
    k_par, k_tok, k_enc = jax.random.split(key, 3)

    emb, layers = init_params(k_par, V, E, F, L)
    input_tokens = jax.random.randint(k_tok, (N, T), 0, V, dtype=jnp.int32)
    encoder_hidden_states = jax.random.normal(k_enc, (N, S, E), jnp.float32)

    future_mask = jnp.tril(jnp.ones((T, T), dtype=jnp.bool_))                  # (T, T) True=keep
    src_padding_mask = jnp.arange(S)[None, :] < jnp.array([[S], [S - 3]])      # (N, S) True=keep

    emb_out_bf16, prepped_layers = prepare_params(emb, layers)

    logits = transformer_decoder_forward(input_tokens, encoder_hidden_states,
                                         src_padding_mask, emb, emb_out_bf16,
                                         prepped_layers, num_heads=H)
    logits = jax.block_until_ready(logits)

    ref = ref_forward(input_tokens, encoder_hidden_states,
                      src_padding_mask, future_mask, emb, layers, H)
    ref = jax.block_until_ready(ref)

    assert logits.shape == (N, T, V), logits.shape
    # Kernel uses bf16 MXU matmuls + approx reciprocal; reference is pure f32,
    # so compare with a bf16-appropriate tolerance.
    np.testing.assert_allclose(np.asarray(logits), np.asarray(ref), rtol=5e-2, atol=5e-2)
    print("KERNEL_OK")
</pallas_src>

<mosaic_0001>
module attributes {stable_mosaic.version = 11 : i64} {
  func.func @k(%arg0: i32, %arg1: memref<8x128xf32, #tpu.memory_space<vmem>>, %arg2: memref<8x128xf32, #tpu.memory_space<vmem>>) attributes {dimension_semantics = [#tpu.dimension_semantics<arbitrary>], iteration_bounds = array<i64: 2>, scalar_prefetch = 0 : i64, scratch_operands = 0 : i64, tpu.core_type = #tpu.core_type<tc>, window_params = [{pipeline_mode = #tpu.pipeline_mode<synchronous>, transform_indices = @transform_0, window_bounds = array<i64: 8, 128>}, {pipeline_mode = #tpu.pipeline_mode<synchronous>, transform_indices = @transform_1, window_bounds = array<i64: 8, 128>}]} {
    %c0 = arith.constant 0 : index
    %c0_0 = arith.constant 0 : index
    %0 = vector.load %arg1[%c0, %c0_0] : memref<8x128xf32, #tpu.memory_space<vmem>>, vector<8x128xf32>
    %cst = arith.constant 2.000000e+00 : f32
    %1 = vector.broadcast %cst : f32 to vector<8x128xf32>
    %2 = arith.mulf %0, %1 : vector<8x128xf32>
    %c0_1 = arith.constant 0 : index
    %c0_2 = arith.constant 0 : index
    %3 = vector.load %arg2[%c0_1, %c0_2] : memref<8x128xf32, #tpu.memory_space<vmem>>, vector<8x128xf32>
    tpu.vector_store %arg2[%c0_1, %c0_2], %2 {strides = array<i32>} : memref<8x128xf32, #tpu.memory_space<vmem>>, vector<8x128xf32>,
    return
  }
  func.func @transform_0(%arg0: i32) -> (i32, i32) {
    %c0_i32 = arith.constant 0 : i32
    %c0_i32_0 = arith.constant 0 : i32
    %c0_i32_1 = arith.constant 0 : i32
    return %c0_i32, %c0_i32_0 : i32, i32
  }
  func.func @transform_1(%arg0: i32) -> (i32, i32) {
    %c0_i32 = arith.constant 0 : i32
    %c0_i32_0 = arith.constant 0 : i32
    %c0_i32_1 = arith.constant 0 : i32
    return %c0_i32, %c0_i32_0 : i32, i32
  }
}

module attributes {stable_mosaic.version = 11 : i64} {
  func.func @decoder_block_kernel(%arg0: i32, %arg1: i32, %arg2: memref<1x8x128xf32, #tpu.memory_space<vmem>>, %arg3: memref<1x16x128xf32, #tpu.memory_space<vmem>>, %arg4: memref<1x1x16xf32, #tpu.memory_space<vmem>>, %arg5: memref<128x128xbf16, #tpu.memory_space<vmem>>, %arg6: memref<128x256xbf16, #tpu.memory_space<vmem>>, %arg7: memref<128x128xbf16, #tpu.memory_space<vmem>>, %arg8: memref<128x128xbf16, #tpu.memory_space<vmem>>, %arg9: memref<128x256xbf16, #tpu.memory_space<vmem>>, %arg10: memref<128x128xbf16, #tpu.memory_space<vmem>>, %arg11: memref<128x256xbf16, #tpu.memory_space<vmem>>, %arg12: memref<1x256xf32, #tpu.memory_space<vmem>>, %arg13: memref<256x128xbf16, #tpu.memory_space<vmem>>, %arg14: memref<1x128xf32, #tpu.memory_space<vmem>>, %arg15: memref<1x128xf32, #tpu.memory_space<vmem>>, %arg16: memref<1x128xf32, #tpu.memory_space<vmem>>, %arg17: memref<1x128xf32, #tpu.memory_space<vmem>>, %arg18: memref<1x128xf32, #tpu.memory_space<vmem>>, %arg19: memref<1x128xf32, #tpu.memory_space<vmem>>, %arg20: memref<1x128xf32, #tpu.memory_space<vmem>>, %arg21: memref<1x8x128xf32, #tpu.memory_space<vmem>>, %arg22: memref<4x8x32xbf16, #tpu.memory_space<vmem>>, %arg23: memref<4x8x32xbf16, #tpu.memory_space<vmem>>, %arg24: memref<4x16x32xbf16, #tpu.memory_space<vmem>>, %arg25: memref<4x16x32xbf16, #tpu.memory_space<vmem>>) attributes {dimension_semantics = [#tpu.dimension_semantics<parallel>, #tpu.dimension_semantics<arbitrary>], iteration_bounds = array<i64: 2, 1>, scalar_prefetch = 0 : i64, scratch_operands = 4 : i64, tpu.core_type = #tpu.core_type<tc>, window_params = [{transform_indices = @transform_0, window_bounds = array<i64: 1, 8, 128>}, {transform_indices = @transform_1, window_bounds = array<i64: 1, 16, 128>}, {transform_indices = @transform_2, window_bounds = array<i64: 1, 1, 16>}, {pipeline_mode = #tpu.pipeline_mode<synchronous>, transform_indices = @transform_3, window_bounds = array<i64: 128, 128>}, {pipeline_mode = #tpu.pipeline_mode<synchronous>, transform_indices = @transform_4, window_bounds = array<i64: 128, 256>}, {pipeline_mode = #tpu.pipeline_mode<synchronous>, transform_indices = @transform_5, window_bounds = array<i64: 128, 128>}, {pipeline_mode = #tpu.pipeline_mode<synchronous>, transform_indices = @transform_6, window_bounds = array<i64: 128, 128>}, {pipeline_mode = #tpu.pipeline_mode<synchronous>, transform_indices = @transform_7, window_bounds = array<i64: 128, 256>}, {pipeline_mode = #tpu.pipeline_mode<synchronous>, transform_indices = @transform_8, window_bounds = array<i64: 128, 128>}, {pipeline_mode = #tpu.pipeline_mode<synchronous>, transform_indices = @transform_9, window_bounds = array<i64: 128, 256>}, {pipeline_mode = #tpu.pipeline_mode<synchronous>, transform_indices = @transform_10, window_bounds = array<i64: 1, 256>}, {pipeline_mode = #tpu.pipeline_mode<synchronous>, transform_indices = @transform_11, window_bounds = array<i64: 256, 128>}, {pipeline_mode = #tpu.pipeline_mode<synchronous>, transform_indices = @transform_12, window_bounds = array<i64: 1, 128>}, {pipeline_mode = #tpu.pipeline_mode<synchronous>, transform_indices = @transform_13, window_bounds = array<i64: 1, 128>}, {pipeline_mode = #tpu.pipeline_mode<synchronous>, transform_indices = @transform_14, window_bounds = array<i64: 1, 128>}, {pipeline_mode = #tpu.pipeline_mode<synchronous>, transform_indices = @transform_15, window_bounds = array<i64: 1, 128>}, {pipeline_mode = #tpu.pipeline_mode<synchronous>, transform_indices = @transform_16, window_bounds = array<i64: 1, 128>}, {pipeline_mode = #tpu.pipeline_mode<synchronous>, transform_indices = @transform_17, window_bounds = array<i64: 1, 128>}, {pipeline_mode = #tpu.pipeline_mode<synchronous>, transform_indices = @transform_18, window_bounds = array<i64: 1, 128>}, {transform_indices = @transform_19, window_bounds = array<i64: 1, 8, 128>}]} {
    %c0_i32 = arith.constant 0 : i32
    %0 = arith.cmpi eq, %arg1, %c0_i32 : i32
    %1 = arith.extui %0 : i1 to i32
    %c0_i32_0 = arith.constant 0 : i32
    %2 = arith.cmpi ne, %1, %c0_i32_0 : i32
    scf.if %2 {
      %c0_81 = arith.constant 0 : index
      %c0_82 = arith.constant 0 : index
      %c0_83 = arith.constant 0 : index
      %172 = vector.load %arg2[%c0_81, %c0_82, %c0_83] : memref<1x8x128xf32, #tpu.memory_space<vmem>>, vector<1x8x128xf32>
      %173 = vector.shape_cast %172 : vector<1x8x128xf32> to vector<8x128xf32>
      %174 = arith.truncf %173 : vector<8x128xf32> to vector<8x128xbf16>
      %c0_84 = arith.constant 0 : index
      %c0_85 = arith.constant 0 : index
      %175 = vector.load %arg6[%c0_84, %c0_85] : memref<128x256xbf16, #tpu.memory_space<vmem>>, vector<128x256xbf16>
      %cst_86 = arith.constant dense<0.000000e+00> : vector<8x256xf32>
      %176 = tpu.matmul %174, %175, %cst_86 {dimension_numbers = #tpu.dot_dimension_numbers<[1], [0], [0], [1], [0, 0, 1, 1], [], []>} : vector<8x128xbf16>, vector<128x256xbf16>, vector<8x256xf32> -> vector<8x256xf32>
      %177 = vector.extract_strided_slice %176 {offsets = [0, 0], sizes = [8, 128], strides = [1, 1]} : vector<8x256xf32> to vector<8x128xf32>
      %178 = vector.shape_cast %177 : vector<8x128xf32> to vector<8x4x32xf32>
      %179 = tpu.transpose %178, [1, 0, 2] : vector<8x4x32xf32> -> vector<4x8x32xf32>
      %180 = arith.truncf %179 : vector<4x8x32xf32> to vector<4x8x32xbf16>
      %c0_87 = arith.constant 0 : index
      %c0_88 = arith.constant 0 : index
      %c0_89 = arith.constant 0 : index
      %181 = vector.load %arg22[%c0_87, %c0_88, %c0_89] : memref<4x8x32xbf16, #tpu.memory_space<vmem>>, vector<4x8x32xbf16>
      tpu.vector_store %arg22[%c0_87, %c0_88, %c0_89], %180 {strides = array<i32>} : memref<4x8x32xbf16, #tpu.memory_space<vmem>>, vector<4x8x32xbf16>,
      %182 = vector.extract_strided_slice %176 {offsets = [0, 128], sizes = [8, 128], strides = [1, 1]} : vector<8x256xf32> to vector<8x128xf32>
      %183 = vector.shape_cast %182 : vector<8x128xf32> to vector<8x4x32xf32>
      %184 = tpu.transpose %183, [1, 0, 2] : vector<8x4x32xf32> -> vector<4x8x32xf32>
      %185 = arith.truncf %184 : vector<4x8x32xf32> to vector<4x8x32xbf16>
      %c0_90 = arith.constant 0 : index
      %c0_91 = arith.constant 0 : index
      %c0_92 = arith.constant 0 : index
      %186 = vector.load %arg23[%c0_90, %c0_91, %c0_92] : memref<4x8x32xbf16, #tpu.memory_space<vmem>>, vector<4x8x32xbf16>
      tpu.vector_store %arg23[%c0_90, %c0_91, %c0_92], %185 {strides = array<i32>} : memref<4x8x32xbf16, #tpu.memory_space<vmem>>, vector<4x8x32xbf16>,
      %c0_93 = arith.constant 0 : index
      %c0_94 = arith.constant 0 : index
      %c0_95 = arith.constant 0 : index
      %187 = vector.load %arg3[%c0_93, %c0_94, %c0_95] : memref<1x16x128xf32, #tpu.memory_space<vmem>>, vector<1x16x128xf32>
      %188 = vector.shape_cast %187 : vector<1x16x128xf32> to vector<16x128xf32>
      %189 = arith.truncf %188 : vector<16x128xf32> to vector<16x128xbf16>
      %c0_96 = arith.constant 0 : index
      %c0_97 = arith.constant 0 : index
      %190 = vector.load %arg9[%c0_96, %c0_97] : memref<128x256xbf16, #tpu.memory_space<vmem>>, vector<128x256xbf16>
      %cst_98 = arith.constant dense<0.000000e+00> : vector<16x256xf32>
      %191 = tpu.matmul %189, %190, %cst_98 {dimension_numbers = #tpu.dot_dimension_numbers<[1], [0], [0], [1], [0, 0, 1, 1], [], []>} : vector<16x128xbf16>, vector<128x256xbf16>, vector<16x256xf32> -> vector<16x256xf32>
      %192 = vector.extract_strided_slice %191 {offsets = [0, 0], sizes = [16, 128], strides = [1, 1]} : vector<16x256xf32> to vector<16x128xf32>
      %193 = vector.shape_cast %192 : vector<16x128xf32> to vector<16x4x32xf32>
      %194 = tpu.transpose %193, [1, 0, 2] : vector<16x4x32xf32> -> vector<4x16x32xf32>
      %195 = arith.truncf %194 : vector<4x16x32xf32> to vector<4x16x32xbf16>
      %c0_99 = arith.constant 0 : index
      %c0_100 = arith.constant 0 : index
      %c0_101 = arith.constant 0 : index
      %196 = vector.load %arg24[%c0_99, %c0_100, %c0_101] : memref<4x16x32xbf16, #tpu.memory_space<vmem>>, vector<4x16x32xbf16>
      tpu.vector_store %arg24[%c0_99, %c0_100, %c0_101], %195 {strides = array<i32>} : memref<4x16x32xbf16, #tpu.memory_space<vmem>>, vector<4x16x32xbf16>,
      %197 = vector.extract_strided_slice %191 {offsets = [0, 128], sizes = [16, 128], strides = [1, 1]} : vector<16x256xf32> to vector<16x128xf32>
      %198 = vector.shape_cast %197 : vector<16x128xf32> to vector<16x4x32xf32>
      %199 = tpu.transpose %198, [1, 0, 2] : vector<16x4x32xf32> -> vector<4x16x32xf32>
      %200 = arith.truncf %199 : vector<4x16x32xf32> to vector<4x16x32xbf16>
      %c0_102 = arith.constant 0 : index
      %c0_103 = arith.constant 0 : index
      %c0_104 = arith.constant 0 : index
      %201 = vector.load %arg25[%c0_102, %c0_103, %c0_104] : memref<4x16x32xbf16, #tpu.memory_space<vmem>>, vector<4x16x32xbf16>
      tpu.vector_store %arg25[%c0_102, %c0_103, %c0_104], %200 {strides = array<i32>} : memref<4x16x32xbf16, #tpu.memory_space<vmem>>, vector<4x16x32xbf16>,
    } else {
    }
    %c8_i32 = arith.constant 8 : i32
    %3 = arith.muli %arg1, %c8_i32 : i32
    %4 = tpu.assume_multiple %3, 8 : i32
    %c0 = arith.constant 0 : index
    %5 = arith.index_cast %4 : i32 to index
    %c0_1 = arith.constant 0 : index
    %6 = vector.load %arg2[%c0, %5, %c0_1] : memref<1x8x128xf32, #tpu.memory_space<vmem>>, vector<1x8x128xf32>
    %7 = vector.shape_cast %6 : vector<1x8x128xf32> to vector<8x128xf32>
    %8 = tpu.iota {dimensions = array<i32: 0>} : vector<8x8xi32>
    %9 = vector.broadcast %4 : i32 to vector<8x8xi32>
    %10 = arith.addi %9, %8 : vector<8x8xi32>
    %11 = tpu.iota {dimensions = array<i32: 1>} : vector<8x8xi32>
    %12 = arith.cmpi sge, %10, %11 : vector<8x8xi32>
    %cst = arith.constant 0.000000e+00 : f32
    %cst_2 = arith.constant -1.000000e+30 : f32
    %13 = vector.broadcast %cst : f32 to vector<8x8xf32>
    %14 = vector.broadcast %cst_2 : f32 to vector<8x8xf32>
    %15 = arith.select %12, %13, %14 : vector<8x8xi1>, vector<8x8xf32>
    %c0_3 = arith.constant 0 : index
    %c0_4 = arith.constant 0 : index
    %c0_5 = arith.constant 0 : index
    %16 = vector.load %arg4[%c0_3, %c0_4, %c0_5] : memref<1x1x16xf32, #tpu.memory_space<vmem>>, vector<1x1x16xf32>
    %17 = vector.shape_cast %16 : vector<1x1x16xf32> to vector<1x16xf32>
    %c0_6 = arith.constant 0 : index
    %c0_7 = arith.constant 0 : index
    %18 = vector.load %arg5[%c0_6, %c0_7] : memref<128x128xbf16, #tpu.memory_space<vmem>>, vector<128x128xbf16>
    %c0_8 = arith.constant 0 : index
    %c0_9 = arith.constant 0 : index
    %c0_10 = arith.constant 0 : index
    %19 = vector.load %arg22[%c0_8, %c0_9, %c0_10] : memref<4x8x32xbf16, #tpu.memory_space<vmem>>, vector<4x8x32xbf16>
    %c0_11 = arith.constant 0 : index
    %c0_12 = arith.constant 0 : index
    %c0_13 = arith.constant 0 : index
    %20 = vector.load %arg23[%c0_11, %c0_12, %c0_13] : memref<4x8x32xbf16, #tpu.memory_space<vmem>>, vector<4x8x32xbf16>
    %c0_14 = arith.constant 0 : index
    %c0_15 = arith.constant 0 : index
    %21 = vector.load %arg7[%c0_14, %c0_15] : memref<128x128xbf16, #tpu.memory_space<vmem>>, vector<128x128xbf16>
    %22 = vector.shape_cast %15 : vector<8x8xf32> to vector<1x8x8xf32>
    %23 = arith.truncf %7 : vector<8x128xf32> to vector<8x128xbf16>
    %cst_16 = arith.constant dense<0.000000e+00> : vector<8x128xf32>
    %24 = tpu.matmul %23, %18, %cst_16 {dimension_numbers = #tpu.dot_dimension_numbers<[1], [0], [0], [1], [0, 0, 1, 1], [], []>} : vector<8x128xbf16>, vector<128x128xbf16>, vector<8x128xf32> -> vector<8x128xf32>
    %cst_17 = arith.constant 0.176776692 : f32
    %25 = vector.broadcast %cst_17 : f32 to vector<8x128xf32>
    %26 = arith.mulf %24, %25 : vector<8x128xf32>
    %27 = vector.shape_cast %26 : vector<8x128xf32> to vector<8x4x32xf32>
    %28 = tpu.transpose %27, [1, 0, 2] : vector<8x4x32xf32> -> vector<4x8x32xf32>
    %29 = arith.truncf %28 : vector<4x8x32xf32> to vector<4x8x32xbf16>
    %cst_18 = arith.constant dense<0.000000e+00> : vector<4x8x8xf32>
    %30 = tpu.matmul %29, %19, %cst_18 {dimension_numbers = #tpu.dot_dimension_numbers<[2], [2], [1], [1], [0, 0, 0, 1, 1, 1], [0], [0]>} : vector<4x8x32xbf16>, vector<4x8x32xbf16>, vector<4x8x8xf32> -> vector<4x8x8xf32>
    %31 = vector.broadcast %22 : vector<1x8x8xf32> to vector<4x8x8xf32>
    %32 = arith.addf %30, %31 : vector<4x8x8xf32>
    %cst_19 = arith.constant dense<0xFF800000> : vector<4x8xf32>
    %33 = vector.multi_reduction <maximumf>, %32, %cst_19 [2] : vector<4x8x8xf32> to vector<4x8xf32>
    %34 = vector.shape_cast %33 : vector<4x8xf32> to vector<4x8x1xf32>
    %35 = vector.broadcast %34 : vector<4x8x1xf32> to vector<4x8x8xf32>
    %36 = arith.subf %32, %35 : vector<4x8x8xf32>
    %37 = math.exp %36 : vector<4x8x8xf32>
    %cst_20 = arith.constant dense<0.000000e+00> : vector<4x8xf32>
    %38 = vector.multi_reduction <add>, %37, %cst_20 [2] : vector<4x8x8xf32> to vector<4x8xf32>
    %39 = vector.shape_cast %38 : vector<4x8xf32> to vector<4x8x1xf32>
    %40 = tpu.reciprocal %39 {approx = true} : vector<4x8x1xf32> -> vector<4x8x1xf32>
    %41 = vector.broadcast %40 : vector<4x8x1xf32> to vector<4x8x8xf32>
    %42 = arith.mulf %37, %41 : vector<4x8x8xf32>
    %43 = arith.truncf %42 : vector<4x8x8xf32> to vector<4x8x8xbf16>
    %cst_21 = arith.constant dense<0.000000e+00> : vector<4x8x32xf32>
    %44 = tpu.matmul %43, %20, %cst_21 {dimension_numbers = #tpu.dot_dimension_numbers<[2], [1], [1], [2], [0, 0, 0, 1, 1, 2], [0], [0]>} : vector<4x8x8xbf16>, vector<4x8x32xbf16>, vector<4x8x32xf32> -> vector<4x8x32xf32>
    %45 = tpu.transpose %44, [1, 0, 2] : vector<4x8x32xf32> -> vector<8x4x32xf32>
    %46 = vector.shape_cast %45 : vector<8x4x32xf32> to vector<8x128xf32>
    %47 = arith.truncf %46 : vector<8x128xf32> to vector<8x128xbf16>
    %cst_22 = arith.constant dense<0.000000e+00> : vector<8x128xf32>
    %48 = tpu.matmul %47, %21, %cst_22 {dimension_numbers = #tpu.dot_dimension_numbers<[1], [0], [0], [1], [0, 0, 1, 1], [], []>} : vector<8x128xbf16>, vector<128x128xbf16>, vector<8x128xf32> -> vector<8x128xf32>
    %49 = arith.addf %7, %48 : vector<8x128xf32>
    %c0_23 = arith.constant 0 : index
    %c0_24 = arith.constant 0 : index
    %50 = vector.load %arg15[%c0_23, %c0_24] : memref<1x128xf32, #tpu.memory_space<vmem>>, vector<1x128xf32>
    %c0_25 = arith.constant 0 : index
    %c0_26 = arith.constant 0 : index
    %51 = vector.load %arg16[%c0_25, %c0_26] : memref<1x128xf32, #tpu.memory_space<vmem>>, vector<1x128xf32>
    %cst_27 = arith.constant dense<0.000000e+00> : vector<8xf32>
    %52 = vector.multi_reduction <add>, %49, %cst_27 [1] : vector<8x128xf32> to vector<8xf32>
    %53 = vector.shape_cast %52 : vector<8xf32> to vector<8x1xf32>
    %cst_28 = arith.constant 1.280000e+02 : f32
    %54 = vector.broadcast %cst_28 : f32 to vector<8x1xf32>
    %55 = arith.divf %53, %54 : vector<8x1xf32>
    %56 = vector.broadcast %55 : vector<8x1xf32> to vector<8x128xf32>
    %57 = arith.subf %49, %56 : vector<8x128xf32>
    %58 = arith.mulf %57, %57 : vector<8x128xf32>
    %cst_29 = arith.constant dense<0.000000e+00> : vector<8xf32>
    %59 = vector.multi_reduction <add>, %58, %cst_29 [1] : vector<8x128xf32> to vector<8xf32>
    %60 = vector.shape_cast %59 : vector<8xf32> to vector<8x1xf32>
    %cst_30 = arith.constant 1.280000e+02 : f32
    %61 = vector.broadcast %cst_30 : f32 to vector<8x1xf32>
    %62 = arith.divf %60, %61 : vector<8x1xf32>
    %63 = vector.broadcast %55 : vector<8x1xf32> to vector<8x128xf32>
    %64 = arith.subf %49, %63 : vector<8x128xf32>
    %cst_31 = arith.constant 9.99999974E-6 : f32
    %65 = vector.broadcast %cst_31 : f32 to vector<8x1xf32>
    %66 = arith.addf %62, %65 : vector<8x1xf32>
    %67 = math.rsqrt %66 : vector<8x1xf32>
    %68 = vector.broadcast %67 : vector<8x1xf32> to vector<8x128xf32>
    %69 = arith.mulf %64, %68 : vector<8x128xf32>
    %70 = vector.broadcast %50 : vector<1x128xf32> to vector<8x128xf32>
    %71 = arith.mulf %69, %70 : vector<8x128xf32>
    %72 = vector.broadcast %51 : vector<1x128xf32> to vector<8x128xf32>
    %73 = arith.addf %71, %72 : vector<8x128xf32>
    %c0_32 = arith.constant 0 : index
    %c0_33 = arith.constant 0 : index
    %74 = vector.load %arg8[%c0_32, %c0_33] : memref<128x128xbf16, #tpu.memory_space<vmem>>, vector<128x128xbf16>
    %c0_34 = arith.constant 0 : index
    %c0_35 = arith.constant 0 : index
    %c0_36 = arith.constant 0 : index
    %75 = vector.load %arg24[%c0_34, %c0_35, %c0_36] : memref<4x16x32xbf16, #tpu.memory_space<vmem>>, vector<4x16x32xbf16>
    %c0_37 = arith.constant 0 : index
    %c0_38 = arith.constant 0 : index
    %c0_39 = arith.constant 0 : index
    %76 = vector.load %arg25[%c0_37, %c0_38, %c0_39] : memref<4x16x32xbf16, #tpu.memory_space<vmem>>, vector<4x16x32xbf16>
    %c0_40 = arith.constant 0 : index
    %c0_41 = arith.constant 0 : index
    %77 = vector.load %arg10[%c0_40, %c0_41] : memref<128x128xbf16, #tpu.memory_space<vmem>>, vector<128x128xbf16>
    %78 = vector.shape_cast %17 : vector<1x16xf32> to vector<1x1x16xf32>
    %79 = arith.truncf %73 : vector<8x128xf32> to vector<8x128xbf16>
    %cst_42 = arith.constant dense<0.000000e+00> : vector<8x128xf32>
    %80 = tpu.matmul %79, %74, %cst_42 {dimension_numbers = #tpu.dot_dimension_numbers<[1], [0], [0], [1], [0, 0, 1, 1], [], []>} : vector<8x128xbf16>, vector<128x128xbf16>, vector<8x128xf32> -> vector<8x128xf32>
    %cst_43 = arith.constant 0.176776692 : f32
    %81 = vector.broadcast %cst_43 : f32 to vector<8x128xf32>
    %82 = arith.mulf %80, %81 : vector<8x128xf32>
    %83 = vector.shape_cast %82 : vector<8x128xf32> to vector<8x4x32xf32>
    %84 = tpu.transpose %83, [1, 0, 2] : vector<8x4x32xf32> -> vector<4x8x32xf32>
    %85 = arith.truncf %84 : vector<4x8x32xf32> to vector<4x8x32xbf16>
    %cst_44 = arith.constant dense<0.000000e+00> : vector<4x8x16xf32>
    %86 = tpu.matmul %85, %75, %cst_44 {dimension_numbers = #tpu.dot_dimension_numbers<[2], [2], [1], [1], [0, 0, 0, 1, 1, 1], [0], [0]>} : vector<4x8x32xbf16>, vector<4x16x32xbf16>, vector<4x8x16xf32> -> vector<4x8x16xf32>
    %87 = vector.broadcast %78 : vector<1x1x16xf32> to vector<4x8x16xf32>
    %88 = arith.addf %86, %87 : vector<4x8x16xf32>
    %cst_45 = arith.constant dense<0xFF800000> : vector<4x8xf32>
    %89 = vector.multi_reduction <maximumf>, %88, %cst_45 [2] : vector<4x8x16xf32> to vector<4x8xf32>
    %90 = vector.shape_cast %89 : vector<4x8xf32> to vector<4x8x1xf32>
    %91 = vector.broadcast %90 : vector<4x8x1xf32> to vector<4x8x16xf32>
    %92 = arith.subf %88, %91 : vector<4x8x16xf32>
    %93 = math.exp %92 : vector<4x8x16xf32>
    %cst_46 = arith.constant dense<0.000000e+00> : vector<4x8xf32>
    %94 = vector.multi_reduction <add>, %93, %cst_46 [2] : vector<4x8x16xf32> to vector<4x8xf32>
    %95 = vector.shape_cast %94 : vector<4x8xf32> to vector<4x8x1xf32>
    %96 = tpu.reciprocal %95 {approx = true} : vector<4x8x1xf32> -> vector<4x8x1xf32>
    %97 = vector.broadcast %96 : vector<4x8x1xf32> to vector<4x8x16xf32>
    %98 = arith.mulf %93, %97 : vector<4x8x16xf32>
    %99 = arith.truncf %98 : vector<4x8x16xf32> to vector<4x8x16xbf16>
    %cst_47 = arith.constant dense<0.000000e+00> : vector<4x8x32xf32>
    %100 = tpu.matmul %99, %76, %cst_47 {dimension_numbers = #tpu.dot_dimension_numbers<[2], [1], [1], [2], [0, 0, 0, 1, 1, 2], [0], [0]>} : vector<4x8x16xbf16>, vector<4x16x32xbf16>, vector<4x8x32xf32> -> vector<4x8x32xf32>
    %101 = tpu.transpose %100, [1, 0, 2] : vector<4x8x32xf32> -> vector<8x4x32xf32>
    %102 = vector.shape_cast %101 : vector<8x4x32xf32> to vector<8x128xf32>
    %103 = arith.truncf %102 : vector<8x128xf32> to vector<8x128xbf16>
    %cst_48 = arith.constant dense<0.000000e+00> : vector<8x128xf32>
    %104 = tpu.matmul %103, %77, %cst_48 {dimension_numbers = #tpu.dot_dimension_numbers<[1], [0], [0], [1], [0, 0, 1, 1], [], []>} : vector<8x128xbf16>, vector<128x128xbf16>, vector<8x128xf32> -> vector<8x128xf32>
    %105 = arith.addf %73, %104 : vector<8x128xf32>
    %c0_49 = arith.constant 0 : index
    %c0_50 = arith.constant 0 : index
    %106 = vector.load %arg17[%c0_49, %c0_50] : memref<1x128xf32, #tpu.memory_space<vmem>>, vector<1x128xf32>
    %c0_51 = arith.constant 0 : index
    %c0_52 = arith.constant 0 : index
    %107 = vector.load %arg18[%c0_51, %c0_52] : memref<1x128xf32, #tpu.memory_space<vmem>>, vector<1x128xf32>
    %cst_53 = arith.constant dense<0.000000e+00> : vector<8xf32>
    %108 = vector.multi_reduction <add>, %105, %cst_53 [1] : vector<8x128xf32> to vector<8xf32>
    %109 = vector.shape_cast %108 : vector<8xf32> to vector<8x1xf32>
    %cst_54 = arith.constant 1.280000e+02 : f32
    %110 = vector.broadcast %cst_54 : f32 to vector<8x1xf32>
    %111 = arith.divf %109, %110 : vector<8x1xf32>
    %112 = vector.broadcast %111 : vector<8x1xf32> to vector<8x128xf32>
    %113 = arith.subf %105, %112 : vector<8x128xf32>
    %114 = arith.mulf %113, %113 : vector<8x128xf32>
    %cst_55 = arith.constant dense<0.000000e+00> : vector<8xf32>
    %115 = vector.multi_reduction <add>, %114, %cst_55 [1] : vector<8x128xf32> to vector<8xf32>
    %116 = vector.shape_cast %115 : vector<8xf32> to vector<8x1xf32>
    %cst_56 = arith.constant 1.280000e+02 : f32
    %117 = vector.broadcast %cst_56 : f32 to vector<8x1xf32>
    %118 = arith.divf %116, %117 : vector<8x1xf32>
    %119 = vector.broadcast %111 : vector<8x1xf32> to vector<8x128xf32>
    %120 = arith.subf %105, %119 : vector<8x128xf32>
    %cst_57 = arith.constant 9.99999974E-6 : f32
    %121 = vector.broadcast %cst_57 : f32 to vector<8x1xf32>
    %122 = arith.addf %118, %121 : vector<8x1xf32>
    %123 = math.rsqrt %122 : vector<8x1xf32>
    %124 = vector.broadcast %123 : vector<8x1xf32> to vector<8x128xf32>
    %125 = arith.mulf %120, %124 : vector<8x128xf32>
    %126 = vector.broadcast %106 : vector<1x128xf32> to vector<8x128xf32>
    %127 = arith.mulf %125, %126 : vector<8x128xf32>
    %128 = vector.broadcast %107 : vector<1x128xf32> to vector<8x128xf32>
    %129 = arith.addf %127, %128 : vector<8x128xf32>
    %130 = arith.truncf %129 : vector<8x128xf32> to vector<8x128xbf16>
    %c0_58 = arith.constant 0 : index
    %c0_59 = arith.constant 0 : index
    %131 = vector.load %arg11[%c0_58, %c0_59] : memref<128x256xbf16, #tpu.memory_space<vmem>>, vector<128x256xbf16>
    %cst_60 = arith.constant dense<0.000000e+00> : vector<8x256xf32>
    %132 = tpu.matmul %130, %131, %cst_60 {dimension_numbers = #tpu.dot_dimension_numbers<[1], [0], [0], [1], [0, 0, 1, 1], [], []>} : vector<8x128xbf16>, vector<128x256xbf16>, vector<8x256xf32> -> vector<8x256xf32>
    %c0_61 = arith.constant 0 : index
    %c0_62 = arith.constant 0 : index
    %133 = vector.load %arg12[%c0_61, %c0_62] : memref<1x256xf32, #tpu.memory_space<vmem>>, vector<1x256xf32>
    %134 = vector.broadcast %133 : vector<1x256xf32> to vector<8x256xf32>
    %135 = arith.addf %132, %134 : vector<8x256xf32>
    %cst_63 = arith.constant 0.000000e+00 : f32
    %136 = vector.broadcast %cst_63 : f32 to vector<8x256xf32>
    %137 = arith.maximumf %135, %136 : vector<8x256xf32>
    %138 = arith.truncf %137 : vector<8x256xf32> to vector<8x256xbf16>
    %c0_64 = arith.constant 0 : index
    %c0_65 = arith.constant 0 : index
    %139 = vector.load %arg13[%c0_64, %c0_65] : memref<256x128xbf16, #tpu.memory_space<vmem>>, vector<256x128xbf16>
    %cst_66 = arith.constant dense<0.000000e+00> : vector<8x128xf32>
    %140 = tpu.matmul %138, %139, %cst_66 {dimension_numbers = #tpu.dot_dimension_numbers<[1], [0], [0], [1], [0, 0, 1, 1], [], []>} : vector<8x256xbf16>, vector<256x128xbf16>, vector<8x128xf32> -> vector<8x128xf32>
    %c0_67 = arith.constant 0 : index
    %c0_68 = arith.constant 0 : index
    %141 = vector.load %arg14[%c0_67, %c0_68] : memref<1x128xf32, #tpu.memory_space<vmem>>, vector<1x128xf32>
    %142 = vector.broadcast %141 : vector<1x128xf32> to vector<8x128xf32>
    %143 = arith.addf %140, %142 : vector<8x128xf32>
    %144 = arith.addf %129, %143 : vector<8x128xf32>
    %c0_69 = arith.constant 0 : index
    %c0_70 = arith.constant 0 : index
    %145 = vector.load %arg19[%c0_69, %c0_70] : memref<1x128xf32, #tpu.memory_space<vmem>>, vector<1x128xf32>
    %c0_71 = arith.constant 0 : index
    %c0_72 = arith.constant 0 : index
    %146 = vector.load %arg20[%c0_71, %c0_72] : memref<1x128xf32, #tpu.memory_space<vmem>>, vector<1x128xf32>
    %cst_73 = arith.constant dense<0.000000e+00> : vector<8xf32>
    %147 = vector.multi_reduction <add>, %144, %cst_73 [1] : vector<8x128xf32> to vector<8xf32>
    %148 = vector.shape_cast %147 : vector<8xf32> to vector<8x1xf32>
    %cst_74 = arith.constant 1.280000e+02 : f32
    %149 = vector.broadcast %cst_74 : f32 to vector<8x1xf32>
    %150 = arith.divf %148, %149 : vector<8x1xf32>
    %151 = vector.broadcast %150 : vector<8x1xf32> to vector<8x128xf32>
    %152 = arith.subf %144, %151 : vector<8x128xf32>
    %153 = arith.mulf %152, %152 : vector<8x128xf32>
    %cst_75 = arith.constant dense<0.000000e+00> : vector<8xf32>
    %154 = vector.multi_reduction <add>, %153, %cst_75 [1] : vector<8x128xf32> to vector<8xf32>
    %155 = vector.shape_cast %154 : vector<8xf32> to vector<8x1xf32>
    %cst_76 = arith.constant 1.280000e+02 : f32
    %156 = vector.broadcast %cst_76 : f32 to vector<8x1xf32>
    %157 = arith.divf %155, %156 : vector<8x1xf32>
    %158 = vector.broadcast %150 : vector<8x1xf32> to vector<8x128xf32>
    %159 = arith.subf %144, %158 : vector<8x128xf32>
    %cst_77 = arith.constant 9.99999974E-6 : f32
    %160 = vector.broadcast %cst_77 : f32 to vector<8x1xf32>
    %161 = arith.addf %157, %160 : vector<8x1xf32>
    %162 = math.rsqrt %161 : vector<8x1xf32>
    %163 = vector.broadcast %162 : vector<8x1xf32> to vector<8x128xf32>
    %164 = arith.mulf %159, %163 : vector<8x128xf32>
    %165 = vector.broadcast %145 : vector<1x128xf32> to vector<8x128xf32>
    %166 = arith.mulf %164, %165 : vector<8x128xf32>
    %167 = vector.broadcast %146 : vector<1x128xf32> to vector<8x128xf32>
    %168 = arith.addf %166, %167 : vector<8x128xf32>
    %c0_78 = arith.constant 0 : index
    %c0_79 = arith.constant 0 : index
    %c0_80 = arith.constant 0 : index
    %169 = vector.load %arg21[%c0_78, %c0_79, %c0_80] : memref<1x8x128xf32, #tpu.memory_space<vmem>>, vector<1x8x128xf32>
    %170 = vector.shape_cast %169 : vector<1x8x128xf32> to vector<8x128xf32>
    %171 = vector.shape_cast %168 : vector<8x128xf32> to vector<1x8x128xf32>
    tpu.vector_store %arg21[%c0_78, %c0_79, %c0_80], %171 {strides = array<i32>} : memref<1x8x128xf32, #tpu.memory_space<vmem>>, vector<1x8x128xf32>,
    return
  }
  func.func @transform_0(%arg0: i32, %arg1: i32) -> (i32, i32, i32) {
    %c0_i32 = arith.constant 0 : i32
    %c0_i32_0 = arith.constant 0 : i32
    %c0_i32_1 = arith.constant 0 : i32
    return %arg0, %c0_i32, %c0_i32_0 : i32, i32, i32
  }
  func.func @transform_1(%arg0: i32, %arg1: i32) -> (i32, i32, i32) {
    %c0_i32 = arith.constant 0 : i32
    %c0_i32_0 = arith.constant 0 : i32
    %c0_i32_1 = arith.constant 0 : i32
    return %arg0, %c0_i32, %c0_i32_0 : i32, i32, i32
  }
  func.func @transform_2(%arg0: i32, %arg1: i32) -> (i32, i32, i32) {
    %c0_i32 = arith.constant 0 : i32
    %c0_i32_0 = arith.constant 0 : i32
    %c0_i32_1 = arith.constant 0 : i32
    return %arg0, %c0_i32, %c0_i32_0 : i32, i32, i32
  }
  func.func @transform_3(%arg0: i32, %arg1: i32) -> (i32, i32) {
    %c0_i32 = arith.constant 0 : i32
    %c0_i32_0 = arith.constant 0 : i32
    %c0_i32_1 = arith.constant 0 : i32
    return %c0_i32, %c0_i32_0 : i32, i32
  }
  func.func @transform_4(%arg0: i32, %arg1: i32) -> (i32, i32) {
    %c0_i32 = arith.constant 0 : i32
    %c0_i32_0 = arith.constant 0 : i32
    %c0_i32_1 = arith.constant 0 : i32
    return %c0_i32, %c0_i32_0 : i32, i32
  }
  func.func @transform_5(%arg0: i32, %arg1: i32) -> (i32, i32) {
    %c0_i32 = arith.constant 0 : i32
    %c0_i32_0 = arith.constant 0 : i32
    %c0_i32_1 = arith.constant 0 : i32
    return %c0_i32, %c0_i32_0 : i32, i32
  }
  func.func @transform_6(%arg0: i32, %arg1: i32) -> (i32, i32) {
    %c0_i32 = arith.constant 0 : i32
    %c0_i32_0 = arith.constant 0 : i32
    %c0_i32_1 = arith.constant 0 : i32
    return %c0_i32, %c0_i32_0 : i32, i32
  }
  func.func @transform_7(%arg0: i32, %arg1: i32) -> (i32, i32) {
    %c0_i32 = arith.constant 0 : i32
    %c0_i32_0 = arith.constant 0 : i32
    %c0_i32_1 = arith.constant 0 : i32
    return %c0_i32, %c0_i32_0 : i32, i32
  }
  func.func @transform_8(%arg0: i32, %arg1: i32) -> (i32, i32) {
    %c0_i32 = arith.constant 0 : i32
    %c0_i32_0 = arith.constant 0 : i32
    %c0_i32_1 = arith.constant 0 : i32
    return %c0_i32, %c0_i32_0 : i32, i32
  }
  func.func @transform_9(%arg0: i32, %arg1: i32) -> (i32, i32) {
    %c0_i32 = arith.constant 0 : i32
    %c0_i32_0 = arith.constant 0 : i32
    %c0_i32_1 = arith.constant 0 : i32
    return %c0_i32, %c0_i32_0 : i32, i32
  }
  func.func @transform_10(%arg0: i32, %arg1: i32) -> (i32, i32) {
    %c0_i32 = arith.constant 0 : i32
    %c0_i32_0 = arith.constant 0 : i32
    %c0_i32_1 = arith.constant 0 : i32
    return %c0_i32, %c0_i32_0 : i32, i32
  }
  func.func @transform_11(%arg0: i32, %arg1: i32) -> (i32, i32) {
    %c0_i32 = arith.constant 0 : i32
    %c0_i32_0 = arith.constant 0 : i32
    %c0_i32_1 = arith.constant 0 : i32
    return %c0_i32, %c0_i32_0 : i32, i32
  }
  func.func @transform_12(%arg0: i32, %arg1: i32) -> (i32, i32) {
    %c0_i32 = arith.constant 0 : i32
    %c0_i32_0 = arith.constant 0 : i32
    %c0_i32_1 = arith.constant 0 : i32
    return %c0_i32, %c0_i32_0 : i32, i32
  }
  func.func @transform_13(%arg0: i32, %arg1: i32) -> (i32, i32) {
    %c0_i32 = arith.constant 0 : i32
    %c0_i32_0 = arith.constant 0 : i32
    %c0_i32_1 = arith.constant 0 : i32
    return %c0_i32, %c0_i32_0 : i32, i32
  }
  func.func @transform_14(%arg0: i32, %arg1: i32) -> (i32, i32) {
    %c0_i32 = arith.constant 0 : i32
    %c0_i32_0 = arith.constant 0 : i32
    %c0_i32_1 = arith.constant 0 : i32
    return %c0_i32, %c0_i32_0 : i32, i32
  }
  func.func @transform_15(%arg0: i32, %arg1: i32) -> (i32, i32) {
    %c0_i32 = arith.constant 0 : i32
    %c0_i32_0 = arith.constant 0 : i32
    %c0_i32_1 = arith.constant 0 : i32
    return %c0_i32, %c0_i32_0 : i32, i32
  }
  func.func @transform_16(%arg0: i32, %arg1: i32) -> (i32, i32) {
    %c0_i32 = arith.constant 0 : i32
    %c0_i32_0 = arith.constant 0 : i32
    %c0_i32_1 = arith.constant 0 : i32
    return %c0_i32, %c0_i32_0 : i32, i32
  }
  func.func @transform_17(%arg0: i32, %arg1: i32) -> (i32, i32) {
    %c0_i32 = arith.constant 0 : i32
    %c0_i32_0 = arith.constant 0 : i32
    %c0_i32_1 = arith.constant 0 : i32
    return %c0_i32, %c0_i32_0 : i32, i32
  }
  func.func @transform_18(%arg0: i32, %arg1: i32) -> (i32, i32) {
    %c0_i32 = arith.constant 0 : i32
    %c0_i32_0 = arith.constant 0 : i32
    %c0_i32_1 = arith.constant 0 : i32
    return %c0_i32, %c0_i32_0 : i32, i32
  }
  func.func @transform_19(%arg0: i32, %arg1: i32) -> (i32, i32, i32) {
    %c0_i32 = arith.constant 0 : i32
    %c0_i32_0 = arith.constant 0 : i32
    return %arg0, %arg1, %c0_i32 : i32, i32, i32
  }
}

module attributes {stable_mosaic.version = 11 : i64} {
  func.func @output_proj_kernel(%arg0: i32, %arg1: i32, %arg2: memref<16x128xf32, #tpu.memory_space<vmem>>, %arg3: memref<128x128xbf16, #tpu.memory_space<vmem>>, %arg4: memref<16x128xf32, #tpu.memory_space<vmem>>) attributes {dimension_semantics = [#tpu.dimension_semantics<parallel>, #tpu.dimension_semantics<parallel>], iteration_bounds = array<i64: 1, 1>, scalar_prefetch = 0 : i64, scratch_operands = 0 : i64, tpu.core_type = #tpu.core_type<tc>, window_params = [{transform_indices = @transform_0, window_bounds = array<i64: 16, 128>}, {transform_indices = @transform_1, window_bounds = array<i64: 128, 128>}, {transform_indices = @transform_2, window_bounds = array<i64: 16, 128>}]} {
    %c0 = arith.constant 0 : index
    %c0_0 = arith.constant 0 : index
    %0 = vector.load %arg2[%c0, %c0_0] : memref<16x128xf32, #tpu.memory_space<vmem>>, vector<16x128xf32>
    %1 = arith.truncf %0 : vector<16x128xf32> to vector<16x128xbf16>
    %c0_1 = arith.constant 0 : index
    %c0_2 = arith.constant 0 : index
    %2 = vector.load %arg3[%c0_1, %c0_2] : memref<128x128xbf16, #tpu.memory_space<vmem>>, vector<128x128xbf16>
    %cst = arith.constant dense<0.000000e+00> : vector<16x128xf32>
    %3 = tpu.matmul %1, %2, %cst {dimension_numbers = #tpu.dot_dimension_numbers<[1], [1], [0], [0], [0, 0, 1, 0], [], []>} : vector<16x128xbf16>, vector<128x128xbf16>, vector<16x128xf32> -> vector<16x128xf32>
    %c0_3 = arith.constant 0 : index
    %c0_4 = arith.constant 0 : index
    %4 = vector.load %arg4[%c0_3, %c0_4] : memref<16x128xf32, #tpu.memory_space<vmem>>, vector<16x128xf32>
    tpu.vector_store %arg4[%c0_3, %c0_4], %3 {strides = array<i32>} : memref<16x128xf32, #tpu.memory_space<vmem>>, vector<16x128xf32>,
    return
  }
  func.func @transform_0(%arg0: i32, %arg1: i32) -> (i32, i32) {
    %c0_i32 = arith.constant 0 : i32
    %c0_i32_0 = arith.constant 0 : i32
    return %arg1, %c0_i32 : i32, i32
  }
  func.func @transform_1(%arg0: i32, %arg1: i32) -> (i32, i32) {
    %c0_i32 = arith.constant 0 : i32
    %c0_i32_0 = arith.constant 0 : i32
    return %arg0, %c0_i32 : i32, i32
  }
  func.func @transform_2(%arg0: i32, %arg1: i32) -> (i32, i32) {
    %c0_i32 = arith.constant 0 : i32
    return %arg1, %arg0 : i32, i32
  }
}

module attributes {stable_mosaic.version = 11 : i64} {
  func.func @decoder_block_kernel(%arg0: i32, %arg1: i32, %arg2: memref<1x8x128xf32, #tpu.memory_space<vmem>>, %arg3: memref<1x16x128xf32, #tpu.memory_space<vmem>>, %arg4: memref<1x1x16xf32, #tpu.memory_space<vmem>>, %arg5: memref<128x128xbf16, #tpu.memory_space<vmem>>, %arg6: memref<128x256xbf16, #tpu.memory_space<vmem>>, %arg7: memref<128x128xbf16, #tpu.memory_space<vmem>>, %arg8: memref<128x128xbf16, #tpu.memory_space<vmem>>, %arg9: memref<128x256xbf16, #tpu.memory_space<vmem>>, %arg10: memref<128x128xbf16, #tpu.memory_space<vmem>>, %arg11: memref<128x256xbf16, #tpu.memory_space<vmem>>, %arg12: memref<1x256xf32, #tpu.memory_space<vmem>>, %arg13: memref<256x128xbf16, #tpu.memory_space<vmem>>, %arg14: memref<1x128xf32, #tpu.memory_space<vmem>>, %arg15: memref<1x128xf32, #tpu.memory_space<vmem>>, %arg16: memref<1x128xf32, #tpu.memory_space<vmem>>, %arg17: memref<1x128xf32, #tpu.memory_space<vmem>>, %arg18: memref<1x128xf32, #tpu.memory_space<vmem>>, %arg19: memref<1x128xf32, #tpu.memory_space<vmem>>, %arg20: memref<1x128xf32, #tpu.memory_space<vmem>>, %arg21: memref<1x8x128xf32, #tpu.memory_space<vmem>>, %arg22: memref<4x8x32xbf16, #tpu.memory_space<vmem>>, %arg23: memref<4x8x32xbf16, #tpu.memory_space<vmem>>, %arg24: memref<4x16x32xbf16, #tpu.memory_space<vmem>>, %arg25: memref<4x16x32xbf16, #tpu.memory_space<vmem>>) attributes {dimension_semantics = [#tpu.dimension_semantics<parallel>, #tpu.dimension_semantics<arbitrary>], iteration_bounds = array<i64: 2, 1>, scalar_prefetch = 0 : i64, scratch_operands = 4 : i64, tpu.core_type = #tpu.core_type<tc>, window_params = [{transform_indices = @transform_0, window_bounds = array<i64: 1, 8, 128>}, {transform_indices = @transform_1, window_bounds = array<i64: 1, 16, 128>}, {transform_indices = @transform_2, window_bounds = array<i64: 1, 1, 16>}, {pipeline_mode = #tpu.pipeline_mode<synchronous>, transform_indices = @transform_3, window_bounds = array<i64: 128, 128>}, {pipeline_mode = #tpu.pipeline_mode<synchronous>, transform_indices = @transform_4, window_bounds = array<i64: 128, 256>}, {pipeline_mode = #tpu.pipeline_mode<synchronous>, transform_indices = @transform_5, window_bounds = array<i64: 128, 128>}, {pipeline_mode = #tpu.pipeline_mode<synchronous>, transform_indices = @transform_6, window_bounds = array<i64: 128, 128>}, {pipeline_mode = #tpu.pipeline_mode<synchronous>, transform_indices = @transform_7, window_bounds = array<i64: 128, 256>}, {pipeline_mode = #tpu.pipeline_mode<synchronous>, transform_indices = @transform_8, window_bounds = array<i64: 128, 128>}, {pipeline_mode = #tpu.pipeline_mode<synchronous>, transform_indices = @transform_9, window_bounds = array<i64: 128, 256>}, {pipeline_mode = #tpu.pipeline_mode<synchronous>, transform_indices = @transform_10, window_bounds = array<i64: 1, 256>}, {pipeline_mode = #tpu.pipeline_mode<synchronous>, transform_indices = @transform_11, window_bounds = array<i64: 256, 128>}, {pipeline_mode = #tpu.pipeline_mode<synchronous>, transform_indices = @transform_12, window_bounds = array<i64: 1, 128>}, {pipeline_mode = #tpu.pipeline_mode<synchronous>, transform_indices = @transform_13, window_bounds = array<i64: 1, 128>}, {pipeline_mode = #tpu.pipeline_mode<synchronous>, transform_indices = @transform_14, window_bounds = array<i64: 1, 128>}, {pipeline_mode = #tpu.pipeline_mode<synchronous>, transform_indices = @transform_15, window_bounds = array<i64: 1, 128>}, {pipeline_mode = #tpu.pipeline_mode<synchronous>, transform_indices = @transform_16, window_bounds = array<i64: 1, 128>}, {pipeline_mode = #tpu.pipeline_mode<synchronous>, transform_indices = @transform_17, window_bounds = array<i64: 1, 128>}, {pipeline_mode = #tpu.pipeline_mode<synchronous>, transform_indices = @transform_18, window_bounds = array<i64: 1, 128>}, {transform_indices = @transform_19, window_bounds = array<i64: 1, 8, 128>}]} {
    %c0_i32 = arith.constant 0 : i32
    %0 = arith.cmpi eq, %arg1, %c0_i32 : i32
    %1 = arith.extui %0 : i1 to i32
    %c0_i32_0 = arith.constant 0 : i32
    %2 = arith.cmpi ne, %1, %c0_i32_0 : i32
    scf.if %2 {
      %c0_81 = arith.constant 0 : index
      %c0_82 = arith.constant 0 : index
      %c0_83 = arith.constant 0 : index
      %172 = vector.load %arg2[%c0_81, %c0_82, %c0_83] : memref<1x8x128xf32, #tpu.memory_space<vmem>>, vector<1x8x128xf32>
      %173 = vector.shape_cast %172 : vector<1x8x128xf32> to vector<8x128xf32>
      %174 = arith.truncf %173 : vector<8x128xf32> to vector<8x128xbf16>
      %c0_84 = arith.constant 0 : index
      %c0_85 = arith.constant 0 : index
      %175 = vector.load %arg6[%c0_84, %c0_85] : memref<128x256xbf16, #tpu.memory_space<vmem>>, vector<128x256xbf16>
      %cst_86 = arith.constant dense<0.000000e+00> : vector<8x256xf32>
      %176 = tpu.matmul %174, %175, %cst_86 {dimension_numbers = #tpu.dot_dimension_numbers<[1], [0], [0], [1], [0, 0, 1, 1], [], []>} : vector<8x128xbf16>, vector<128x256xbf16>, vector<8x256xf32> -> vector<8x256xf32>
      %177 = vector.extract_strided_slice %176 {offsets = [0, 0], sizes = [8, 128], strides = [1, 1]} : vector<8x256xf32> to vector<8x128xf32>
      %178 = vector.shape_cast %177 : vector<8x128xf32> to vector<8x4x32xf32>
      %179 = tpu.transpose %178, [1, 0, 2] : vector<8x4x32xf32> -> vector<4x8x32xf32>
      %180 = arith.truncf %179 : vector<4x8x32xf32> to vector<4x8x32xbf16>
      %c0_87 = arith.constant 0 : index
      %c0_88 = arith.constant 0 : index
      %c0_89 = arith.constant 0 : index
      %181 = vector.load %arg22[%c0_87, %c0_88, %c0_89] : memref<4x8x32xbf16, #tpu.memory_space<vmem>>, vector<4x8x32xbf16>
      tpu.vector_store %arg22[%c0_87, %c0_88, %c0_89], %180 {strides = array<i32>} : memref<4x8x32xbf16, #tpu.memory_space<vmem>>, vector<4x8x32xbf16>,
      %182 = vector.extract_strided_slice %176 {offsets = [0, 128], sizes = [8, 128], strides = [1, 1]} : vector<8x256xf32> to vector<8x128xf32>
      %183 = vector.shape_cast %182 : vector<8x128xf32> to vector<8x4x32xf32>
      %184 = tpu.transpose %183, [1, 0, 2] : vector<8x4x32xf32> -> vector<4x8x32xf32>
      %185 = arith.truncf %184 : vector<4x8x32xf32> to vector<4x8x32xbf16>
      %c0_90 = arith.constant 0 : index
      %c0_91 = arith.constant 0 : index
      %c0_92 = arith.constant 0 : index
      %186 = vector.load %arg23[%c0_90, %c0_91, %c0_92] : memref<4x8x32xbf16, #tpu.memory_space<vmem>>, vector<4x8x32xbf16>
      tpu.vector_store %arg23[%c0_90, %c0_91, %c0_92], %185 {strides = array<i32>} : memref<4x8x32xbf16, #tpu.memory_space<vmem>>, vector<4x8x32xbf16>,
      %c0_93 = arith.constant 0 : index
      %c0_94 = arith.constant 0 : index
      %c0_95 = arith.constant 0 : index
      %187 = vector.load %arg3[%c0_93, %c0_94, %c0_95] : memref<1x16x128xf32, #tpu.memory_space<vmem>>, vector<1x16x128xf32>
      %188 = vector.shape_cast %187 : vector<1x16x128xf32> to vector<16x128xf32>
      %189 = arith.truncf %188 : vector<16x128xf32> to vector<16x128xbf16>
      %c0_96 = arith.constant 0 : index
      %c0_97 = arith.constant 0 : index
      %190 = vector.load %arg9[%c0_96, %c0_97] : memref<128x256xbf16, #tpu.memory_space<vmem>>, vector<128x256xbf16>
      %cst_98 = arith.constant dense<0.000000e+00> : vector<16x256xf32>
      %191 = tpu.matmul %189, %190, %cst_98 {dimension_numbers = #tpu.dot_dimension_numbers<[1], [0], [0], [1], [0, 0, 1, 1], [], []>} : vector<16x128xbf16>, vector<128x256xbf16>, vector<16x256xf32> -> vector<16x256xf32>
      %192 = vector.extract_strided_slice %191 {offsets = [0, 0], sizes = [16, 128], strides = [1, 1]} : vector<16x256xf32> to vector<16x128xf32>
      %193 = vector.shape_cast %192 : vector<16x128xf32> to vector<16x4x32xf32>
      %194 = tpu.transpose %193, [1, 0, 2] : vector<16x4x32xf32> -> vector<4x16x32xf32>
      %195 = arith.truncf %194 : vector<4x16x32xf32> to vector<4x16x32xbf16>
      %c0_99 = arith.constant 0 : index
      %c0_100 = arith.constant 0 : index
      %c0_101 = arith.constant 0 : index
      %196 = vector.load %arg24[%c0_99, %c0_100, %c0_101] : memref<4x16x32xbf16, #tpu.memory_space<vmem>>, vector<4x16x32xbf16>
      tpu.vector_store %arg24[%c0_99, %c0_100, %c0_101], %195 {strides = array<i32>} : memref<4x16x32xbf16, #tpu.memory_space<vmem>>, vector<4x16x32xbf16>,
      %197 = vector.extract_strided_slice %191 {offsets = [0, 128], sizes = [16, 128], strides = [1, 1]} : vector<16x256xf32> to vector<16x128xf32>
      %198 = vector.shape_cast %197 : vector<16x128xf32> to vector<16x4x32xf32>
      %199 = tpu.transpose %198, [1, 0, 2] : vector<16x4x32xf32> -> vector<4x16x32xf32>
      %200 = arith.truncf %199 : vector<4x16x32xf32> to vector<4x16x32xbf16>
      %c0_102 = arith.constant 0 : index
      %c0_103 = arith.constant 0 : index
      %c0_104 = arith.constant 0 : index
      %201 = vector.load %arg25[%c0_102, %c0_103, %c0_104] : memref<4x16x32xbf16, #tpu.memory_space<vmem>>, vector<4x16x32xbf16>
      tpu.vector_store %arg25[%c0_102, %c0_103, %c0_104], %200 {strides = array<i32>} : memref<4x16x32xbf16, #tpu.memory_space<vmem>>, vector<4x16x32xbf16>,
    } else {
    }
    %c8_i32 = arith.constant 8 : i32
    %3 = arith.muli %arg1, %c8_i32 : i32
    %4 = tpu.assume_multiple %3, 8 : i32
    %c0 = arith.constant 0 : index
    %5 = arith.index_cast %4 : i32 to index
    %c0_1 = arith.constant 0 : index
    %6 = vector.load %arg2[%c0, %5, %c0_1] : memref<1x8x128xf32, #tpu.memory_space<vmem>>, vector<1x8x128xf32>
    %7 = vector.shape_cast %6 : vector<1x8x128xf32> to vector<8x128xf32>
    %8 = tpu.iota {dimensions = array<i32: 0>} : vector<8x8xi32>
    %9 = vector.broadcast %4 : i32 to vector<8x8xi32>
    %10 = arith.addi %9, %8 : vector<8x8xi32>
    %11 = tpu.iota {dimensions = array<i32: 1>} : vector<8x8xi32>
    %12 = arith.cmpi sge, %10, %11 : vector<8x8xi32>
    %cst = arith.constant 0.000000e+00 : f32
    %cst_2 = arith.constant -1.000000e+30 : f32
    %13 = vector.broadcast %cst : f32 to vector<8x8xf32>
    %14 = vector.broadcast %cst_2 : f32 to vector<8x8xf32>
    %15 = arith.select %12, %13, %14 : vector<8x8xi1>, vector<8x8xf32>
    %c0_3 = arith.constant 0 : index
    %c0_4 = arith.constant 0 : index
    %c0_5 = arith.constant 0 : index
    %16 = vector.load %arg4[%c0_3, %c0_4, %c0_5] : memref<1x1x16xf32, #tpu.memory_space<vmem>>, vector<1x1x16xf32>
    %17 = vector.shape_cast %16 : vector<1x1x16xf32> to vector<1x16xf32>
    %c0_6 = arith.constant 0 : index
    %c0_7 = arith.constant 0 : index
    %18 = vector.load %arg5[%c0_6, %c0_7] : memref<128x128xbf16, #tpu.memory_space<vmem>>, vector<128x128xbf16>
    %c0_8 = arith.constant 0 : index
    %c0_9 = arith.constant 0 : index
    %c0_10 = arith.constant 0 : index
    %19 = vector.load %arg22[%c0_8, %c0_9, %c0_10] : memref<4x8x32xbf16, #tpu.memory_space<vmem>>, vector<4x8x32xbf16>
    %c0_11 = arith.constant 0 : index
    %c0_12 = arith.constant 0 : index
    %c0_13 = arith.constant 0 : index
    %20 = vector.load %arg23[%c0_11, %c0_12, %c0_13] : memref<4x8x32xbf16, #tpu.memory_space<vmem>>, vector<4x8x32xbf16>
    %c0_14 = arith.constant 0 : index
    %c0_15 = arith.constant 0 : index
    %21 = vector.load %arg7[%c0_14, %c0_15] : memref<128x128xbf16, #tpu.memory_space<vmem>>, vector<128x128xbf16>
    %22 = vector.shape_cast %15 : vector<8x8xf32> to vector<1x8x8xf32>
    %23 = arith.truncf %7 : vector<8x128xf32> to vector<8x128xbf16>
    %cst_16 = arith.constant dense<0.000000e+00> : vector<8x128xf32>
    %24 = tpu.matmul %23, %18, %cst_16 {dimension_numbers = #tpu.dot_dimension_numbers<[1], [0], [0], [1], [0, 0, 1, 1], [], []>} : vector<8x128xbf16>, vector<128x128xbf16>, vector<8x128xf32> -> vector<8x128xf32>
    %cst_17 = arith.constant 0.176776692 : f32
    %25 = vector.broadcast %cst_17 : f32 to vector<8x128xf32>
    %26 = arith.mulf %24, %25 : vector<8x128xf32>
    %27 = vector.shape_cast %26 : vector<8x128xf32> to vector<8x4x32xf32>
    %28 = tpu.transpose %27, [1, 0, 2] : vector<8x4x32xf32> -> vector<4x8x32xf32>
    %29 = arith.truncf %28 : vector<4x8x32xf32> to vector<4x8x32xbf16>
    %cst_18 = arith.constant dense<0.000000e+00> : vector<4x8x8xf32>
    %30 = tpu.matmul %29, %19, %cst_18 {dimension_numbers = #tpu.dot_dimension_numbers<[2], [2], [1], [1], [0, 0, 0, 1, 1, 1], [0], [0]>} : vector<4x8x32xbf16>, vector<4x8x32xbf16>, vector<4x8x8xf32> -> vector<4x8x8xf32>
    %31 = vector.broadcast %22 : vector<1x8x8xf32> to vector<4x8x8xf32>
    %32 = arith.addf %30, %31 : vector<4x8x8xf32>
    %cst_19 = arith.constant dense<0xFF800000> : vector<4x8xf32>
    %33 = vector.multi_reduction <maximumf>, %32, %cst_19 [2] : vector<4x8x8xf32> to vector<4x8xf32>
    %34 = vector.shape_cast %33 : vector<4x8xf32> to vector<4x8x1xf32>
    %35 = vector.broadcast %34 : vector<4x8x1xf32> to vector<4x8x8xf32>
    %36 = arith.subf %32, %35 : vector<4x8x8xf32>
    %37 = math.exp %36 : vector<4x8x8xf32>
    %cst_20 = arith.constant dense<0.000000e+00> : vector<4x8xf32>
    %38 = vector.multi_reduction <add>, %37, %cst_20 [2] : vector<4x8x8xf32> to vector<4x8xf32>
    %39 = vector.shape_cast %38 : vector<4x8xf32> to vector<4x8x1xf32>
    %40 = tpu.reciprocal %39 {approx = true} : vector<4x8x1xf32> -> vector<4x8x1xf32>
    %41 = vector.broadcast %40 : vector<4x8x1xf32> to vector<4x8x8xf32>
    %42 = arith.mulf %37, %41 : vector<4x8x8xf32>
    %43 = arith.truncf %42 : vector<4x8x8xf32> to vector<4x8x8xbf16>
    %cst_21 = arith.constant dense<0.000000e+00> : vector<4x8x32xf32>
    %44 = tpu.matmul %43, %20, %cst_21 {dimension_numbers = #tpu.dot_dimension_numbers<[2], [1], [1], [2], [0, 0, 0, 1, 1, 2], [0], [0]>} : vector<4x8x8xbf16>, vector<4x8x32xbf16>, vector<4x8x32xf32> -> vector<4x8x32xf32>
    %45 = tpu.transpose %44, [1, 0, 2] : vector<4x8x32xf32> -> vector<8x4x32xf32>
    %46 = vector.shape_cast %45 : vector<8x4x32xf32> to vector<8x128xf32>
    %47 = arith.truncf %46 : vector<8x128xf32> to vector<8x128xbf16>
    %cst_22 = arith.constant dense<0.000000e+00> : vector<8x128xf32>
    %48 = tpu.matmul %47, %21, %cst_22 {dimension_numbers = #tpu.dot_dimension_numbers<[1], [0], [0], [1], [0, 0, 1, 1], [], []>} : vector<8x128xbf16>, vector<128x128xbf16>, vector<8x128xf32> -> vector<8x128xf32>
    %49 = arith.addf %7, %48 : vector<8x128xf32>
    %c0_23 = arith.constant 0 : index
    %c0_24 = arith.constant 0 : index
    %50 = vector.load %arg15[%c0_23, %c0_24] : memref<1x128xf32, #tpu.memory_space<vmem>>, vector<1x128xf32>
    %c0_25 = arith.constant 0 : index
    %c0_26 = arith.constant 0 : index
    %51 = vector.load %arg16[%c0_25, %c0_26] : memref<1x128xf32, #tpu.memory_space<vmem>>, vector<1x128xf32>
    %cst_27 = arith.constant dense<0.000000e+00> : vector<8xf32>
    %52 = vector.multi_reduction <add>, %49, %cst_27 [1] : vector<8x128xf32> to vector<8xf32>
    %53 = vector.shape_cast %52 : vector<8xf32> to vector<8x1xf32>
    %cst_28 = arith.constant 1.280000e+02 : f32
    %54 = vector.broadcast %cst_28 : f32 to vector<8x1xf32>
    %55 = arith.divf %53, %54 : vector<8x1xf32>
    %56 = vector.broadcast %55 : vector<8x1xf32> to vector<8x128xf32>
    %57 = arith.subf %49, %56 : vector<8x128xf32>
    %58 = arith.mulf %57, %57 : vector<8x128xf32>
    %cst_29 = arith.constant dense<0.000000e+00> : vector<8xf32>
    %59 = vector.multi_reduction <add>, %58, %cst_29 [1] : vector<8x128xf32> to vector<8xf32>
    %60 = vector.shape_cast %59 : vector<8xf32> to vector<8x1xf32>
    %cst_30 = arith.constant 1.280000e+02 : f32
    %61 = vector.broadcast %cst_30 : f32 to vector<8x1xf32>
    %62 = arith.divf %60, %61 : vector<8x1xf32>
    %63 = vector.broadcast %55 : vector<8x1xf32> to vector<8x128xf32>
    %64 = arith.subf %49, %63 : vector<8x128xf32>
    %cst_31 = arith.constant 9.99999974E-6 : f32
    %65 = vector.broadcast %cst_31 : f32 to vector<8x1xf32>
    %66 = arith.addf %62, %65 : vector<8x1xf32>
    %67 = math.rsqrt %66 : vector<8x1xf32>
    %68 = vector.broadcast %67 : vector<8x1xf32> to vector<8x128xf32>
    %69 = arith.mulf %64, %68 : vector<8x128xf32>
    %70 = vector.broadcast %50 : vector<1x128xf32> to vector<8x128xf32>
    %71 = arith.mulf %69, %70 : vector<8x128xf32>
    %72 = vector.broadcast %51 : vector<1x128xf32> to vector<8x128xf32>
    %73 = arith.addf %71, %72 : vector<8x128xf32>
    %c0_32 = arith.constant 0 : index
    %c0_33 = arith.constant 0 : index
    %74 = vector.load %arg8[%c0_32, %c0_33] : memref<128x128xbf16, #tpu.memory_space<vmem>>, vector<128x128xbf16>
    %c0_34 = arith.constant 0 : index
    %c0_35 = arith.constant 0 : index
    %c0_36 = arith.constant 0 : index
    %75 = vector.load %arg24[%c0_34, %c0_35, %c0_36] : memref<4x16x32xbf16, #tpu.memory_space<vmem>>, vector<4x16x32xbf16>
    %c0_37 = arith.constant 0 : index
    %c0_38 = arith.constant 0 : index
    %c0_39 = arith.constant 0 : index
    %76 = vector.load %arg25[%c0_37, %c0_38, %c0_39] : memref<4x16x32xbf16, #tpu.memory_space<vmem>>, vector<4x16x32xbf16>
    %c0_40 = arith.constant 0 : index
    %c0_41 = arith.constant 0 : index
    %77 = vector.load %arg10[%c0_40, %c0_41] : memref<128x128xbf16, #tpu.memory_space<vmem>>, vector<128x128xbf16>
    %78 = vector.shape_cast %17 : vector<1x16xf32> to vector<1x1x16xf32>
    %79 = arith.truncf %73 : vector<8x128xf32> to vector<8x128xbf16>
    %cst_42 = arith.constant dense<0.000000e+00> : vector<8x128xf32>
    %80 = tpu.matmul %79, %74, %cst_42 {dimension_numbers = #tpu.dot_dimension_numbers<[1], [0], [0], [1], [0, 0, 1, 1], [], []>} : vector<8x128xbf16>, vector<128x128xbf16>, vector<8x128xf32> -> vector<8x128xf32>
    %cst_43 = arith.constant 0.176776692 : f32
    %81 = vector.broadcast %cst_43 : f32 to vector<8x128xf32>
    %82 = arith.mulf %80, %81 : vector<8x128xf32>
    %83 = vector.shape_cast %82 : vector<8x128xf32> to vector<8x4x32xf32>
    %84 = tpu.transpose %83, [1, 0, 2] : vector<8x4x32xf32> -> vector<4x8x32xf32>
    %85 = arith.truncf %84 : vector<4x8x32xf32> to vector<4x8x32xbf16>
    %cst_44 = arith.constant dense<0.000000e+00> : vector<4x8x16xf32>
    %86 = tpu.matmul %85, %75, %cst_44 {dimension_numbers = #tpu.dot_dimension_numbers<[2], [2], [1], [1], [0, 0, 0, 1, 1, 1], [0], [0]>} : vector<4x8x32xbf16>, vector<4x16x32xbf16>, vector<4x8x16xf32> -> vector<4x8x16xf32>
    %87 = vector.broadcast %78 : vector<1x1x16xf32> to vector<4x8x16xf32>
    %88 = arith.addf %86, %87 : vector<4x8x16xf32>
    %cst_45 = arith.constant dense<0xFF800000> : vector<4x8xf32>
    %89 = vector.multi_reduction <maximumf>, %88, %cst_45 [2] : vector<4x8x16xf32> to vector<4x8xf32>
    %90 = vector.shape_cast %89 : vector<4x8xf32> to vector<4x8x1xf32>
    %91 = vector.broadcast %90 : vector<4x8x1xf32> to vector<4x8x16xf32>
    %92 = arith.subf %88, %91 : vector<4x8x16xf32>
    %93 = math.exp %92 : vector<4x8x16xf32>
    %cst_46 = arith.constant dense<0.000000e+00> : vector<4x8xf32>
    %94 = vector.multi_reduction <add>, %93, %cst_46 [2] : vector<4x8x16xf32> to vector<4x8xf32>
    %95 = vector.shape_cast %94 : vector<4x8xf32> to vector<4x8x1xf32>
    %96 = tpu.reciprocal %95 {approx = true} : vector<4x8x1xf32> -> vector<4x8x1xf32>
    %97 = vector.broadcast %96 : vector<4x8x1xf32> to vector<4x8x16xf32>
    %98 = arith.mulf %93, %97 : vector<4x8x16xf32>
    %99 = arith.truncf %98 : vector<4x8x16xf32> to vector<4x8x16xbf16>
    %cst_47 = arith.constant dense<0.000000e+00> : vector<4x8x32xf32>
    %100 = tpu.matmul %99, %76, %cst_47 {dimension_numbers = #tpu.dot_dimension_numbers<[2], [1], [1], [2], [0, 0, 0, 1, 1, 2], [0], [0]>} : vector<4x8x16xbf16>, vector<4x16x32xbf16>, vector<4x8x32xf32> -> vector<4x8x32xf32>
    %101 = tpu.transpose %100, [1, 0, 2] : vector<4x8x32xf32> -> vector<8x4x32xf32>
    %102 = vector.shape_cast %101 : vector<8x4x32xf32> to vector<8x128xf32>
    %103 = arith.truncf %102 : vector<8x128xf32> to vector<8x128xbf16>
    %cst_48 = arith.constant dense<0.000000e+00> : vector<8x128xf32>
    %104 = tpu.matmul %103, %77, %cst_48 {dimension_numbers = #tpu.dot_dimension_numbers<[1], [0], [0], [1], [0, 0, 1, 1], [], []>} : vector<8x128xbf16>, vector<128x128xbf16>, vector<8x128xf32> -> vector<8x128xf32>
    %105 = arith.addf %73, %104 : vector<8x128xf32>
    %c0_49 = arith.constant 0 : index
    %c0_50 = arith.constant 0 : index
    %106 = vector.load %arg17[%c0_49, %c0_50] : memref<1x128xf32, #tpu.memory_space<vmem>>, vector<1x128xf32>
    %c0_51 = arith.constant 0 : index
    %c0_52 = arith.constant 0 : index
    %107 = vector.load %arg18[%c0_51, %c0_52] : memref<1x128xf32, #tpu.memory_space<vmem>>, vector<1x128xf32>
    %cst_53 = arith.constant dense<0.000000e+00> : vector<8xf32>
    %108 = vector.multi_reduction <add>, %105, %cst_53 [1] : vector<8x128xf32> to vector<8xf32>
    %109 = vector.shape_cast %108 : vector<8xf32> to vector<8x1xf32>
    %cst_54 = arith.constant 1.280000e+02 : f32
    %110 = vector.broadcast %cst_54 : f32 to vector<8x1xf32>
    %111 = arith.divf %109, %110 : vector<8x1xf32>
    %112 = vector.broadcast %111 : vector<8x1xf32> to vector<8x128xf32>
    %113 = arith.subf %105, %112 : vector<8x128xf32>
    %114 = arith.mulf %113, %113 : vector<8x128xf32>
    %cst_55 = arith.constant dense<0.000000e+00> : vector<8xf32>
    %115 = vector.multi_reduction <add>, %114, %cst_55 [1] : vector<8x128xf32> to vector<8xf32>
    %116 = vector.shape_cast %115 : vector<8xf32> to vector<8x1xf32>
    %cst_56 = arith.constant 1.280000e+02 : f32
    %117 = vector.broadcast %cst_56 : f32 to vector<8x1xf32>
    %118 = arith.divf %116, %117 : vector<8x1xf32>
    %119 = vector.broadcast %111 : vector<8x1xf32> to vector<8x128xf32>
    %120 = arith.subf %105, %119 : vector<8x128xf32>
    %cst_57 = arith.constant 9.99999974E-6 : f32
    %121 = vector.broadcast %cst_57 : f32 to vector<8x1xf32>
    %122 = arith.addf %118, %121 : vector<8x1xf32>
    %123 = math.rsqrt %122 : vector<8x1xf32>
    %124 = vector.broadcast %123 : vector<8x1xf32> to vector<8x128xf32>
    %125 = arith.mulf %120, %124 : vector<8x128xf32>
    %126 = vector.broadcast %106 : vector<1x128xf32> to vector<8x128xf32>
    %127 = arith.mulf %125, %126 : vector<8x128xf32>
    %128 = vector.broadcast %107 : vector<1x128xf32> to vector<8x128xf32>
    %129 = arith.addf %127, %128 : vector<8x128xf32>
    %130 = arith.truncf %129 : vector<8x128xf32> to vector<8x128xbf16>
    %c0_58 = arith.constant 0 : index
    %c0_59 = arith.constant 0 : index
    %131 = vector.load %arg11[%c0_58, %c0_59] : memref<128x256xbf16, #tpu.memory_space<vmem>>, vector<128x256xbf16>
    %cst_60 = arith.constant dense<0.000000e+00> : vector<8x256xf32>
    %132 = tpu.matmul %130, %131, %cst_60 {dimension_numbers = #tpu.dot_dimension_numbers<[1], [0], [0], [1], [0, 0, 1, 1], [], []>} : vector<8x128xbf16>, vector<128x256xbf16>, vector<8x256xf32> -> vector<8x256xf32>
    %c0_61 = arith.constant 0 : index
    %c0_62 = arith.constant 0 : index
    %133 = vector.load %arg12[%c0_61, %c0_62] : memref<1x256xf32, #tpu.memory_space<vmem>>, vector<1x256xf32>
    %134 = vector.broadcast %133 : vector<1x256xf32> to vector<8x256xf32>
    %135 = arith.addf %132, %134 : vector<8x256xf32>
    %cst_63 = arith.constant 0.000000e+00 : f32
    %136 = vector.broadcast %cst_63 : f32 to vector<8x256xf32>
    %137 = arith.maximumf %135, %136 : vector<8x256xf32>
    %138 = arith.truncf %137 : vector<8x256xf32> to vector<8x256xbf16>
    %c0_64 = arith.constant 0 : index
    %c0_65 = arith.constant 0 : index
    %139 = vector.load %arg13[%c0_64, %c0_65] : memref<256x128xbf16, #tpu.memory_space<vmem>>, vector<256x128xbf16>
    %cst_66 = arith.constant dense<0.000000e+00> : vector<8x128xf32>
    %140 = tpu.matmul %138, %139, %cst_66 {dimension_numbers = #tpu.dot_dimension_numbers<[1], [0], [0], [1], [0, 0, 1, 1], [], []>} : vector<8x256xbf16>, vector<256x128xbf16>, vector<8x128xf32> -> vector<8x128xf32>
    %c0_67 = arith.constant 0 : index
    %c0_68 = arith.constant 0 : index
    %141 = vector.load %arg14[%c0_67, %c0_68] : memref<1x128xf32, #tpu.memory_space<vmem>>, vector<1x128xf32>
    %142 = vector.broadcast %141 : vector<1x128xf32> to vector<8x128xf32>
    %143 = arith.addf %140, %142 : vector<8x128xf32>
    %144 = arith.addf %129, %143 : vector<8x128xf32>
    %c0_69 = arith.constant 0 : index
    %c0_70 = arith.constant 0 : index
    %145 = vector.load %arg19[%c0_69, %c0_70] : memref<1x128xf32, #tpu.memory_space<vmem>>, vector<1x128xf32>
    %c0_71 = arith.constant 0 : index
    %c0_72 = arith.constant 0 : index
    %146 = vector.load %arg20[%c0_71, %c0_72] : memref<1x128xf32, #tpu.memory_space<vmem>>, vector<1x128xf32>
    %cst_73 = arith.constant dense<0.000000e+00> : vector<8xf32>
    %147 = vector.multi_reduction <add>, %144, %cst_73 [1] : vector<8x128xf32> to vector<8xf32>
    %148 = vector.shape_cast %147 : vector<8xf32> to vector<8x1xf32>
    %cst_74 = arith.constant 1.280000e+02 : f32
    %149 = vector.broadcast %cst_74 : f32 to vector<8x1xf32>
    %150 = arith.divf %148, %149 : vector<8x1xf32>
    %151 = vector.broadcast %150 : vector<8x1xf32> to vector<8x128xf32>
    %152 = arith.subf %144, %151 : vector<8x128xf32>
    %153 = arith.mulf %152, %152 : vector<8x128xf32>
    %cst_75 = arith.constant dense<0.000000e+00> : vector<8xf32>
    %154 = vector.multi_reduction <add>, %153, %cst_75 [1] : vector<8x128xf32> to vector<8xf32>
    %155 = vector.shape_cast %154 : vector<8xf32> to vector<8x1xf32>
    %cst_76 = arith.constant 1.280000e+02 : f32
    %156 = vector.broadcast %cst_76 : f32 to vector<8x1xf32>
    %157 = arith.divf %155, %156 : vector<8x1xf32>
    %158 = vector.broadcast %150 : vector<8x1xf32> to vector<8x128xf32>
    %159 = arith.subf %144, %158 : vector<8x128xf32>
    %cst_77 = arith.constant 9.99999974E-6 : f32
    %160 = vector.broadcast %cst_77 : f32 to vector<8x1xf32>
    %161 = arith.addf %157, %160 : vector<8x1xf32>
    %162 = math.rsqrt %161 : vector<8x1xf32>
    %163 = vector.broadcast %162 : vector<8x1xf32> to vector<8x128xf32>
    %164 = arith.mulf %159, %163 : vector<8x128xf32>
    %165 = vector.broadcast %145 : vector<1x128xf32> to vector<8x128xf32>
    %166 = arith.mulf %164, %165 : vector<8x128xf32>
    %167 = vector.broadcast %146 : vector<1x128xf32> to vector<8x128xf32>
    %168 = arith.addf %166, %167 : vector<8x128xf32>
    %c0_78 = arith.constant 0 : index
    %c0_79 = arith.constant 0 : index
    %c0_80 = arith.constant 0 : index
    %169 = vector.load %arg21[%c0_78, %c0_79, %c0_80] : memref<1x8x128xf32, #tpu.memory_space<vmem>>, vector<1x8x128xf32>
    %170 = vector.shape_cast %169 : vector<1x8x128xf32> to vector<8x128xf32>
    %171 = vector.shape_cast %168 : vector<8x128xf32> to vector<1x8x128xf32>
    tpu.vector_store %arg21[%c0_78, %c0_79, %c0_80], %171 {strides = array<i32>} : memref<1x8x128xf32, #tpu.memory_space<vmem>>, vector<1x8x128xf32>,
    return
  }
  func.func @transform_0(%arg0: i32, %arg1: i32) -> (i32, i32, i32) {
    %c0_i32 = arith.constant 0 : i32
    %c0_i32_0 = arith.constant 0 : i32
    %c0_i32_1 = arith.constant 0 : i32
    return %arg0, %c0_i32, %c0_i32_0 : i32, i32, i32
  }
  func.func @transform_1(%arg0: i32, %arg1: i32) -> (i32, i32, i32) {
    %c0_i32 = arith.constant 0 : i32
    %c0_i32_0 = arith.constant 0 : i32
    %c0_i32_1 = arith.constant 0 : i32
    return %arg0, %c0_i32, %c0_i32_0 : i32, i32, i32
  }
  func.func @transform_2(%arg0: i32, %arg1: i32) -> (i32, i32, i32) {
    %c0_i32 = arith.constant 0 : i32
    %c0_i32_0 = arith.constant 0 : i32
    %c0_i32_1 = arith.constant 0 : i32
    return %arg0, %c0_i32, %c0_i32_0 : i32, i32, i32
  }
  func.func @transform_3(%arg0: i32, %arg1: i32) -> (i32, i32) {
    %c0_i32 = arith.constant 0 : i32
    %c0_i32_0 = arith.constant 0 : i32
    %c0_i32_1 = arith.constant 0 : i32
    return %c0_i32, %c0_i32_0 : i32, i32
  }
  func.func @transform_4(%arg0: i32, %arg1: i32) -> (i32, i32) {
    %c0_i32 = arith.constant 0 : i32
    %c0_i32_0 = arith.constant 0 : i32
    %c0_i32_1 = arith.constant 0 : i32
    return %c0_i32, %c0_i32_0 : i32, i32
  }
  func.func @transform_5(%arg0: i32, %arg1: i32) -> (i32, i32) {
    %c0_i32 = arith.constant 0 : i32
    %c0_i32_0 = arith.constant 0 : i32
    %c0_i32_1 = arith.constant 0 : i32
    return %c0_i32, %c0_i32_0 : i32, i32
  }
  func.func @transform_6(%arg0: i32, %arg1: i32) -> (i32, i32) {
    %c0_i32 = arith.constant 0 : i32
    %c0_i32_0 = arith.constant 0 : i32
    %c0_i32_1 = arith.constant 0 : i32
    return %c0_i32, %c0_i32_0 : i32, i32
  }
  func.func @transform_7(%arg0: i32, %arg1: i32) -> (i32, i32) {
    %c0_i32 = arith.constant 0 : i32
    %c0_i32_0 = arith.constant 0 : i32
    %c0_i32_1 = arith.constant 0 : i32
    return %c0_i32, %c0_i32_0 : i32, i32
  }
  func.func @transform_8(%arg0: i32, %arg1: i32) -> (i32, i32) {
    %c0_i32 = arith.constant 0 : i32
    %c0_i32_0 = arith.constant 0 : i32
    %c0_i32_1 = arith.constant 0 : i32
    return %c0_i32, %c0_i32_0 : i32, i32
  }
  func.func @transform_9(%arg0: i32, %arg1: i32) -> (i32, i32) {
    %c0_i32 = arith.constant 0 : i32
    %c0_i32_0 = arith.constant 0 : i32
    %c0_i32_1 = arith.constant 0 : i32
    return %c0_i32, %c0_i32_0 : i32, i32
  }
  func.func @transform_10(%arg0: i32, %arg1: i32) -> (i32, i32) {
    %c0_i32 = arith.constant 0 : i32
    %c0_i32_0 = arith.constant 0 : i32
    %c0_i32_1 = arith.constant 0 : i32
    return %c0_i32, %c0_i32_0 : i32, i32
  }
  func.func @transform_11(%arg0: i32, %arg1: i32) -> (i32, i32) {
    %c0_i32 = arith.constant 0 : i32
    %c0_i32_0 = arith.constant 0 : i32
    %c0_i32_1 = arith.constant 0 : i32
    return %c0_i32, %c0_i32_0 : i32, i32
  }
  func.func @transform_12(%arg0: i32, %arg1: i32) -> (i32, i32) {
    %c0_i32 = arith.constant 0 : i32
    %c0_i32_0 = arith.constant 0 : i32
    %c0_i32_1 = arith.constant 0 : i32
    return %c0_i32, %c0_i32_0 : i32, i32
  }
  func.func @transform_13(%arg0: i32, %arg1: i32) -> (i32, i32) {
    %c0_i32 = arith.constant 0 : i32
    %c0_i32_0 = arith.constant 0 : i32
    %c0_i32_1 = arith.constant 0 : i32
    return %c0_i32, %c0_i32_0 : i32, i32
  }
  func.func @transform_14(%arg0: i32, %arg1: i32) -> (i32, i32) {
    %c0_i32 = arith.constant 0 : i32
    %c0_i32_0 = arith.constant 0 : i32
    %c0_i32_1 = arith.constant 0 : i32
    return %c0_i32, %c0_i32_0 : i32, i32
  }
  func.func @transform_15(%arg0: i32, %arg1: i32) -> (i32, i32) {
    %c0_i32 = arith.constant 0 : i32
    %c0_i32_0 = arith.constant 0 : i32
    %c0_i32_1 = arith.constant 0 : i32
    return %c0_i32, %c0_i32_0 : i32, i32
  }
  func.func @transform_16(%arg0: i32, %arg1: i32) -> (i32, i32) {
    %c0_i32 = arith.constant 0 : i32
    %c0_i32_0 = arith.constant 0 : i32
    %c0_i32_1 = arith.constant 0 : i32
    return %c0_i32, %c0_i32_0 : i32, i32
  }
  func.func @transform_17(%arg0: i32, %arg1: i32) -> (i32, i32) {
    %c0_i32 = arith.constant 0 : i32
    %c0_i32_0 = arith.constant 0 : i32
    %c0_i32_1 = arith.constant 0 : i32
    return %c0_i32, %c0_i32_0 : i32, i32
  }
  func.func @transform_18(%arg0: i32, %arg1: i32) -> (i32, i32) {
    %c0_i32 = arith.constant 0 : i32
    %c0_i32_0 = arith.constant 0 : i32
    %c0_i32_1 = arith.constant 0 : i32
    return %c0_i32, %c0_i32_0 : i32, i32
  }
  func.func @transform_19(%arg0: i32, %arg1: i32) -> (i32, i32, i32) {
    %c0_i32 = arith.constant 0 : i32
    %c0_i32_0 = arith.constant 0 : i32
    return %arg0, %arg1, %c0_i32 : i32, i32, i32
  }
}

</mosaic_0001>

<bundles_post_ra>
// kernel: tpu_custom_call.1
= control target key start
LH: loop header
LB: loop body
LE: loop exit
PB: predicated region body
PF: predicated region fallthrough
CT: control target
= control target key end

     0   :  { %6 = vsyncpa [#allocation3], 0  ;;  %s341_s0 = inlined_call_operand.hbm [shape: f32[8,128], index: 0, kind: input, shape index: {}]   ;;  %s342_s1 = inlined_call_operand.hbm [shape: f32[8,128], index: 1, kind: output, shape index: {}]  }
   0x1   :  { %7 = vsyncpa [#allocation4], 0  ;;  %s262_s6 = smov 0  }
   0x2 LB: > { %s145_s7 = sadd.s32 4294967295, %s248_s6   ;;  %p146_p0 = scmp.ge.s32.totalorder %s248_s6, 1  ;;  %s248_s6 = sphi %s262_s6, %s13_s6  }
   0x3   : > { %p60_p1 = scmp.lt.s32.totalorder %s248_s6, 3  ;;  %p276_p3 = scmp.eq.s32.totalorder %s145_s7, 0 }
   0x4   : > { %s250_s10 = smov [#allocation2]   ;;  %s180_s15 = scalar_lea.hbm %s341_s0, 128 }
   0x5   : > { %p270_p2 = pnand %p146_p0, %p60_p1  ;;  %s73_s11 = sshll.u32 %s250_s10, 4  ;;  %s74_s11 = int_to_ptr.vmem [resolvable:$true] %s73_s11 }
   0x6   : > { %s347_s9 = scalar_select %p276_p3, 1, 0 }
   0x7   : > { %s346_s8 = scalar_select %p270_p2, 1, 0 }
   0x8   : > { %p162_p4 = pneg %p270_p2  ;;  %p181_p6 = scmp.ne.s32.totalorder %s341_s0, %s180_s15 }
   0x9   : > { %p187_p10 = scmp.lt.u32.totalorder %s180_s15, %s341_s0 }
   0xa   : > { %p284_p5 = pnand %p276_p3, %p162_p4 }
   0xc   : > { %p182_p7 = pneg %p284_p5 }
   0xe   : > { %p183_p8 = pnand %p182_p7, %p181_p6 }
  0x10   : > { %p184_p9 = pneg %p183_p8 }
  0x12   : > { %p189_p11 = pnand %p187_p10, %p184_p9 }
  0x14   : > { %192 = shalt.err (!%p189_p11)
}
  0x15   : > { %s193_s20 = scalar_lea.vmem %s74_s11, 128  ;;  %p201_p1 = scmp.lt.s32.totalorder %s74_s11, %s74_s11 }
  0x16   : > { %p194_p12 = scmp.ne.s32.totalorder %s74_s11, %s193_s20  ;;  %p202_p4 = scmp.lt.s32.totalorder %s193_s20, %s193_s20 }
  0x18   : > { %p196_p13 = pnand %p194_p12, %p182_p7  ;;  %p203_p3 = por %p202_p4, %p201_p1 }
  0x1a   : > { %p197_p0 = pneg %p196_p13 }
  0x1c   : > { %p204_p2 = pnand %p203_p3, %p197_p0 }
  0x1e   : > { %207 = shalt.err (!%p204_p2)
}
  0x1f   : > { %165 = dma.hbm_to_vmem [thread:$0]  (!%p284_p5), %s341_s0, 128, %s74_s11, [#allocation3]  }
  0x20   : > { %p349_p6 = scmp.ne.s32.totalorder %s346_s8, 0 }
  0x21   : > { %p350_p8 = scmp.ne.s32.totalorder (!%p349_p6), %s347_s9, 0 }
  0x22   : > { %86 = sbr.rel (%p349_p6) target bundleno = 67 (0x43), region = 24 }
  0x29   : > { %239 = dma.done.wait (%p350_p8), [#allocation3], 128  }
  0x2a   : > { %241 = vsyncadd (%p350_p8), [#allocation3], 4294967168  ;;  %s251_s23 = smov [#allocation5]   ;;  %v96_v0 = vld [vmem:[#allocation2] sm:$0xff]  ;;  %p312_p2 = scmp.eq.s32.totalorder %s145_s7, 1 }
  0x2b   : > { %s106_s24 = sshll.u32 %s251_s23, 4  ;;  %v97_v1 = vmul.f32 2.0, %v96_v0  ;;  %s107_s24 = int_to_ptr.vmem [resolvable:$true] %s106_s24 }
  0x2c   : > { %s208_s26 = scalar_lea.vmem %s107_s24, 128  ;;  %p215_p9 = scmp.lt.s32.totalorder %s107_s24, %s107_s24 }
  0x2d   : > { %98 = vst [vmem:[#allocation5] sm:$0xff] %v97_v1  ;;  %p209_p3 = scmp.ne.s32.totalorder %s107_s24, %s208_s26  ;;  %p216_p10 = scmp.lt.s32.totalorder %s208_s26, %s208_s26 }
  0x2f   : > { %p210_p5 = pnand %p209_p3, %p312_p2  ;;  %p217_p11 = por %p216_p10, %p215_p9 }
  0x31   : > { %p211_p7 = pneg %p210_p5 }
  0x33   : > { %p218_p12 = pnand %p217_p11, %p211_p7 }
  0x35   : > { %221 = shalt.err (!%p218_p12)
}
  0x36   : > { %s222_s29 = scalar_lea.hbm %s342_s1, 128 }
  0x37   : > { %p223_p13 = scmp.ne.s32.totalorder %s342_s1, %s222_s29  ;;  %p228_p4 = scmp.lt.u32.totalorder %s222_s29, %s342_s1 }
  0x39   : > { %p224_p0 = pnand %p223_p13, %p312_p2 }
  0x3b   : > { %p225_p1 = pneg %p224_p0 }
  0x3d   : > { %p230_p6 = pnand %p228_p4, %p225_p1 }
  0x3f   : > { %233 = shalt.err (!%p230_p6)
}
  0x40   : > { %159 = dma.vmem_to_hbm [thread:$0]  (%p312_p2), %s107_s24, 128, %s342_s1, [#allocation4]  }
  0x41   : > { %243 = dma.done.wait (%p312_p2), [#allocation4], 128  }
  0x42   : > { %245 = vsyncadd (%p312_p2), [#allocation4], 4294967168 }
  0x43 PF: > { %s13_s6 = sadd.s32 1, %s248_s6  }
  0x44   : > { %p10_p8 = scmp.ge.s32.totalorder %s13_s6, 4  }
  0x46   :  { %12 = sbr.rel (!%p10_p8) target bundleno = 2 (0x2), region = 53 }
  0x4d   :  { %119 = vsyncpa [#allocation3], 1 }
  0x4e   :  { %121 = vsyncpa [#allocation3 + $0x1], 1 }
  0x4f   :  { %122 = vsyncpa [#allocation4], 1 }
  0x50   :  { %124 = vsyncpa [#allocation4 + $0x1], 1 }

// kernel: transformer_decoder_forward.5
= control target key start
LH: loop header
LB: loop body
LE: loop exit
PB: predicated region body
PF: predicated region fallthrough
CT: control target
= control target key end

     0   :  { %v213_v1 = vmov 0.0   ;;  %vm214_vm0 = vmmov 0   ;;  %s275_s0 = inlined_call_operand.vmem [shape: f32[16,128], index: 0, kind: input, shape index: {}]   ;;  %s276_s1 = inlined_call_operand.vmem [shape: bf16[128,128], index: 1, kind: input, shape index: {}]   ;;  %s277_s2 = inlined_call_operand.hbm [shape: f32[16,128], index: 2, kind: output, shape index: {}]  }
   0x1   :  { %v181_v0 = vld [vmem:[%s276_s1] sm:$0xff]   ;;  %156 = vmatprep.subr.bf16.mxu0 %v213_v1  ;;  %172 = vmatprep.mubr.msk.bf16.mxu0 %vm214_vm0, %v213_v1  ;;  %v182_v2 = vld [vmem:[%s276_s1 + $0x8] sm:$0xff]  }
   0x2   :  { %157 = vmatpush3.bf16.xpose.msra.mxu0 %v181_v0 }
   0x3   :  { %158 = vmatprep.subr.bf16.mxu0 %v213_v1 }
   0x4   :  { %7 = vsyncpa [#allocation3], 0  ;;  %v183_v3 = vld [vmem:[%s276_s1 + $0x10] sm:$0xff]   ;;  %v184_v4 = vld [vmem:[%s276_s1 + $0x18] sm:$0xff]   ;;  %s215_s29 = smov [#allocation2]  }
   0x5   :  { %v185_v5 = vld [vmem:[%s276_s1 + $0x20] sm:$0xff]   ;;  %v186_v6 = vld [vmem:[%s276_s1 + $0x28] sm:$0xff]   ;;  %v187_v7 = vld [vmem:[%s276_s1 + $0x30] sm:$0xff]   ;;  %s128_s30 = sshll.u32 %s215_s29, 4  ;;  %s129_s30 = int_to_ptr.vmem [resolvable:$true] %s128_s30 }
   0x6   :  { %v188_v8 = vld [vmem:[%s276_s1 + $0x38] sm:$0xff]   ;;  %v13_v9 = vld [vmem:[%s275_s0] sm:$0xff]  ;;  %v14_v10 = vld [vmem:[%s275_s0 + $0x8] sm:$0xff]  ;;  %s189_s1 = scalar_lea.vmem %s129_s30, 256  ;;  %p194_p1 = scmp.lt.s32.totalorder %s129_s30, %s129_s30 }
   0x7   :  { %v15_v11 = vpack.c.bf16 %v14_v10, %v13_v9  ;;  %p190_p0 = scmp.ne.s32.totalorder %s129_s30, %s189_s1  ;;  %p195_p2 = scmp.lt.s32.totalorder %s189_s1, %s189_s1 }
   0x9   :  { %p196_p3 = por %p195_p2, %p194_p1 }
   0xa   :  { %159 = vmatpush3.bf16.xpose.msra.mxu0 %v182_v2 }
   0xb   :  { %160 = vmatprep.subr.bf16.mxu0 %v213_v1  ;;  %p197_p4 = pnand %p196_p3, %p190_p0 }
  0x12   :  { %161 = vmatpush3.bf16.xpose.msra.mxu0 %v183_v3 }
  0x13   :  { %162 = vmatprep.subr.bf16.mxu0 %v213_v1 }
  0x1a   :  { %163 = vmatpush3.bf16.xpose.msra.mxu0 %v184_v4 }
  0x1b   :  { %164 = vmatprep.subr.bf16.mxu0 %v213_v1 }
  0x22   :  { %165 = vmatpush3.bf16.xpose.msra.mxu0 %v185_v5 }
  0x23   :  { %166 = vmatprep.subr.bf16.mxu0 %v213_v1 }
  0x2a   :  { %167 = vmatpush3.bf16.xpose.msra.mxu0 %v186_v6 }
  0x2b   :  { %168 = vmatprep.subr.bf16.mxu0 %v213_v1 }
  0x32   :  { %169 = vmatpush3.bf16.xpose.msra.mxu0 %v187_v7 }
  0x33   :  { %170 = vmatprep.subr.bf16.mxu0 %v213_v1 }
  0x3a   :  { %171 = vmatpush3.bf16.xpose.msra.mxu0 %v188_v8 }
  0x41   :  { %173 = vmatmul.mubr.bf16.vlgmr.msra.gmra.mrb[0].mxu0 %v15_v11 }
 0x114   :  { %v114_v12 = vpop.f32.mrb[0].mxu0 }
 0x115   :  { %121 = vst [vmem:[#allocation2] sm:$0xff] %v114_v12  ;;  %v174_v13 = vpop.f32.mrb[1].mxu0 }
 0x116   :  { %v117_v14 = vpop.f32.mrb[2].mxu0 }
 0x117   :  { %122 = vst [vmem:[#allocation2 + $0x8] sm:$0xff] %v117_v14  ;;  %v175_v15 = vpop.f32.mrb[3].mxu0 }
 0x118   :  { %200 = shalt.err (!%p197_p4)
}
 0x119   :  { %s201_s4 = scalar_lea.hbm %s277_s2, 256 }
 0x11a   :  { %p202_p5 = scmp.ne.s32.totalorder %s277_s2, %s201_s4  ;;  %p205_p6 = scmp.lt.u32.totalorder %s201_s4, %s277_s2 }
 0x11c   :  { %p207_p7 = pnand %p205_p6, %p202_p5 }
 0x11e   :  { %210 = shalt.err (!%p207_p7)
}
 0x11f   :  { %s216_s9 = smov 128   ;;  %s217_s10 = smov 8  }
 0x120   :  { %134 = dma.vmem_to_hbm [thread:$0]  %s129_s30, 256, %s277_s2, [#allocation3], %s216_s9, %s216_s9, %s217_s10  }
 0x121   :  { %211 = dma.done.wait [#allocation3], 256  }
 0x122   :  { %212 = vsyncadd [#allocation3], 4294967040 }
 0x123   :  { %138 = vsyncpa [#allocation3], 1 }

// kernel: transformer_decoder_forward.3
= control target key start
LH: loop header
LB: loop body
LE: loop exit
PB: predicated region body
PF: predicated region fallthrough
CT: control target
= control target key end

     0   :  { %s6706_s0 = inlined_call_operand.vmem [shape: f32[2,8,128], index: 0, kind: input, shape index: {}]   ;;  %s6707_s1 = inlined_call_operand.vmem [shape: f32[2,16,128], index: 1, kind: input, shape index: {}]   ;;  %s6708_s2 = inlined_call_operand.vmem [shape: f32[2,1,16], index: 2, kind: input, shape index: {}]   ;;  %s6709_s3 = inlined_call_operand.hbm [shape: bf16[128,128], index: 3, kind: input, shape index: {}]   ;;  %s6710_s4 = inlined_call_operand.vmem [shape: bf16[128,256], index: 4, kind: input, shape index: {}]   ;;  %s6711_s5 = inlined_call_operand.hbm [shape: bf16[128,128], index: 5, kind: input, shape index: {}]   ;;  %s6712_s6 = inlined_call_operand.hbm [shape: bf16[128,128], index: 6, kind: input, shape index: {}]   ;;  %s6713_s7 = inlined_call_operand.vmem [shape: bf16[128,256], index: 7, kind: input, shape index: {}]   ;;  %s6714_s8 = inlined_call_operand.hbm [shape: bf16[128,128], index: 8, kind: input, shape index: {}]   ;;  %s6715_s9 = inlined_call_operand.hbm [shape: bf16[128,256], index: 9, kind: input, shape index: {}]   ;;  %s6716_s10 = inlined_call_operand.vmem [shape: f32[1,256], index: 10, kind: input, shape index: {}]   ;;  %s6717_s11 = inlined_call_operand.hbm [shape: bf16[256,128], index: 11, kind: input, shape index: {}]   ;;  %s6718_s12 = inlined_call_operand.vmem [shape: f32[1,128], index: 12, kind: input, shape index: {}]   ;;  %s6719_s13 = inlined_call_operand.hbm [shape: f32[1,128], index: 13, kind: input, shape index: {}]   ;;  %s6720_s14 = inlined_call_operand.hbm [shape: f32[1,128], index: 14, kind: input, shape index: {}]   ;;  %s6721_s15 = inlined_call_operand.hbm [shape: f32[1,128], index: 15, kind: input, shape index: {}]   ;;  %s6722_s16 = inlined_call_operand.hbm [shape: f32[1,128], index: 16, kind: input, shape index: {}]   ;;  %s6723_s17 = inlined_call_operand.hbm [shape: f32[1,128], index: 17, kind: input, shape index: {}]   ;;  %s6724_s18 = inlined_call_operand.hbm [shape: f32[1,128], index: 18, kind: input, shape index: {}]   ;;  %s6725_s19 = inlined_call_operand.vmem [shape: f32[2,8,128], index: 19, kind: output, shape index: {}]  }
   0x1   :  { %6734 = sst [smem:[#allocation34_spill]] %s6706_s0 }
   0x2   :  { %6735 = sst [smem:[#allocation35_spill]] %s6707_s1 }
   0x3   :  { %6736 = sst [smem:[#allocation36_spill]] %s6708_s2 }
   0x4   :  { %6737 = sst [smem:[#allocation37_spill]] %s6709_s3 }
   0x5   :  { %6738 = sst [smem:[#allocation38_spill]] %s6710_s4 }
   0x6   :  { %6739 = sst [smem:[#allocation39_spill]] %s6711_s5 }
   0x7   :  { %6740 = sst [smem:[#allocation40_spill]] %s6712_s6 }
   0x8   :  { %6741 = sst [smem:[#allocation41_spill]] %s6713_s7 }
   0x9   :  { %6742 = sst [smem:[#allocation42_spill]] %s6714_s8 }
   0xa   :  { %6743 = sst [smem:[#allocation43_spill]] %s6716_s10 }
   0xb   :  { %6744 = sst [smem:[#allocation44_spill]] %s6718_s12 }
   0xc   :  { %6745 = sst [smem:[#allocation45_spill]] %s6725_s19 }
   0xd   :  { %24 = vsyncpa [#allocation7], 0 }
   0xe   :  { %25 = vsyncpa [#allocation9], 0 }
   0xf   :  { %26 = vsyncpa [#allocation12], 0 }
  0x10   :  { %27 = vsyncpa [#allocation15], 0 }
  0x11   :  { %28 = vsyncpa [#allocation18], 0 }
  0x12   :  { %29 = vsyncpa [#allocation21], 0 }
  0x13   :  { %30 = vsyncpa [#allocation24], 0  ;;  %s5793_s0 = smov 0   ;;  %s5795_s30 = smov 0  }
  0x14   :  { %s5797_s20 = smov 0  }
  0x15 LB: > { %6746 = sst [smem:[#allocation32_spill]] %s5658_s0  ;;  %s4522_s21 = sadd.s32 4294967295, %s5666_s20   ;;  %s5666_s20 = sphi %s5797_s20, %s36_s20   ;;  %s5662_s30 = sphi %s5795_s30, %s6769_s30   ;;  %s5658_s0 = sphi %s5793_s0, %s6768_s0  }
  0x16   : > { %6747 = sst [smem:[#allocation33_spill]] %s5666_s20  ;;  %p4524_p0 = scmp.ge.s32.totalorder %s5666_s20, 1 }
  0x17   : > { %p495_p1 = scmp.lt.s32.totalorder %s5666_s20, 3  ;;  %p5811_p2 = scmp.eq.s32.totalorder %s4522_s21, 0 }
  0x18   : > { %s5668_s2 = smov [#allocation8]   ;;  %s5669_s24 = smov [#allocation11]  }
  0x19   : > { %s6748_s1 = scalar_select %p5811_p2, 1, 0 }
  0x1a   : > { %p5815_p3 = pnand %p4524_p0, %p495_p1  ;;  %s523_s23 = sshll.u32 %s5668_s2, 4  ;;  %s5819_s23 = int_to_ptr.vmem [resolvable:$true] %s523_s23 }
  0x1b   : > { %s552_s25 = sshll.u32 %s5669_s24, 4  ;;  %s5670_s26 = smov [#allocation14]   ;;  %s5823_s25 = int_to_ptr.vmem [resolvable:$true] %s552_s25 }
  0x1c   : > { %s6749_s22 = scalar_select %p5815_p3, 1, 0 }
  0x1d   : > { %p5012_p4 = pneg %p5815_p3  ;;  %s581_s27 = sshll.u32 %s5670_s26, 4  ;;  %s5831_s27 = int_to_ptr.vmem [resolvable:$true] %s581_s27 }
  0x1e   : > { %s5671_s28 = smov [#allocation17]   ;;  %s6751_s5 = sld [smem:[#allocation39_spill]] }
  0x1f   : > { %p5827_p5 = pnand %p5811_p2, %p5012_p4  ;;  %s5833_s29 = sshll.u32 %s5671_s28, 4  ;;  %s610_s29 = int_to_ptr.vmem [resolvable:$true] %s5833_s29 }
  0x21   : > { %p5843_p7 = pneg %p5827_p5 }
  0x24   : > { %s5280_s20 = scalar_lea.hbm %s6751_s5, 1024 }
  0x25   : > { %p5281_p6 = scmp.ne.s32.totalorder %s6751_s5, %s5280_s20  ;;  %p5287_p10 = scmp.lt.u32.totalorder %s5280_s20, %s6751_s5 }
  0x27   : > { %p5283_p8 = pnand %p5843_p7, %p5281_p6 }
  0x29   : > { %p5284_p9 = pneg %p5283_p8 }
  0x2b   : > { %p5289_p11 = pnand %p5287_p10, %p5284_p9 }
  0x2d   : > { %5292 = shalt.err (!%p5289_p11)
}
  0x2e   : > { %s5293_s19 = scalar_lea.vmem %s5819_s23, 1024  ;;  %p5301_p1 = scmp.lt.s32.totalorder %s5819_s23, %s5819_s23 }
  0x2f   : > { %p5294_p12 = scmp.ne.s32.totalorder %s5819_s23, %s5293_s19  ;;  %p5302_p4 = scmp.lt.s32.totalorder %s5293_s19, %s5293_s19 }
  0x31   : > { %p5296_p13 = pnand %p5294_p12, %p5843_p7  ;;  %p5303_p6 = por %p5302_p4, %p5301_p1 }
  0x33   : > { %p5297_p0 = pneg %p5296_p13 }
  0x35   : > { %p5304_p8 = pnand %p5303_p6, %p5297_p0 }
  0x37   : > { %5307 = shalt.err (!%p5304_p8)
}
  0x38   : > { %s5672_s21 = smov 64   ;;  %s5673_s20 = smov 4  }
  0x39   : > { %5018 = dma.hbm_to_vmem [thread:$0]  (!%p5827_p5), %s6751_s5, 1024, %s5819_s23, [#allocation9], %s5672_s21, %s5672_s21, %s5673_s20  }
  0x3a   : > { %s6753_s8 = sld [smem:[#allocation42_spill]] }
  0x40   : > { %s5308_s19 = scalar_lea.hbm %s6753_s8, 1024 }
  0x41   : > { %p5309_p9 = scmp.ne.s32.totalorder %s6753_s8, %s5308_s19  ;;  %p5315_p12 = scmp.lt.u32.totalorder %s5308_s19, %s6753_s8 }
  0x43   : > { %p5311_p10 = pnand %p5309_p9, %p5843_p7 }
  0x45   : > { %p5312_p11 = pneg %p5311_p10 }
  0x47   : > { %p5317_p13 = pnand %p5315_p12, %p5312_p11 }
  0x49   : > { %5320 = shalt.err (!%p5317_p13)
}
  0x4a   : > { %s5321_s23 = scalar_lea.vmem %s5823_s25, 1024  ;;  %p5329_p6 = scmp.lt.s32.totalorder %s5823_s25, %s5823_s25 }
  0x4b   : > { %p5322_p0 = scmp.ne.s32.totalorder %s5823_s25, %s5321_s23  ;;  %p5330_p8 = scmp.lt.s32.totalorder %s5321_s23, %s5321_s23 }
  0x4d   : > { %p5324_p1 = pnand %p5322_p0, %p5843_p7  ;;  %p5331_p9 = por %p5330_p8, %p5329_p6 }
  0x4f   : > { %p5325_p4 = pneg %p5324_p1 }
  0x51   : > { %p5332_p10 = pnand %p5331_p9, %p5325_p4 }
  0x53   : > { %5335 = shalt.err (!%p5332_p10)
}
  0x54   : > { %5024 = dma.hbm_to_vmem [thread:$0]  (!%p5827_p5), %s6753_s8, 1024, %s5823_s25, [#allocation12], %s5672_s21, %s5672_s21, %s5673_s20  }
  0x55   : > { %s5336_s2 = scalar_lea.hbm %s6717_s11, 2048 }
  0x56   : > { %p5337_p11 = scmp.ne.s32.totalorder %s6717_s11, %s5336_s2  ;;  %p5343_p0 = scmp.lt.u32.totalorder %s5336_s2, %s6717_s11 }
  0x58   : > { %p5339_p12 = pnand %p5337_p11, %p5843_p7 }
  0x5a   : > { %p5340_p13 = pneg %p5339_p12 }
  0x5c   : > { %p5345_p1 = pnand %p5343_p0, %p5340_p13 }
  0x5e   : > { %5348 = shalt.err (!%p5345_p1)
}
  0x5f   : > { %s5349_s25 = scalar_lea.vmem %s5831_s27, 2048  ;;  %p5357_p9 = scmp.lt.s32.totalorder %s5831_s27, %s5831_s27 }
  0x60   : > { %p5350_p4 = scmp.ne.s32.totalorder %s5831_s27, %s5349_s25  ;;  %p5358_p10 = scmp.lt.s32.totalorder %s5349_s25, %s5349_s25 }
  0x62   : > { %p5352_p6 = pnand %p5350_p4, %p5843_p7  ;;  %p5359_p11 = por %p5358_p10, %p5357_p9 }
  0x64   : > { %p5353_p8 = pneg %p5352_p6 }
  0x66   : > { %p5360_p12 = pnand %p5359_p11, %p5353_p8 }
  0x68   : > { %5363 = shalt.err (!%p5360_p12)
}
  0x69   : > { %5030 = dma.hbm_to_vmem [thread:$0]  (!%p5827_p5), %s6717_s11, 2048, %s5831_s27, [#allocation15], %s5672_s21, %s5672_s21, %s5673_s20  }
  0x6a   : > { %s5364_s0 = scalar_lea.hbm %s6720_s14, 16 }
  0x6b   : > { %p5365_p13 = scmp.ne.s32.totalorder %s6720_s14, %s5364_s0  ;;  %p5371_p4 = scmp.lt.u32.totalorder %s5364_s0, %s6720_s14 }
  0x6d   : > { %p5367_p0 = pnand %p5365_p13, %p5843_p7 }
  0x6f   : > { %p5368_p1 = pneg %p5367_p0 }
  0x71   : > { %p5373_p6 = pnand %p5371_p4, %p5368_p1 }
  0x73   : > { %5376 = shalt.err (!%p5373_p6)
}
  0x74   : > { %s5377_s19 = scalar_lea.vmem %s610_s29, 16  ;;  %s5384_s27 = scalar_lea.vmem %s610_s29, 32 }
  0x75   : > { %p5378_p8 = scmp.ne.s32.totalorder %s610_s29, %s5377_s19  ;;  %p5385_p11 = scmp.lt.s32.totalorder %s610_s29, %s610_s29 }
  0x76   : > { %p5386_p12 = scmp.lt.s32.totalorder %s5384_s27, %s5377_s19 }
  0x77   : > { %p5380_p9 = pnand %p5378_p8, %p5843_p7 }
  0x78   : > { %p5387_p2 = por %p5386_p12, %p5385_p11 }
  0x79   : > { %p5381_p10 = pneg %p5380_p9 }
  0x7b   : > { %p5388_p3 = pnand %p5387_p2, %p5381_p10 }
  0x7d   : > { %5391 = shalt.err (!%p5388_p3)
}
  0x7e   : > { %5036 = dma.hbm_to_vmem [thread:$0]  (!%p5827_p5), %s6720_s14, 16, %s610_s29, [#allocation18]  }
  0x7f   : > { %s5674_s4 = smov [#allocation20]   ;;  %s5392_s2 = scalar_lea.hbm %s6722_s16, 16 }
  0x80   : > { %s631_s7 = sshll.u32 %s5674_s4, 4  ;;  %p5393_p13 = scmp.ne.s32.totalorder %s6722_s16, %s5392_s2  ;;  %s632_s7 = int_to_ptr.vmem [resolvable:$true] %s631_s7 }
  0x81   : > { %p5399_p0 = scmp.lt.u32.totalorder %s5392_s2, %s6722_s16 }
  0x82   : > { %p5395_p2 = pnand %p5393_p13, %p5843_p7 }
  0x84   : > { %p5396_p3 = pneg %p5395_p2 }
  0x86   : > { %p5401_p1 = pnand %p5399_p0, %p5396_p3 }
  0x88   : > { %5404 = shalt.err (!%p5401_p1)
}
  0x89   : > { %s5405_s29 = scalar_lea.vmem %s632_s7, 16  ;;  %s5412_s27 = scalar_lea.vmem %s632_s7, 32 }
  0x8a   : > { %p5406_p4 = scmp.ne.s32.totalorder %s632_s7, %s5405_s29  ;;  %p5413_p9 = scmp.lt.s32.totalorder %s632_s7, %s632_s7 }
  0x8b   : > { %p5414_p10 = scmp.lt.s32.totalorder %s5412_s27, %s5405_s29 }
  0x8c   : > { %p5408_p6 = pnand %p5406_p4, %p5843_p7 }
  0x8d   : > { %p5415_p11 = por %p5414_p10, %p5413_p9 }
  0x8e   : > { %p5409_p8 = pneg %p5408_p6 }
  0x90   : > { %p5416_p12 = pnand %p5415_p11, %p5409_p8 }
  0x92   : > { %5419 = shalt.err (!%p5416_p12)
}
  0x93   : > { %5042 = dma.hbm_to_vmem [thread:$0]  (!%p5827_p5), %s6722_s16, 16, %s632_s7, [#allocation21]  }
  0x94   : > { %s48_s4 = sadd.s32 1, %s5662_s30  ;;  %s5675_s10 = smov [#allocation6]  }
  0x95   : > { %p50_p13 = scmp.ge.s32.totalorder %s48_s4, 2  ;;  %s507_s0 = sshll.u32 %s5675_s10, 4  ;;  %s508_s0 = int_to_ptr.vmem [resolvable:$true] %s507_s0 }
  0x96   : > { %s6754_s26 = sld [smem:[#allocation37_spill]] }
  0x97   : > { %s6771_s4 = smov (%p50_p13, %s48_s4), 0 }
  0x9c   : > { %s5420_s28 = scalar_lea.hbm %s6754_s26, 1024 }
  0x9d   : > { %p5421_p2 = scmp.ne.s32.totalorder %s6754_s26, %s5420_s28  ;;  %p5427_p1 = scmp.lt.u32.totalorder %s5420_s28, %s6754_s26 }
  0x9f   : > { %p5423_p3 = pnand %p5421_p2, %p5843_p7 }
  0xa1   : > { %p5424_p0 = pneg %p5423_p3 }
  0xa3   : > { %p5429_p4 = pnand %p5427_p1, %p5424_p0 }
  0xa5   : > { %5432 = shalt.err (!%p5429_p4)
}
  0xa6   : > { %s5433_s25 = scalar_lea.vmem %s508_s0, 1024  ;;  %p5441_p10 = scmp.lt.s32.totalorder %s508_s0, %s508_s0 }
  0xa7   : > { %p5434_p6 = scmp.ne.s32.totalorder %s508_s0, %s5433_s25  ;;  %p5442_p11 = scmp.lt.s32.totalorder %s5433_s25, %s5433_s25 }
  0xa9   : > { %p5436_p8 = pnand %p5434_p6, %p5843_p7  ;;  %p5443_p12 = por %p5442_p11, %p5441_p10 }
  0xab   : > { %p5437_p9 = pneg %p5436_p8 }
  0xad   : > { %p5444_p13 = pnand %p5443_p12, %p5437_p9 }
  0xaf   : > { %5447 = shalt.err (!%p5444_p13)
}
  0xb0   : > { %5015 = dma.hbm_to_vmem [thread:$0]  (!%p5827_p5), %s6754_s26, 1024, %s508_s0, [#allocation7], %s5672_s21, %s5672_s21, %s5673_s20  }
  0xb1   : > { %s5676_s2 = smov [#allocation10]   ;;  %s5677_s28 = smov [#allocation13]  }
  0xb2   : > { %s536_s24 = sshll.u32 %s5676_s2, 4  ;;  %s565_s19 = sshll.u32 %s5677_s28, 4  ;;  %s537_s24 = int_to_ptr.vmem [resolvable:$true] %s536_s24  ;;  %s566_s19 = int_to_ptr.vmem [resolvable:$true] %s565_s19 }
  0xb3   : > { %s6755_s6 = sld [smem:[#allocation40_spill]] }
  0xb9   : > { %s5448_s7 = scalar_lea.hbm %s6755_s6, 1024 }
  0xba   : > { %p5449_p2 = scmp.ne.s32.totalorder %s6755_s6, %s5448_s7  ;;  %p5455_p1 = scmp.lt.u32.totalorder %s5448_s7, %s6755_s6 }
  0xbc   : > { %p5451_p3 = pnand %p5449_p2, %p5843_p7 }
  0xbe   : > { %p5452_p0 = pneg %p5451_p3 }
  0xc0   : > { %p5457_p4 = pnand %p5455_p1, %p5452_p0 }
  0xc2   : > { %5460 = shalt.err (!%p5457_p4)
}
  0xc3   : > { %s5461_s0 = scalar_lea.vmem %s537_s24, 1024  ;;  %p5469_p10 = scmp.lt.s32.totalorder %s537_s24, %s537_s24 }
  0xc4   : > { %p5462_p6 = scmp.ne.s32.totalorder %s537_s24, %s5461_s0  ;;  %p5470_p11 = scmp.lt.s32.totalorder %s5461_s0, %s5461_s0 }
  0xc6   : > { %p5464_p8 = pnand %p5462_p6, %p5843_p7  ;;  %p5471_p12 = por %p5470_p11, %p5469_p10 }
  0xc8   : > { %p5465_p9 = pneg %p5464_p8 }
  0xca   : > { %p5472_p13 = pnand %p5471_p12, %p5465_p9 }
  0xcc   : > { %5475 = shalt.err (!%p5472_p13)
}
  0xcd   : > { %5021 = dma.hbm_to_vmem [thread:$0]  (!%p5827_p5), %s6755_s6, 1024, %s537_s24, [#allocation9], %s5672_s21, %s5672_s21, %s5673_s20  }
  0xce   : > { %s5476_s28 = scalar_lea.hbm %s6715_s9, 2048 }
  0xcf   : > { %p5477_p2 = scmp.ne.s32.totalorder %s6715_s9, %s5476_s28  ;;  %p5483_p1 = scmp.lt.u32.totalorder %s5476_s28, %s6715_s9 }
  0xd1   : > { %p5479_p3 = pnand %p5477_p2, %p5843_p7 }
  0xd3   : > { %p5480_p0 = pneg %p5479_p3 }
  0xd5   : > { %p5485_p4 = pnand %p5483_p1, %p5480_p0 }
  0xd7   : > { %5488 = shalt.err (!%p5485_p4)
}
  0xd8   : > { %s5489_s23 = scalar_lea.vmem %s566_s19, 2048  ;;  %p5497_p10 = scmp.lt.s32.totalorder %s566_s19, %s566_s19 }
  0xd9   : > { %p5490_p6 = scmp.ne.s32.totalorder %s566_s19, %s5489_s23  ;;  %p5498_p11 = scmp.lt.s32.totalorder %s5489_s23, %s5489_s23 }
  0xdb   : > { %p5492_p8 = pnand %p5490_p6, %p5843_p7  ;;  %p5499_p12 = por %p5498_p11, %p5497_p10 }
  0xdd   : > { %p5493_p9 = pneg %p5492_p8 }
  0xdf   : > { %p5500_p13 = pnand %p5499_p12, %p5493_p9 }
  0xe1   : > { %5503 = shalt.err (!%p5500_p13)
}
  0xe2   : > { %s5678_s21 = smov 128   ;;  %s5679_s20 = smov 8  }
  0xe3   : > { %5027 = dma.hbm_to_vmem [thread:$0]  (!%p5827_p5), %s6715_s9, 2048, %s566_s19, [#allocation12], %s5678_s21, %s5678_s21, %s5679_s20  }
  0xe4   : > { %s5680_s5 = smov [#allocation16]   ;;  %s5681_s10 = smov [#allocation19]  }
  0xe5   : > { %s598_s8 = sshll.u32 %s5680_s5, 4  ;;  %s620_s2 = sshll.u32 %s5681_s10, 4  ;;  %s599_s8 = int_to_ptr.vmem [resolvable:$true] %s598_s8  ;;  %s621_s2 = int_to_ptr.vmem [resolvable:$true] %s620_s2 }
  0xe6   : > { %s5504_s27 = scalar_lea.hbm %s6719_s13, 16 }
  0xe7   : > { %p5505_p2 = scmp.ne.s32.totalorder %s6719_s13, %s5504_s27  ;;  %p5511_p1 = scmp.lt.u32.totalorder %s5504_s27, %s6719_s13 }
  0xe9   : > { %p5507_p3 = pnand %p5505_p2, %p5843_p7 }
  0xeb   : > { %p5508_p0 = pneg %p5507_p3 }
  0xed   : > { %p5513_p4 = pnand %p5511_p1, %p5508_p0 }
  0xef   : > { %5516 = shalt.err (!%p5513_p4)
}
  0xf0   : > { %s5517_s19 = scalar_lea.vmem %s599_s8, 16  ;;  %s5524_s21 = scalar_lea.vmem %s599_s8, 32 }
  0xf1   : > { %p5518_p6 = scmp.ne.s32.totalorder %s599_s8, %s5517_s19  ;;  %p5525_p10 = scmp.lt.s32.totalorder %s599_s8, %s599_s8 }
  0xf2   : > { %p5526_p11 = scmp.lt.s32.totalorder %s5524_s21, %s5517_s19 }
  0xf3   : > { %p5520_p8 = pnand %p5518_p6, %p5843_p7 }
  0xf4   : > { %p5527_p12 = por %p5526_p11, %p5525_p10 }
  0xf5   : > { %p5521_p9 = pneg %p5520_p8 }
  0xf7   : > { %p5528_p13 = pnand %p5527_p12, %p5521_p9 }
  0xf9   : > { %5531 = shalt.err (!%p5528_p13)
}
  0xfa   : > { %5033 = dma.hbm_to_vmem [thread:$0]  (!%p5827_p5), %s6719_s13, 16, %s599_s8, [#allocation15]  }
  0xfb   : > { %s5532_s5 = scalar_lea.hbm %s6721_s15, 16 }
  0xfc   : > { %p5533_p2 = scmp.ne.s32.totalorder %s6721_s15, %s5532_s5  ;;  %p5539_p1 = scmp.lt.u32.totalorder %s5532_s5, %s6721_s15 }
  0xfe   : > { %p5535_p3 = pnand %p5533_p2, %p5843_p7 }
 0x100   : > { %p5536_p0 = pneg %p5535_p3 }
 0x102   : > { %p5541_p4 = pnand %p5539_p1, %p5536_p0 }
 0x104   : > { %5544 = shalt.err (!%p5541_p4)
}
 0x105   : > { %s5545_s7 = scalar_lea.vmem %s621_s2, 16  ;;  %s5552_s8 = scalar_lea.vmem %s621_s2, 32 }
 0x106   : > { %p5546_p6 = scmp.ne.s32.totalorder %s621_s2, %s5545_s7  ;;  %p5553_p10 = scmp.lt.s32.totalorder %s621_s2, %s621_s2 }
 0x107   : > { %p5554_p11 = scmp.lt.s32.totalorder %s5552_s8, %s5545_s7 }
 0x108   : > { %p5548_p8 = pnand %p5546_p6, %p5843_p7 }
 0x109   : > { %p5555_p12 = por %p5554_p11, %p5553_p10 }
 0x10a   : > { %p5549_p9 = pneg %p5548_p8 }
 0x10c   : > { %p5556_p13 = pnand %p5555_p12, %p5549_p9 }
 0x10e   : > { %5559 = shalt.err (!%p5556_p13)
}
 0x10f   : > { %5039 = dma.hbm_to_vmem [thread:$0]  (!%p5827_p5), %s6721_s15, 16, %s621_s2, [#allocation18]  }
 0x110   : > { %s5682_s19 = smov [#allocation22]   ;;  %s5683_s20 = smov [#allocation23]  }
 0x111   : > { %s642_s21 = sshll.u32 %s5682_s19, 4  ;;  %s653_s24 = sshll.u32 %s5683_s20, 4  ;;  %s643_s21 = int_to_ptr.vmem [resolvable:$true] %s642_s21  ;;  %s654_s24 = int_to_ptr.vmem [resolvable:$true] %s653_s24 }
 0x112   : > { %s5560_s5 = scalar_lea.hbm %s6723_s17, 16 }
 0x113   : > { %p5561_p2 = scmp.ne.s32.totalorder %s6723_s17, %s5560_s5  ;;  %p5567_p1 = scmp.lt.u32.totalorder %s5560_s5, %s6723_s17 }
 0x115   : > { %p5563_p3 = pnand %p5561_p2, %p5843_p7 }
 0x117   : > { %p5564_p0 = pneg %p5563_p3 }
 0x119   : > { %p5569_p4 = pnand %p5567_p1, %p5564_p0 }
 0x11b   : > { %5572 = shalt.err (!%p5569_p4)
}
 0x11c   : > { %s5573_s2 = scalar_lea.vmem %s643_s21, 16  ;;  %s5580_s7 = scalar_lea.vmem %s643_s21, 32 }
 0x11d   : > { %p5574_p6 = scmp.ne.s32.totalorder %s643_s21, %s5573_s2  ;;  %p5581_p10 = scmp.lt.s32.totalorder %s643_s21, %s643_s21 }
 0x11e   : > { %p5582_p11 = scmp.lt.s32.totalorder %s5580_s7, %s5573_s2 }
 0x11f   : > { %p5576_p8 = pnand %p5574_p6, %p5843_p7 }
 0x120   : > { %p5583_p12 = por %p5582_p11, %p5581_p10 }
 0x121   : > { %p5577_p9 = pneg %p5576_p8 }
 0x123   : > { %p5584_p13 = pnand %p5583_p12, %p5577_p9 }
 0x125   : > { %5587 = shalt.err (!%p5584_p13)
}
 0x126   : > { %5045 = dma.hbm_to_vmem [thread:$0]  (!%p5827_p5), %s6723_s17, 16, %s643_s21, [#allocation21]  }
 0x127   : > { %s5588_s20 = scalar_lea.hbm %s6724_s18, 16 }
 0x128   : > { %p5589_p2 = scmp.ne.s32.totalorder %s6724_s18, %s5588_s20  ;;  %p5595_p1 = scmp.lt.u32.totalorder %s5588_s20, %s6724_s18 }
 0x12a   : > { %p5591_p3 = pnand %p5589_p2, %p5843_p7 }
 0x12c   : > { %p5592_p0 = pneg %p5591_p3 }
 0x12e   : > { %p5597_p4 = pnand %p5595_p1, %p5592_p0 }
 0x130   : > { %5600 = shalt.err (!%p5597_p4)
}
 0x131   : > { %s5601_s28 = scalar_lea.vmem %s654_s24, 16  ;;  %s5608_s21 = scalar_lea.vmem %s654_s24, 32 }
 0x132   : > { %p5602_p6 = scmp.ne.s32.totalorder %s654_s24, %s5601_s28  ;;  %p5609_p10 = scmp.lt.s32.totalorder %s654_s24, %s654_s24 }
 0x133   : > { %p5610_p11 = scmp.lt.s32.totalorder %s5608_s21, %s5601_s28 }
 0x134   : > { %p5604_p8 = pnand %p5602_p6, %p5843_p7 }
 0x135   : > { %p5611_p12 = por %p5610_p11, %p5609_p10 }
 0x136   : > { %p5605_p9 = pneg %p5604_p8 }
 0x138   : > { %p5612_p13 = pnand %p5611_p12, %p5605_p9 }
 0x13a   : > { %5615 = shalt.err (!%p5612_p13)
}
 0x13b   : > { %5048 = dma.hbm_to_vmem [thread:$0]  (!%p5827_p5), %s6724_s18, 16, %s654_s24, [#allocation24]  }
 0x13c   : > { %p6756_p2 = scmp.ne.s32.totalorder %s6749_s22, 0 }
 0x13d   : > { %p6757_p3 = scmp.ne.s32.totalorder (!%p6756_p2), %s6748_s1, 0 }
 0x13e   : > { %687 = sbr.rel (%p6756_p2) target bundleno = 4731 (0x127b), region = 96 }
 0x145   : > { %5629 = dma.done.wait (%p6757_p3), [#allocation7], 1024  }
 0x146   : > { %5631 = vsyncadd (%p6757_p3), [#allocation7], 4294966272 }
 0x147   : > { %5633 = dma.done.wait (%p6757_p3), [#allocation9], 2048  }
 0x148   : > { %5635 = vsyncadd (%p6757_p3), [#allocation9], 4294965248 }
 0x149   : > { %5637 = dma.done.wait (%p6757_p3), [#allocation12], 3072  }
 0x14a   : > { %5639 = vsyncadd (%p6757_p3), [#allocation12], 4294964224 }
 0x14b   : > { %5641 = dma.done.wait (%p6757_p3), [#allocation15], 2064  }
 0x14c   : > { %5643 = vsyncadd (%p6757_p3), [#allocation15], 4294965232 }
 0x14d   : > { %5645 = dma.done.wait (%p6757_p3), [#allocation18], 32  }
 0x14e   : > { %5647 = vsyncadd (%p6757_p3), [#allocation18], 4294967264 }
 0x14f   : > { %5649 = dma.done.wait (%p6757_p3), [#allocation21], 32  }
 0x150   : > { %5651 = vsyncadd (%p6757_p3), [#allocation21], 4294967264 }
 0x151   : > { %5653 = dma.done.wait (%p6757_p3), [#allocation24], 16  }
 0x152   : > { %5655 = vsyncadd (%p6757_p3), [#allocation24], 4294967280  ;;  %s6758_s12 = sld [smem:[#allocation32_spill]]  ;;  %v5684_v0 = vmov 0   ;;  %s6759_s24 = sld [smem:[#allocation38_spill]]  ;;  %v5146_v18 = vld [vmem:[#allocation6] sm:$0xff]   ;;  %v974_v60 = vlaneseq }
 0x153   : > { %950 = vmatprep.mubr.bf16.mxu0 %v5684_v0  ;;  %1399 = vmatprep.mubr.bf16.mxu1 %v5684_v0  ;;  %s6760_s21 = sld [smem:[#allocation34_spill]]  ;;  %v5685_v20 = vmov 0.0   ;;  %v5147_v21 = vld [vmem:[#allocation6 + $0x8] sm:$0xff]   ;;  %vm5686_vm0 = vmmov 0   ;;  %v5148_v22 = vld [vmem:[#allocation6 + $0x10] sm:$0xff]   ;;  %v5149_v23 = vld [vmem:[#allocation6 + $0x18] sm:$0xff]  }
 0x154   : > { %v5150_v24 = vld [vmem:[#allocation6 + $0x20] sm:$0xff]   ;;  %v5151_v25 = vld [vmem:[#allocation6 + $0x28] sm:$0xff]   ;;  %v5152_v26 = vld [vmem:[#allocation6 + $0x30] sm:$0xff]   ;;  %s6761_s7 = sld [smem:[#allocation41_spill]]  ;;  %s5687_s6 = smov 96   ;;  %vm1109_vm1 = vcmask 257024  }
 0x155   : > { %v5153_v27 = vld [vmem:[#allocation6 + $0x38] sm:$0xff]   ;;  %s5688_s0 = smov 32   ;;  %s5689_s27 = smov 64   ;;  %v5690_v58 = vmov 1983009808   ;;  %vm1706_vm2 = vcmask 261120  }
 0x156   : > { %v972_v59 = vunpack.c.l.s4 %v5690_v58  ;;  %v5691_v61 = vmov 1934713408   ;;  %vm2488_vm4 = vcmask 64512   ;;  %vm2540_vm5 = vcmask 1043456   ;;  %s6763_s2 = sld [smem:[#allocation36_spill]]  ;;  %s6766_s10 = sld [smem:[#allocation45_spill]] }
 0x157   : > { %v1004_v62 = vunpack.c.l.s4 %v5691_v61  ;;  %vm2871_vm6 = vcmask 523264   ;;  %vm2873_vm7 = vcmask 785408   ;;  %vm3463_vm8 = vcmask 130048   ;;  %s6765_s23 = sld [smem:[#allocation44_spill]] }
 0x158   : > { %v5122_v1 = vld [vmem:[%s6759_s24 + $0x4] ss:$8 sps:$4 sm:$0xff]   ;;  %v5124_v2 = vld [vmem:[%s6759_s24] ss:$8 sps:$4 sm:$0xff]   ;;  %v5125_v3 = vld [vmem:[%s6759_s24 + $0x14] ss:$8 sps:$4 sm:$0xff]   ;;  %v973_v63 = vunpack.c.0.s8 %v972_v59 }
 0x159   : > { %918 = vmatprep.subr.bf16.mxu0 %v5122_v1  ;;  %v5127_v4 = vld [vmem:[%s6759_s24 + $0x10] ss:$8 sps:$4 sm:$0xff]   ;;  %v5128_v5 = vld [vmem:[%s6759_s24 + $0x24] ss:$8 sps:$4 sm:$0xff]   ;;  %v5130_v6 = vld [vmem:[%s6759_s24 + $0x20] ss:$8 sps:$4 sm:$0xff]  }
 0x15a   : > { %919 = vmatpush1.bf16.msra.mxu0 %v5124_v2  ;;  %v5131_v7 = vld [vmem:[%s6759_s24 + $0x34] ss:$8 sps:$4 sm:$0xff]   ;;  %p796_p5 = scmp.lt.s32.totalorder %s6758_s12, 1  ;;  %v5133_v8 = vld [vmem:[%s6759_s24 + $0x30] ss:$8 sps:$4 sm:$0xff]   ;;  %v1275_v32 = vld [vmem:[%s6761_s7 + $0x20] sm:$0xff] }
 0x15b   : > { %920 = vmatprep.subr.bf16.mxu0 %v5125_v3  ;;  %v5134_v9 = vld [vmem:[%s6759_s24 + $0x44] ss:$8 sps:$4 sm:$0xff]   ;;  %v5136_v10 = vld [vmem:[%s6759_s24 + $0x40] ss:$8 sps:$4 sm:$0xff]   ;;  %v5137_v11 = vld [vmem:[%s6759_s24 + $0x54] ss:$8 sps:$4 sm:$0xff]  }
 0x15c   : > { %s6773_s12 = smov (!%p796_p5, %s6758_s12), 1  ;;  %v5139_v12 = vld [vmem:[%s6759_s24 + $0x50] ss:$8 sps:$4 sm:$0xff]   ;;  %v5140_v13 = vld [vmem:[%s6759_s24 + $0x64] ss:$8 sps:$4 sm:$0xff]   ;;  %v6269_v1 = vshrl.u32 %v974_v60, 7 }
 0x15d   : > { %s4551_s19 = sshll.u32 %s6773_s12, 3  ;;  %v5142_v14 = vld [vmem:[%s6759_s24 + $0x60] ss:$8 sps:$4 sm:$0xff]   ;;  %v5143_v15 = vld [vmem:[%s6759_s24 + $0x74] ss:$8 sps:$4 sm:$0xff]   ;;  %s4697_s5 = sshll.u32 %s6773_s12, 4 }
 0x15e   : > { %921 = vmatpush1.bf16.msra.mxu0 %v5127_v4  ;;  %s6178_s29 = scalar_lea.vmem %s6760_s21, %s4551_s19  ;;  %v5145_v16 = vld [vmem:[%s6759_s24 + $0x70] ss:$8 sps:$4 sm:$0xff]   ;;  %v5154_v28 = vld [vmem:[%s6761_s7 + $0x4] ss:$8 sps:$4 sm:$0xff]   ;;  %v5156_v29 = vld [vmem:[%s6761_s7] ss:$8 sps:$4 sm:$0xff]   ;;  %v1005_v4 = vunpack.c.0.s8 %v1004_v62  ;;  %s807_s8 = scalar_lea.vmem %s6763_s2, %s6773_s12 }
 0x15f   : > { %922 = vmatprep.subr.bf16.mxu0 %v5128_v5  ;;  %v820_v17 = vld [vmem:[%s6178_s29] sm:$0xff]  ;;  %v5157_v30 = vld [vmem:[%s6761_s7 + $0x14] ss:$8 sps:$4 sm:$0xff]   ;;  %1367 = vmatprep.subr.bf16.mxu1 %v5154_v28  ;;  %v5159_v31 = vld [vmem:[%s6761_s7 + $0x10] ss:$8 sps:$4 sm:$0xff]   ;;  %s6762_s21 = sld [smem:[#allocation35_spill]]  ;;  %v6272_v5 = vsub.s32 %v973_v63, %v6269_v1  ;;  %s814_s28 = scalar_lea.vmem %s6766_s10, %s4551_s19 }
 0x160   : > { %v821_v19 = vpack.c.bf16 %v820_v17, %v820_v17  ;;  %1368 = vmatpush1.bf16.msra.mxu1 %v5156_v29  ;;  %v1276_v33 = vld [vmem:[%s6761_s7 + $0x28] sm:$0xff]  ;;  %v5162_v36 = vld [vmem:[%s6761_s7 + $0x34] ss:$8 sps:$4 sm:$0xff]   ;;  %v5164_v37 = vld [vmem:[%s6761_s7 + $0x30] ss:$8 sps:$4 sm:$0xff]  }
 0x161   : > { %1369 = vmatprep.subr.bf16.mxu1 %v5157_v30  ;;  %v5160_v34 = vld [vmem:[%s6761_s7 + $0x24] ss:$8 sps:$4 sm:$0xff]   ;;  %v4579_v35 = vcombine.low %v1275_v32, %v1276_v33  ;;  %v5167_v39 = vld [vmem:[%s6761_s7 + $0x40] ss:$8 sps:$4 sm:$0xff]   ;;  %v5168_v42 = vld [vmem:[%s6761_s7 + $0x54] ss:$8 sps:$4 sm:$0xff]  }
 0x162   : > { %923 = vmatpush1.bf16.msra.mxu0 %v5130_v6  ;;  %v5165_v38 = vld [vmem:[%s6761_s7 + $0x44] ss:$8 sps:$4 sm:$0xff]   ;;  %v5170_v44 = vld [vmem:[%s6761_s7 + $0x50] ss:$8 sps:$4 sm:$0xff]   ;;  %v5173_v47 = vld [vmem:[%s6761_s7 + $0x60] ss:$8 sps:$4 sm:$0xff]  }
 0x163   : > { %924 = vmatprep.subr.bf16.mxu0 %v5131_v7  ;;  %v5171_v46 = vld [vmem:[%s6761_s7 + $0x64] ss:$8 sps:$4 sm:$0xff]   ;;  %v5174_v48 = vld [vmem:[%s6761_s7 + $0x74] ss:$8 sps:$4 sm:$0xff]   ;;  %v5176_v49 = vld [vmem:[%s6761_s7 + $0x70] ss:$8 sps:$4 sm:$0xff]  }
 0x164   : > { %1370 = vmatpush1.bf16.msra.mxu1 %v5159_v31 }
 0x165   : > { %1371 = vmatprep.subr.bf16.mxu1 %v5160_v34  ;;  %s804_s22 = scalar_lea.vmem %s6762_s21, %s4697_s5 }
 0x166   : > { %925 = vmatpush1.bf16.msra.mxu0 %v5133_v8  ;;  %v1268_v50 = vld [vmem:[%s804_s22] sm:$0xff]  ;;  %v1269_v51 = vld [vmem:[%s804_s22 + $0x8] sm:$0xff] }
 0x167   : > { %926 = vmatprep.subr.bf16.mxu0 %v5134_v9  ;;  %v1270_v52 = vpack.c.bf16 %v1269_v51, %v1268_v50 }
 0x168   : > { %1372 = vmatpush1.bf16.msra.mxu1 %v4579_v35 }
 0x169   : > { %1373 = vmatprep.subr.bf16.mxu1 %v5162_v36 }
 0x16a   : > { %927 = vmatpush1.bf16.msra.mxu0 %v5136_v10 }
 0x16b   : > { %928 = vmatprep.subr.bf16.mxu0 %v5137_v11  ;;  %v6275_v11 = vsub.s32 %v1005_v4, %v6269_v1 }
 0x16c   : > { %1374 = vmatpush1.bf16.msra.mxu1 %v5164_v37 }
 0x16d   : > { %1375 = vmatprep.subr.bf16.mxu1 %v5165_v38 }
 0x16e   : > { %929 = vmatpush1.bf16.msra.mxu0 %v5139_v12 }
 0x16f   : > { %930 = vmatprep.subr.bf16.mxu0 %v5140_v13 }
 0x170   : > { %1376 = vmatpush1.bf16.msra.mxu1 %v5167_v39 }
 0x171   : > { %1377 = vmatprep.subr.bf16.mxu1 %v5168_v42 }
 0x172   : > { %931 = vmatpush1.bf16.msra.mxu0 %v5142_v14 }
 0x173   : > { %932 = vmatprep.subr.bf16.mxu0 %v5143_v15 }
 0x174   : > { %1378 = vmatpush1.bf16.msra.mxu1 %v5170_v44 }
 0x175   : > { %1379 = vmatprep.subr.bf16.mxu1 %v5171_v46 }
 0x176   : > { %933 = vmatpush1.bf16.msra.mxu0 %v5145_v16 }
 0x177   : > { %4788 = vmatprep.subr.bf16.mxu0 %v5685_v20 }
 0x178   : > { %1380 = vmatpush1.bf16.msra.mxu1 %v5173_v47 }
 0x179   : > { %951 = vmatmul.mubr.bf16.vlgmr.msra.gmra.mrb[0].mxu0 %v821_v19  ;;  %1381 = vmatprep.subr.bf16.mxu1 %v5174_v48 }
 0x17a   : > { %4789 = vmatpush3.bf16.msra.mxu0 %v5146_v18  ;;  %4804 = vmatprep.mubr.msk.bf16.mxu0 %vm5686_vm0, %v5685_v20 }
 0x17b   : > { %4790 = vmatprep.subr.bf16.mxu0 %v5685_v20 }
 0x17c   : > { %1382 = vmatpush1.bf16.msra.mxu1 %v5176_v49 }
 0x17d   : > { %4808 = vmatprep.subr.bf16.mxu1 %v5685_v20 }
 0x17e   : > { %4791 = vmatpush3.bf16.msra.mxu0 %v5147_v21 }
 0x17f   : > { %4792 = vmatprep.subr.bf16.mxu0 %v5685_v20  ;;  %1400 = vmatmul.mubr.bf16.vlgmr.msra.gmra.mrb[0].mxu1 %v1270_v52 }
 0x180   : > { %4810 = vmatprep.mubr.msk.bf16.mxu1 %vm5686_vm0, %v5685_v20 }
 0x182   : > { %4793 = vmatpush3.bf16.msra.mxu0 %v5148_v22 }
 0x183   : > { %4794 = vmatprep.subr.bf16.mxu0 %v5685_v20 }
 0x186   : > { %4795 = vmatpush3.bf16.msra.mxu0 %v5149_v23 }
 0x187   : > { %4796 = vmatprep.subr.bf16.mxu0 %v5685_v20 }
 0x18a   : > { %4797 = vmatpush3.bf16.msra.mxu0 %v5150_v24 }
 0x18b   : > { %4798 = vmatprep.subr.bf16.mxu0 %v5685_v20 }
 0x18e   : > { %4799 = vmatpush3.bf16.msra.mxu0 %v5151_v25 }
 0x18f   : > { %4800 = vmatprep.subr.bf16.mxu0 %v5685_v20 }
 0x192   : > { %4801 = vmatpush3.bf16.msra.mxu0 %v5152_v26 }
 0x193   : > { %4802 = vmatprep.subr.bf16.mxu0 %v5685_v20 }
 0x196   : > { %4803 = vmatpush3.bf16.msra.mxu0 %v5153_v27 }
 0x197   : > { %4856 = vmatprep.subr.bf16.mxu0 %v5685_v20 }
 0x199   : > { %4805 = vmatmul.mubr.bf16.vlgmr.msra.gmra.mrb[4].mxu0 %v821_v19 }
 0x19a   : > { %4872 = vmatprep.mubr.msk.bf16.mxu0 %vm5686_vm0, %v5685_v20 }
 0x24c   : > { %v952_v40 = vpop.f32.mrb[0].mxu0 }
 0x24d   : > { %960 = vrot.lane.b32.xlu0 %v952_v40, %s5687_s6  ;;  %v6231_v41 = vpop.f32.mrb[1].mxu0  ;;  %966 = vrot.lane.b32.xlu1 %v952_v40, %s5688_s0 }
 0x24e   : > { %v956_v43 = vpop.f32.mrb[2].mxu0 }
 0x24f   : > { %v957_v45 = vpop.f32.mrb[3].mxu0 }
 0x251   : > { %963 = vrot.lane.b32.xlu0 %v952_v40, %s5689_s27 }
 0x26c   : > { %v2146_v53 = vpop.f32.mrb[4].mxu0 }
 0x26d   : > { %v6260_v54 = vmul.f32 0.17677669, %v2146_v53  ;;  %v4806_v55 = vpop.f32.mrb[5].mxu0 }
 0x26e   : > { %v2149_v56 = vpop.f32.mrb[6].mxu0 }
 0x26f   : > { %2157 = vrot.lane.b32.xlu0 %v6260_v54, %s5689_s27  ;;  %2154 = vrot.lane.b32.xlu1 %v6260_v54, %s5687_s6  ;;  %v4807_v57 = vpop.f32.mrb[7].mxu0 }
 0x273   : > { %2160 = vrot.lane.b32.xlu1 %v6260_v54, %s5688_s0 }
 0x2bf   : > { %v961_v2 = vpop.permute.xlu0 %960  ;;  %v967_v3 = vpop.permute.xlu1 %966 }
 0x2c0   : > { %v985_v6 = vcombine.low %v961_v2, %v967_v3  ;;  %v986_v7 = vcombine.high %v961_v2, %v967_v3 }
 0x2c2   : > { %v993_v12 = vrot.slane %v985_v6, %v6272_v5  ;;  %v1000_v13 = vrot.slane %v986_v7, %v6272_v5 }
 0x2c3   : > { %v964_v8 = vpop.permute.xlu0 %963 }
 0x2c4   : > { %v969_v9 = vcombine.low %v952_v40, %v964_v8  ;;  %v970_v10 = vcombine.high %v952_v40, %v964_v8 }
 0x2c6   : > { %v977_v14 = vrot.slane %v969_v9, %v6272_v5  ;;  %v984_v15 = vrot.slane %v970_v10, %v6272_v5 }
 0x2c8   : > { %v1001_v16 = vcombine.low %v977_v14, %v993_v12  ;;  %v1002_v17 = vcombine.high %v977_v14, %v993_v12  ;;  %v1017_v18 = vcombine.low %v984_v15, %v1000_v13  ;;  %v1018_v19 = vcombine.high %v984_v15, %v1000_v13 }
 0x2ca   : > { %v1009_v21 = vrot.slane %v1001_v16, %v6275_v11  ;;  %v1016_v22 = vrot.slane %v1002_v17, %v6275_v11  ;;  %v1025_v23 = vrot.slane %v1017_v18, %v6275_v11  ;;  %v1032_v24 = vrot.slane %v1018_v19, %v6275_v11 }
 0x2cc   : > { %v1037_v25 = vcombine.low %v1009_v21, %v1016_v22  ;;  %v4571_v26 = vcombine.high %v1009_v21, %v1016_v22  ;;  %v1053_v27 = vcombine.low %v1025_v23, %v1032_v24  ;;  %v4572_v28 = vcombine.high %v1025_v23, %v1032_v24 }
 0x2ce   : > { %v1044_v29 = vrot.slane %v1037_v25, %v6272_v5  ;;  %v1052_v30 = vrot.slane %v4571_v26, %v6272_v5  ;;  %v1060_v31 = vrot.slane %v1053_v27, %v6272_v5  ;;  %v1068_v32 = vrot.slane %v4572_v28, %v6272_v5 }
 0x2d0   : > { %v1069_v33 = vcombine.low %v1044_v29, %v1052_v30  ;;  %v1070_v34 = vcombine.high %v1044_v29, %v1052_v30  ;;  %v1085_v35 = vcombine.low %v1060_v31, %v1068_v32  ;;  %v1086_v36 = vcombine.high %v1060_v31, %v1068_v32 }
 0x2d2   : > { %v1077_v37 = vrot.slane %v1069_v33, %v6275_v11  ;;  %v1084_v38 = vrot.slane %v1070_v34, %v6275_v11  ;;  %v1093_v39 = vrot.slane %v1085_v35, %v6275_v11  ;;  %v1100_v40 = vrot.slane %v1086_v36, %v6275_v11 }
 0x2d4   : > { %v1101_v42 = vcombine.low %v1077_v37, %v1093_v39  ;;  %v1102_v43 = vcombine.high %v1077_v37, %v1093_v39  ;;  %v1103_v44 = vcombine.low %v1084_v38, %v1100_v40  ;;  %v1104_v45 = vcombine.high %v1084_v38, %v1100_v40 }
 0x2d6   : > { %v1105_v46 = vpack.c.bf16 %v1101_v42, %v1101_v42  ;;  %v1106_v47 = vpack.c.bf16 %v1102_v43, %v1102_v43  ;;  %v1107_v48 = vpack.c.bf16 %v1103_v44, %v1103_v44  ;;  %v1108_v49 = vpack.c.bf16 %v1104_v45, %v1104_v45  ;;  %v6335_v44 = vpop.f32.mrb[0].mxu1 }
 0x2d7   : > { %v6337_v45 = vpop.f32.mrb[1].mxu1 }
 0x2d8   : > { %1110 = vst.msk [vmem:[#allocation2] sm:$0xf] %vm1109_vm1, %v1105_v46  ;;  %1111 = vst.msk [vmem:[#allocation2 + $0x4] sm:$0xf] %vm1109_vm1, %v1106_v47  ;;  %v6339_v46 = vpop.f32.mrb[2].mxu1 }
 0x2d9   : > { %1112 = vst.msk [vmem:[#allocation2 + $0x8] sm:$0xf] %vm1109_vm1, %v1107_v48  ;;  %1113 = vst.msk [vmem:[#allocation2 + $0xc] sm:$0xf] %vm1109_vm1, %v1108_v49  ;;  %v6341_v47 = vpop.f32.mrb[3].mxu1  ;;  %v2019_v48 = vand.u32 127, %v974_v60 }
 0x2da   : > { %v5692_v49 = vmov -1e+30  }
 0x2db   : > { %vm2020_vm3 = vcmp.ge.s32.totalorder %v6269_v1, %v2019_v48 }
 0x2df   : > { %v2039_v50 = vld [vmem:[#allocation2] sm:$0xf]  ;;  %v2040_v26 = vld [vmem:[#allocation2 + $0x4] sm:$0xf] }
 0x2e0   : > { %v2308_v51 = vsel %vm1706_vm2, %v2039_v50, 0  ;;  %v2354_v28 = vsel %vm1706_vm2, %v2040_v26, 0  ;;  %v2041_v32 = vld [vmem:[#allocation2 + $0x8] sm:$0xf]  ;;  %v2042_v38 = vld [vmem:[#allocation2 + $0xc] sm:$0xf] }
 0x2e1   : > { %4809 = vmatpush3.bf16.xpose.msra.mxu1 %v2308_v51  ;;  %v2158_v52 = vpop.permute.xlu0 %2157  ;;  %v2155_v53 = vpop.permute.xlu1 %2154  ;;  %v2400_v36 = vsel %vm1706_vm2, %v2041_v32, 0  ;;  %v2446_v40 = vsel %vm1706_vm2, %v2042_v38, 0  ;;  %v2021_v50 = vsel %vm2020_vm3, 0.0, %v5692_v49 }
 0x2e2   : > { %4814 = vmatprep.subr.bf16.mxu1 %v5685_v20  ;;  %v2163_v55 = vcombine.low %v6260_v54, %v2158_v52  ;;  %v2164_v56 = vcombine.high %v6260_v54, %v2158_v52 }
 0x2e4   : > { %v2171_v61 = vrot.slane %v2163_v55, %v6272_v5  ;;  %v2178_v62 = vrot.slane %v2164_v56, %v6272_v5 }
 0x2e5   : > { %v2161_v57 = vpop.permute.xlu1 %2160 }
 0x2e6   : > { %v2179_v58 = vcombine.low %v2155_v53, %v2161_v57  ;;  %v2180_v59 = vcombine.high %v2155_v53, %v2161_v57 }
 0x2e8   : > { %v2187_v63 = vrot.slane %v2179_v58, %v6272_v5  ;;  %v2194_v2 = vrot.slane %v2180_v59, %v6272_v5 }
 0x2ea   : > { %v2195_v3 = vcombine.low %v2171_v61, %v2187_v63  ;;  %v2196_v4 = vcombine.high %v2171_v61, %v2187_v63  ;;  %v2211_v6 = vcombine.low %v2178_v62, %v2194_v2  ;;  %v2212_v7 = vcombine.high %v2178_v62, %v2194_v2 }
 0x2ec   : > { %v2203_v8 = vrot.slane %v2195_v3, %v6275_v11  ;;  %v2210_v9 = vrot.slane %v2196_v4, %v6275_v11  ;;  %v2219_v54 = vrot.slane %v2211_v6, %v6275_v11  ;;  %v2226_v10 = vrot.slane %v2212_v7, %v6275_v11 }
 0x2ee   : > { %v2231_v12 = vcombine.low %v2203_v8, %v2210_v9  ;;  %v4607_v13 = vcombine.high %v2203_v8, %v2210_v9  ;;  %v2247_v14 = vcombine.low %v2219_v54, %v2226_v10  ;;  %v4608_v15 = vcombine.high %v2219_v54, %v2226_v10 }
 0x2f0   : > { %v2238_v16 = vrot.slane %v2231_v12, %v6272_v5  ;;  %v2246_v17 = vrot.slane %v4607_v13, %v6272_v5  ;;  %v2254_v18 = vrot.slane %v2247_v14, %v6272_v5  ;;  %v2262_v19 = vrot.slane %v4608_v15, %v6272_v5 }
 0x2f2   : > { %v2263_v21 = vcombine.low %v2238_v16, %v2246_v17  ;;  %v2279_v22 = vcombine.low %v2254_v18, %v2262_v19  ;;  %v2264_v29 = vcombine.high %v2238_v16, %v2246_v17  ;;  %v2280_v30 = vcombine.high %v2254_v18, %v2262_v19 }
 0x2f4   : > { %v2271_v23 = vrot.slane %v2263_v21, %v6275_v11  ;;  %v2287_v24 = vrot.slane %v2279_v22, %v6275_v11  ;;  %v2278_v34 = vrot.slane %v2264_v29, %v6275_v11  ;;  %v2294_v35 = vrot.slane %v2280_v30, %v6275_v11 }
 0x2f6   : > { %v2295_v25 = vcombine.low %v2271_v23, %v2287_v24  ;;  %v2296_v31 = vcombine.high %v2271_v23, %v2287_v24  ;;  %v2297_v37 = vcombine.low %v2278_v34, %v2294_v35  ;;  %v2298_v42 = vcombine.high %v2278_v34, %v2294_v35 }
 0x2f8   : > { %v2299_v27 = vpack.c.bf16 %v2295_v25, %v2295_v25  ;;  %v2300_v33 = vpack.c.bf16 %v2296_v31, %v2296_v31  ;;  %v2301_v39 = vpack.c.bf16 %v2297_v37, %v2297_v37  ;;  %v2302_v43 = vpack.c.bf16 %v2298_v42, %v2298_v42 }
 0x2fa   : > { %4811 = vmatmul.mubr.msk.bf16.vlgmr.msra.gmra.mrb[4].mxu1 %vm1706_vm2, %v2299_v27 }
 0x2fb   : > { %4815 = vmatpush3.bf16.xpose.msra.mxu1 %v2354_v28  ;;  %4816 = vmatprep.mubr.msk.bf16.mxu1 %vm5686_vm0, %v5685_v20 }
 0x2fc   : > { %4820 = vmatprep.subr.bf16.mxu1 %v5685_v20 }
 0x302   : > { %4817 = vmatmul.mubr.msk.bf16.vlgmr.msra.gmra.mrb[8].mxu1 %vm1706_vm2, %v2300_v33 }
 0x303   : > { %4821 = vmatpush3.bf16.xpose.msra.mxu1 %v2400_v36  ;;  %4822 = vmatprep.mubr.msk.bf16.mxu1 %vm5686_vm0, %v5685_v20 }
 0x304   : > { %4826 = vmatprep.subr.bf16.mxu1 %v5685_v20 }
 0x30a   : > { %4823 = vmatmul.mubr.msk.bf16.vlgmr.msra.gmra.mrb[12].mxu1 %vm1706_vm2, %v2301_v39 }
 0x30b   : > { %4827 = vmatpush3.bf16.xpose.msra.mxu1 %v2446_v40  ;;  %4828 = vmatprep.mubr.msk.bf16.mxu1 %vm5686_vm0, %v5685_v20 }
 0x30c   : > { %4832 = vmatprep.subr.bf16.mxu1 %v5685_v20 }
 0x312   : > { %4829 = vmatmul.mubr.msk.bf16.vlgmr.msra.gmra.mrb[16].mxu1 %vm1706_vm2, %v2302_v43 }
 0x313   : > { %4834 = vmatprep.mubr.msk.bf16.mxu1 %vm5686_vm0, %v5685_v20 }
 0x3cd   : > { %v2344_v51 = vpop.f32.mrb[4].mxu1 }
 0x3ce   : > { %v2345_v52 = vadd.f32 %v2344_v51, %v2021_v50  ;;  %v4812_v53 = vpop.f32.mrb[5].mxu1 }
 0x3cf   : > { %v2347_v55 = vpop.f32.mrb[6].mxu1 }
 0x3d0   : > { %v4813_v56 = vpop.f32.mrb[7].mxu1  ;;  %v2489_v57 = vsel %vm2488_vm4, %v2345_v52, -inf }
 0x3d1   : > { %2490 = vmax.xlane.f32.xlu0 %v2489_v57 }
 0x3d5   : > { %v2390_v58 = vpop.f32.mrb[8].mxu1 }
 0x3d6   : > { %v2391_v59 = vadd.f32 %v2390_v58, %v2021_v50  ;;  %v4818_v61 = vpop.f32.mrb[9].mxu1 }
 0x3d7   : > { %v2393_v62 = vpop.f32.mrb[10].mxu1 }
 0x3d8   : > { %v4819_v63 = vpop.f32.mrb[11].mxu1  ;;  %v2492_v60 = vsel %vm2488_vm4, %v2391_v59, -inf }
 0x3d9   : > { %2493 = vmax.xlane.f32.xlu1 %v2492_v60 }
 0x3dd   : > { %v2436_v2 = vpop.f32.mrb[12].mxu1 }
 0x3de   : > { %v2437_v3 = vadd.f32 %v2436_v2, %v2021_v50  ;;  %v4824_v4 = vpop.f32.mrb[13].mxu1 }
 0x3df   : > { %v2439_v6 = vpop.f32.mrb[14].mxu1 }
 0x3e0   : > { %v4825_v7 = vpop.f32.mrb[15].mxu1  ;;  %v2495_v8 = vsel %vm2488_vm4, %v2437_v3, -inf }
 0x3e1   : > { %2496 = vmax.xlane.f32.xlu0 %v2495_v8 }
 0x3e5   : > { %v2482_v9 = vpop.f32.mrb[16].mxu1 }
 0x3e6   : > { %v2483_v54 = vadd.f32 %v2482_v9, %v2021_v50  ;;  %v4830_v10 = vpop.f32.mrb[17].mxu1 }
 0x3e7   : > { %v2485_v12 = vpop.f32.mrb[18].mxu1 }
 0x3e8   : > { %v4831_v13 = vpop.f32.mrb[19].mxu1  ;;  %v2498_v14 = vsel %vm2488_vm4, %v2483_v54, -inf }
 0x3e9   : > { %2499 = vmax.xlane.f32.xlu0 %v2498_v14 }
 0x3ea   : > { %1115 = vrot.lane.b32.xlu1 %v6231_v41, %s5687_s6 }
 0x3ee   : > { %1121 = vrot.lane.b32.xlu1 %v6231_v41, %s5688_s0 }
 0x3ff   : > { %1118 = vrot.lane.b32.xlu0 %v6231_v41, %s5689_s27 }
 0x45e   : > { %v2491_v15 = vpop.xlane.xlu0 %2490 }
 0x45f   : > { %v2501_v16 = vsub.f32 %v2345_v52, %v2491_v15 }
 0x461   : > { %v2505_v17 = vmul.f32 1.442695, %v2501_v16 }
 0x463   : > { %5241 = vpow2.f32 %v2505_v17 }
 0x466   : > { %v2494_v18 = vpop.xlane.xlu1 %2493 }
 0x467   : > { %v2502_v19 = vsub.f32 %v2391_v59, %v2494_v18 }
 0x469   : > { %v2507_v21 = vmul.f32 1.442695, %v2502_v19 }
 0x46a   : > { %v1116_v26 = vpop.permute.xlu1 %1115 }
 0x46b   : > { %5243 = vpow2.f32 %v2507_v21 }
 0x46d   : > { %v6355_v22 = vpop.eup %5241 }
 0x46e   : > { %v2497_v23 = vpop.xlane.xlu0 %2496  ;;  %v2513_v24 = vsel %vm2488_vm4, %v6355_v22, 0.0  ;;  %v1122_v29 = vpop.permute.xlu1 %1121 }
 0x46f   : > { %v2503_v25 = vsub.f32 %v2437_v3, %v2497_v23  ;;  %2514 = vadd.xlane.f32.xlu1 %v2513_v24  ;;  %v1140_v33 = vcombine.low %v1116_v26, %v1122_v29  ;;  %v1141_v34 = vcombine.high %v1116_v26, %v1122_v29 }
 0x471   : > { %v2509_v27 = vmul.f32 1.442695, %v2503_v25  ;;  %v1148_v40 = vrot.slane %v1140_v33, %v6272_v5  ;;  %v1155_v42 = vrot.slane %v1141_v34, %v6272_v5 }
 0x473   : > { %5245 = vpow2.f32 %v2509_v27 }
 0x475   : > { %v6359_v28 = vpop.eup %5243 }
 0x476   : > { %v2500_v30 = vpop.xlane.xlu0 %2499  ;;  %v2516_v31 = vsel %vm2488_vm4, %v6359_v28, 0.0 }
 0x477   : > { %v2504_v32 = vsub.f32 %v2483_v54, %v2500_v30  ;;  %2517 = vadd.xlane.f32.xlu0 %v2516_v31 }
 0x479   : > { %v2511_v35 = vmul.f32 1.442695, %v2504_v32 }
 0x47a   : > { %v1119_v36 = vpop.permute.xlu0 %1118 }
 0x47b   : > { %5247 = vpow2.f32 %v2511_v35  ;;  %v1124_v37 = vcombine.low %v6231_v41, %v1119_v36  ;;  %v1125_v38 = vcombine.high %v6231_v41, %v1119_v36 }
 0x47d   : > { %v6365_v39 = vpop.eup %5245  ;;  %v1132_v43 = vrot.slane %v1124_v37, %v6272_v5  ;;  %v1139_v48 = vrot.slane %v1125_v38, %v6272_v5 }
 0x47e   : > { %v2519_v49 = vsel %vm2488_vm4, %v6365_v39, 0.0 }
 0x47f   : > { %v1156_v50 = vcombine.low %v1132_v43, %v1148_v40  ;;  %v1157_v51 = vcombine.high %v1132_v43, %v1148_v40  ;;  %v1172_v52 = vcombine.low %v1139_v48, %v1155_v42  ;;  %v1173_v53 = vcombine.high %v1139_v48, %v1155_v42  ;;  %2520 = vadd.xlane.f32.xlu0 %v2519_v49 }
 0x481   : > { %v1164_v41 = vrot.slane %v1156_v50, %v6275_v11  ;;  %v1171_v55 = vrot.slane %v1157_v51, %v6275_v11  ;;  %v1180_v56 = vrot.slane %v1172_v52, %v6275_v11  ;;  %v1187_v57 = vrot.slane %v1173_v53, %v6275_v11 }
 0x483   : > { %v1192_v58 = vcombine.low %v1164_v41, %v1171_v55  ;;  %v4573_v59 = vcombine.high %v1164_v41, %v1171_v55  ;;  %v1208_v61 = vcombine.low %v1180_v56, %v1187_v57  ;;  %v4574_v62 = vcombine.high %v1180_v56, %v1187_v57  ;;  %v5178_v41 = vld [vmem:[#allocation8 + $0x8] sm:$0xff]   ;;  %v5179_v55 = vld [vmem:[#allocation8 + $0x10] sm:$0xff]   ;;  %v5180_v56 = vld [vmem:[#allocation8 + $0x18] sm:$0xff]  }
 0x484   : > { %v5181_v57 = vld [vmem:[#allocation8 + $0x20] sm:$0xff]  }
 0x485   : > { %v6377_v63 = vpop.eup %5247  ;;  %v1199_v60 = vrot.slane %v1192_v58, %v6272_v5  ;;  %v1207_v2 = vrot.slane %v4573_v59, %v6272_v5  ;;  %v1215_v3 = vrot.slane %v1208_v61, %v6272_v5  ;;  %v1223_v4 = vrot.slane %v4574_v62, %v6272_v5  ;;  %v5182_v58 = vld [vmem:[#allocation8 + $0x28] sm:$0xff]  }
 0x486   : > { %v2522_v6 = vsel %vm2488_vm4, %v6377_v63, 0.0 }
 0x487   : > { %v1224_v7 = vcombine.low %v1199_v60, %v1207_v2  ;;  %v1225_v8 = vcombine.high %v1199_v60, %v1207_v2  ;;  %v1240_v9 = vcombine.low %v1215_v3, %v1223_v4  ;;  %v1241_v54 = vcombine.high %v1215_v3, %v1223_v4  ;;  %2523 = vadd.xlane.f32.xlu1 %v2522_v6 }
 0x489   : > { %v1232_v10 = vrot.slane %v1224_v7, %v6275_v11  ;;  %v1239_v12 = vrot.slane %v1225_v8, %v6275_v11  ;;  %v1248_v13 = vrot.slane %v1240_v9, %v6275_v11  ;;  %v1255_v14 = vrot.slane %v1241_v54, %v6275_v11 }
 0x48b   : > { %v1256_v15 = vcombine.low %v1232_v10, %v1248_v13  ;;  %v1257_v16 = vcombine.high %v1232_v10, %v1248_v13  ;;  %v1258_v17 = vcombine.low %v1239_v12, %v1255_v14  ;;  %v1259_v18 = vcombine.high %v1239_v12, %v1255_v14 }
 0x48d   : > { %v1260_v19 = vpack.c.bf16 %v1256_v15, %v1256_v15  ;;  %v1261_v21 = vpack.c.bf16 %v1257_v16, %v1257_v16  ;;  %v1262_v23 = vpack.c.bf16 %v1258_v17, %v1258_v17  ;;  %v1263_v24 = vpack.c.bf16 %v1259_v18, %v1259_v18 }
 0x48f   : > { %1264 = vst.msk [vmem:[#allocation3] sm:$0xf] %vm1109_vm1, %v1260_v19  ;;  %1265 = vst.msk [vmem:[#allocation3 + $0x4] sm:$0xf] %vm1109_vm1, %v1261_v21 }
 0x490   : > { %1266 = vst.msk [vmem:[#allocation3 + $0x8] sm:$0xf] %vm1109_vm1, %v1262_v23  ;;  %1267 = vst.msk [vmem:[#allocation3 + $0xc] sm:$0xf] %vm1109_vm1, %v1263_v24 }
 0x496   : > { %v2043_v25 = vld [vmem:[#allocation3] sm:$0xf]  ;;  %v2044_v32 = vld [vmem:[#allocation3 + $0x4] sm:$0xf] }
 0x497   : > { %v2542_v26 = vsel %vm2540_vm5, %v2043_v25, 0  ;;  %v2588_v34 = vsel %vm2540_vm5, %v2044_v32, 0  ;;  %v2045_v38 = vld [vmem:[#allocation3 + $0x8] sm:$0xf]  ;;  %v2046_v49 = vld [vmem:[#allocation3 + $0xc] sm:$0xf] }
 0x498   : > { %4833 = vmatpush3.bf16.msra.mxu1 %v2542_v26  ;;  %v2634_v42 = vsel %vm2540_vm5, %v2045_v38, 0  ;;  %v5184_v38 = vld [vmem:[#allocation8 + $0x38] sm:$0xff]  }
 0x499   : > { %4838 = vmatprep.subr.bf16.mxu1 %v5685_v20 }
 0x4fc   : > { %v2515_v27 = vpop.xlane.xlu1 %2514 }
 0x4fd   : > { %5249 = vrcp.f32 %v2515_v27 }
 0x504   : > { %v2518_v29 = vpop.xlane.xlu0 %2517 }
 0x505   : > { %5251 = vrcp.f32 %v2518_v29  ;;  %v5183_v29 = vld [vmem:[#allocation8 + $0x30] sm:$0xff]  }
 0x507   : > { %v5250_v30 = vpop.eup %5249 }
 0x508   : > { %v2529_v31 = vmul.f32 %v5250_v30, %v6355_v22 }
 0x50a   : > { %v2533_v33 = vpack.c.bf16 %v2529_v31, %v2529_v31 }
 0x50c   : > { %4835 = vmatmul.mubr.msk.bf16.vlgmr.msra.gmra.mrb[20].mxu1 %vm2488_vm4, %v2533_v33  ;;  %v2521_v35 = vpop.xlane.xlu0 %2520 }
 0x50d   : > { %4839 = vmatpush3.bf16.msra.mxu1 %v2588_v34  ;;  %5253 = vrcp.f32 %v2521_v35  ;;  %4840 = vmatprep.mubr.msk.bf16.mxu1 %vm5686_vm0, %v5685_v20 }
 0x50e   : > { %4844 = vmatprep.subr.bf16.mxu1 %v5685_v20 }
 0x50f   : > { %v5252_v36 = vpop.eup %5251 }
 0x510   : > { %v2530_v37 = vmul.f32 %v5252_v36, %v6359_v28  ;;  %v2680_v28 = vsel %vm2540_vm5, %v2046_v49, 0 }
 0x512   : > { %v2534_v40 = vpack.c.bf16 %v2530_v37, %v2530_v37 }
 0x514   : > { %v2524_v22 = vpop.xlane.xlu1 %2523  ;;  %4841 = vmatmul.mubr.msk.bf16.vlgmr.msra.gmra.mrb[24].mxu1 %vm2488_vm4, %v2534_v40 }
 0x515   : > { %5255 = vrcp.f32 %v2524_v22  ;;  %4845 = vmatpush3.bf16.msra.mxu1 %v2634_v42  ;;  %4846 = vmatprep.mubr.msk.bf16.mxu1 %vm5686_vm0, %v5685_v20 }
 0x516   : > { %4850 = vmatprep.subr.bf16.mxu1 %v5685_v20 }
 0x517   : > { %v5254_v43 = vpop.eup %5253 }
 0x518   : > { %v2531_v48 = vmul.f32 %v5254_v43, %v6365_v39  ;;  %v5177_v39 = vld [vmem:[#allocation8] sm:$0xff]  }
 0x519   : > { %4857 = vmatpush3.bf16.msra.mxu0 %v5177_v39 }
 0x51a   : > { %v2535_v50 = vpack.c.bf16 %v2531_v48, %v2531_v48  ;;  %4858 = vmatprep.subr.bf16.mxu0 %v5685_v20 }
 0x51c   : > { %4847 = vmatmul.mubr.msk.bf16.vlgmr.msra.gmra.mrb[28].mxu1 %vm2488_vm4, %v2535_v50 }
 0x51d   : > { %4851 = vmatpush3.bf16.msra.mxu1 %v2680_v28  ;;  %4852 = vmatprep.mubr.msk.bf16.mxu1 %vm5686_vm0, %v5685_v20 }
 0x51e   : > { %4876 = vmatprep.subr.bf16.mxu1 %v5685_v20  ;;  %4859 = vmatpush3.bf16.msra.mxu0 %v5178_v41 }
 0x51f   : > { %v5256_v51 = vpop.eup %5255  ;;  %4860 = vmatprep.subr.bf16.mxu0 %v5685_v20 }
 0x520   : > { %v2532_v52 = vmul.f32 %v5256_v51, %v6377_v63 }
 0x522   : > { %v2536_v53 = vpack.c.bf16 %v2532_v52, %v2532_v52  ;;  %4861 = vmatpush3.bf16.msra.mxu0 %v5179_v55 }
 0x523   : > { %4862 = vmatprep.subr.bf16.mxu0 %v5685_v20 }
 0x524   : > { %4853 = vmatmul.mubr.msk.bf16.vlgmr.msra.gmra.mrb[32].mxu1 %vm2488_vm4, %v2536_v53 }
 0x525   : > { %4892 = vmatprep.mubr.msk.bf16.mxu1 %vm5686_vm0, %v5685_v20 }
 0x526   : > { %4863 = vmatpush3.bf16.msra.mxu0 %v5180_v56 }
 0x527   : > { %4864 = vmatprep.subr.bf16.mxu0 %v5685_v20 }
 0x52a   : > { %4865 = vmatpush3.bf16.msra.mxu0 %v5181_v57 }
 0x52b   : > { %4866 = vmatprep.subr.bf16.mxu0 %v5685_v20 }
 0x52e   : > { %4867 = vmatpush3.bf16.msra.mxu0 %v5182_v58 }
 0x52f   : > { %4868 = vmatprep.subr.bf16.mxu0 %v5685_v20 }
 0x532   : > { %4869 = vmatpush3.bf16.msra.mxu0 %v5183_v29 }
 0x533   : > { %4870 = vmatprep.subr.bf16.mxu0 %v5685_v20 }
 0x536   : > { %4871 = vmatpush3.bf16.msra.mxu0 %v5184_v38 }
 0x537   : > { %4896 = vmatprep.subr.bf16.mxu0 %v5685_v20 }
 0x5df   : > { %v2578_v59 = vpop.f32.mrb[20].mxu1 }
 0x5e0   : > { %v4836_v61 = vpop.f32.mrb[21].mxu1 }
 0x5e1   : > { %v2581_v62 = vpop.f32.mrb[22].mxu1 }
 0x5e2   : > { %v4837_v63 = vpop.f32.mrb[23].mxu1 }
 0x5e7   : > { %v2624_v60 = vpop.f32.mrb[24].mxu1 }
 0x5e8   : > { %v4842_v2 = vpop.f32.mrb[25].mxu1 }
 0x5e9   : > { %v2627_v3 = vpop.f32.mrb[26].mxu1 }
 0x5ea   : > { %v4843_v4 = vpop.f32.mrb[27].mxu1 }
 0x5eb   : > { %v5279_v4 = vld [vmem:[%s6178_s29] sm:$0xff] }
 0x5ef   : > { %v2670_v6 = vpop.f32.mrb[28].mxu1 }
 0x5f0   : > { %v2722_v7 = vcombine.low %v2578_v59, %v2670_v6  ;;  %v2723_v8 = vcombine.high %v2578_v59, %v2670_v6  ;;  %v4848_v9 = vpop.f32.mrb[29].mxu1 }
 0x5f1   : > { %v2673_v54 = vpop.f32.mrb[30].mxu1 }
 0x5f2   : > { %v4849_v10 = vpop.f32.mrb[31].mxu1  ;;  %v2730_v17 = vrot.slane %v2722_v7, %v6272_v5  ;;  %v2737_v18 = vrot.slane %v2723_v8, %v6272_v5  ;;  %v5185_v54 = vld [vmem:[#allocation10] sm:$0xff]  }
 0x5f3   : > { %4877 = vmatpush3.bf16.msra.mxu1 %v5185_v54  ;;  %v5186_v10 = vld [vmem:[#allocation10 + $0x8] sm:$0xff]  }
 0x5f4   : > { %4878 = vmatprep.subr.bf16.mxu1 %v5685_v20 }
 0x5f7   : > { %v2716_v12 = vpop.f32.mrb[32].mxu1  ;;  %4879 = vmatpush3.bf16.msra.mxu1 %v5186_v10 }
 0x5f8   : > { %v2738_v13 = vcombine.low %v2624_v60, %v2716_v12  ;;  %v2739_v14 = vcombine.high %v2624_v60, %v2716_v12  ;;  %v4854_v15 = vpop.f32.mrb[33].mxu1  ;;  %4880 = vmatprep.subr.bf16.mxu1 %v5685_v20 }
 0x5f9   : > { %v2719_v16 = vpop.f32.mrb[34].mxu1 }
 0x5fa   : > { %v2746_v19 = vrot.slane %v2738_v13, %v6272_v5  ;;  %v2753_v21 = vrot.slane %v2739_v14, %v6272_v5  ;;  %v4855_v23 = vpop.f32.mrb[35].mxu1  ;;  %v5187_v16 = vld [vmem:[#allocation10 + $0x10] sm:$0xff]  }
 0x5fb   : > { %4881 = vmatpush3.bf16.msra.mxu1 %v5187_v16  ;;  %v5192_v23 = vld [vmem:[#allocation10 + $0x38] sm:$0xff]  }
 0x5fc   : > { %v2754_v24 = vcombine.low %v2730_v17, %v2746_v19  ;;  %v2755_v25 = vcombine.high %v2730_v17, %v2746_v19  ;;  %v2770_v26 = vcombine.low %v2737_v18, %v2753_v21  ;;  %v2771_v27 = vcombine.high %v2737_v18, %v2753_v21  ;;  %4882 = vmatprep.subr.bf16.mxu1 %v5685_v20  ;;  %v5188_v17 = vld [vmem:[#allocation10 + $0x18] sm:$0xff]   ;;  %v5189_v18 = vld [vmem:[#allocation10 + $0x20] sm:$0xff]   ;;  %v5190_v19 = vld [vmem:[#allocation10 + $0x28] sm:$0xff]  }
 0x5fd   : > { %v5191_v21 = vld [vmem:[#allocation10 + $0x30] sm:$0xff]  }
 0x5fe   : > { %v2762_v30 = vrot.slane %v2754_v24, %v6275_v11  ;;  %v2769_v31 = vrot.slane %v2755_v25, %v6275_v11  ;;  %v2778_v32 = vrot.slane %v2770_v26, %v6275_v11  ;;  %v2785_v33 = vrot.slane %v2771_v27, %v6275_v11 }
 0x5ff   : > { %4883 = vmatpush3.bf16.msra.mxu1 %v5188_v17 }
 0x600   : > { %v2790_v34 = vcombine.low %v2762_v30, %v2769_v31  ;;  %v4617_v35 = vcombine.high %v2762_v30, %v2769_v31  ;;  %v2806_v36 = vcombine.low %v2778_v32, %v2785_v33  ;;  %v4618_v37 = vcombine.high %v2778_v32, %v2785_v33  ;;  %4884 = vmatprep.subr.bf16.mxu1 %v5685_v20 }
 0x602   : > { %v2797_v40 = vrot.slane %v2790_v34, %v6272_v5  ;;  %v2805_v22 = vrot.slane %v4617_v35, %v6272_v5  ;;  %v2813_v42 = vrot.slane %v2806_v36, %v6272_v5  ;;  %v2821_v43 = vrot.slane %v4618_v37, %v6272_v5 }
 0x603   : > { %4885 = vmatpush3.bf16.msra.mxu1 %v5189_v18 }
 0x604   : > { %v2823_v48 = vcombine.high %v2797_v40, %v2805_v22  ;;  %v2839_v49 = vcombine.high %v2813_v42, %v2821_v43  ;;  %v2822_v50 = vcombine.low %v2797_v40, %v2805_v22  ;;  %v2838_v28 = vcombine.low %v2813_v42, %v2821_v43  ;;  %4886 = vmatprep.subr.bf16.mxu1 %v5685_v20 }
 0x606   : > { %v2837_v51 = vrot.slane %v2823_v48, %v6275_v11  ;;  %v2853_v52 = vrot.slane %v2839_v49, %v6275_v11  ;;  %v2830_v53 = vrot.slane %v2822_v50, %v6275_v11  ;;  %v2846_v39 = vrot.slane %v2838_v28, %v6275_v11 }
 0x607   : > { %4887 = vmatpush3.bf16.msra.mxu1 %v5190_v19 }
 0x608   : > { %v2856_v41 = vcombine.low %v2837_v51, %v2853_v52  ;;  %v2855_v55 = vcombine.high %v2830_v53, %v2846_v39  ;;  %v2857_v56 = vcombine.high %v2837_v51, %v2853_v52  ;;  %v2854_v57 = vcombine.low %v2830_v53, %v2846_v39  ;;  %4888 = vmatprep.subr.bf16.mxu1 %v5685_v20 }
 0x60a   : > { %2863 = vrot.lane.b32.xlu1 %v2856_v41, %s5689_s27  ;;  %2859 = vrot.lane.b32.xlu0 %v2855_v55, %s5688_s0 }
 0x60b   : > { %4889 = vmatpush3.bf16.msra.mxu1 %v5191_v21 }
 0x60c   : > { %4890 = vmatprep.subr.bf16.mxu1 %v5685_v20 }
 0x60e   : > { %2867 = vrot.lane.b32.xlu1 %v2857_v56, %s5687_s6 }
 0x60f   : > { %4891 = vmatpush3.bf16.msra.mxu1 %v5192_v23 }
 0x610   : > { %4902 = vmatprep.subr.bf16.mxu1 %v5685_v20 }
 0x67c   : > { %v2864_v58 = vpop.permute.xlu1 %2863  ;;  %v2860_v59 = vpop.permute.xlu0 %2859 }
 0x67d   : > { %v2870_v61 = vsel %vm1706_vm2, %v2854_v57, %v2860_v59 }
 0x67e   : > { %v2872_v63 = vsel %vm2871_vm6, %v2870_v61, %v2864_v58 }
 0x680   : > { %v2868_v62 = vpop.permute.xlu1 %2867 }
 0x681   : > { %v2874_v60 = vsel %vm2873_vm7, %v2872_v63, %v2868_v62 }
 0x682   : > { %v2875_v2 = vpack.c.bf16 %v2874_v60, %v2874_v60 }
 0x684   : > { %4873 = vmatmul.mubr.bf16.vlgmr.msra.gmra.mrb[8].mxu0 %v2875_v2 }
 0x685   : > { %4898 = vmatprep.mubr.msk.bf16.mxu0 %vm5686_vm0, %v5685_v20 }
 0x757   : > { %v2958_v3 = vpop.f32.mrb[8].mxu0 }
 0x758   : > { %v2964_v6 = vadd.f32 %v5279_v4, %v2958_v3  ;;  %v4874_v7 = vpop.f32.mrb[9].mxu0 }
 0x759   : > { %v2961_v8 = vpop.f32.mrb[10].mxu0 }
 0x75a   : > { %2967 = vadd.xlane.f32.xlu0 %v2964_v6  ;;  %v4875_v9 = vpop.f32.mrb[11].mxu0 }
 0x770   : > { %1412 = vrot.lane.b32.xlu0 %v6335_v44, %s5687_s6 }
 0x774   : > { %1418 = vrot.lane.b32.xlu0 %v6335_v44, %s5689_s27 }
 0x778   : > { %1424 = vrot.lane.b32.xlu0 %v6335_v44, %s5688_s0 }
 0x7e7   : > { %v2968_v12 = vpop.xlane.xlu0 %2967 }
 0x7e8   : > { %v2970_v13 = vmul.f32 0.0078125, %v2968_v12 }
 0x7ea   : > { %v6458_v14 = vsub.f32 %v2964_v6, %v2970_v13  ;;  %v4627_v6 = vld [vmem:[#allocation16] ss:$0 sm:$0xff]  ;;  %v4628_v13 = vld [vmem:[#allocation17] ss:$0 sm:$0xff] }
 0x7eb   : > { %v1413_v24 = vpop.permute.xlu0 %1412 }
 0x7ec   : > { %v2972_v15 = vmul.f32 %v6458_v14, %v6458_v14 }
 0x7ee   : > { %2973 = vadd.xlane.f32.xlu1 %v2972_v15 }
 0x7ef   : > { %v1419_v25 = vpop.permute.xlu0 %1418 }
 0x7f0   : > { %v1430_v29 = vcombine.low %v6335_v44, %v1419_v25  ;;  %v1431_v31 = vcombine.high %v6335_v44, %v1419_v25 }
 0x7f2   : > { %v1438_v33 = vrot.slane %v1430_v29, %v6272_v5  ;;  %v1445_v37 = vrot.slane %v1431_v31, %v6272_v5 }
 0x7f3   : > { %v1425_v26 = vpop.permute.xlu0 %1424 }
 0x7f4   : > { %v1446_v27 = vcombine.low %v1413_v24, %v1425_v26  ;;  %v1447_v30 = vcombine.high %v1413_v24, %v1425_v26 }
 0x7f6   : > { %v1454_v32 = vrot.slane %v1446_v27, %v6272_v5  ;;  %v1461_v34 = vrot.slane %v1447_v30, %v6272_v5 }
 0x7f8   : > { %v1462_v38 = vcombine.low %v1438_v33, %v1454_v32  ;;  %v1463_v40 = vcombine.high %v1438_v33, %v1454_v32  ;;  %v1478_v42 = vcombine.low %v1445_v37, %v1461_v34  ;;  %v1479_v43 = vcombine.high %v1445_v37, %v1461_v34 }
 0x7fa   : > { %v1470_v49 = vrot.slane %v1462_v38, %v6275_v11  ;;  %v1477_v44 = vrot.slane %v1463_v40, %v6275_v11  ;;  %v1486_v50 = vrot.slane %v1478_v42, %v6275_v11  ;;  %v1493_v28 = vrot.slane %v1479_v43, %v6275_v11 }
 0x7fc   : > { %v1566_v52 = vcombine.low %v1470_v49, %v1477_v44  ;;  %v4591_v53 = vcombine.high %v1470_v49, %v1477_v44  ;;  %v1582_v55 = vcombine.low %v1486_v50, %v1493_v28  ;;  %v4592_v56 = vcombine.high %v1486_v50, %v1493_v28 }
 0x7fe   : > { %v1573_v61 = vrot.slane %v1566_v52, %v6272_v5  ;;  %v1581_v62 = vrot.slane %v4591_v53, %v6272_v5  ;;  %v1597_v7 = vrot.slane %v4592_v56, %v6272_v5 }
 0x7ff   : > { %1414 = vrot.lane.b32.xlu1 %v6339_v46, %s5687_s6 }
 0x800   : > { %v1598_v15 = vcombine.low %v1573_v61, %v1581_v62  ;;  %v1599_v23 = vcombine.high %v1573_v61, %v1581_v62 }
 0x802   : > { %v1613_v37 = vrot.slane %v1599_v23, %v6275_v11 }
 0x803   : > { %1420 = vrot.lane.b32.xlu1 %v6339_v46, %s5689_s27 }
 0x807   : > { %1426 = vrot.lane.b32.xlu1 %v6339_v46, %s5688_s0 }
 0x87b   : > { %v2974_v35 = vpop.xlane.xlu1 %2973 }
 0x87c   : > { %v2975_v36 = vmul.f32 0.0078125, %v2974_v35 }
 0x87e   : > { %v2976_v22 = vadd.f32 1e-05, %v2975_v36  ;;  %v1606_v36 = vrot.slane %v1598_v15, %v6275_v11 }
 0x87f   : > { %v1415_v48 = vpop.permute.xlu1 %1414 }
 0x880   : > { %5257 = vrsqrt.f32 %v2976_v22 }
 0x883   : > { %v1421_v51 = vpop.permute.xlu1 %1420 }
 0x884   : > { %v1498_v39 = vcombine.low %v6339_v46, %v1421_v51  ;;  %v1499_v41 = vcombine.high %v6339_v46, %v1421_v51  ;;  %v1589_v46 = vrot.slane %v1582_v55, %v6272_v5 }
 0x886   : > { %v1506_v60 = vrot.slane %v1498_v39, %v6272_v5  ;;  %v1513_v2 = vrot.slane %v1499_v41, %v6272_v5  ;;  %v1614_v24 = vcombine.low %v1589_v46, %v1597_v7  ;;  %v1615_v25 = vcombine.high %v1589_v46, %v1597_v7 }
 0x887   : > { %v1427_v57 = vpop.permute.xlu1 %1426 }
 0x888   : > { %v1514_v58 = vcombine.low %v1415_v48, %v1427_v57  ;;  %v1515_v59 = vcombine.high %v1415_v48, %v1427_v57  ;;  %v1622_v38 = vrot.slane %v1614_v24, %v6275_v11  ;;  %v1629_v40 = vrot.slane %v1615_v25, %v6275_v11 }
 0x88a   : > { %v5258_v63 = vpop.eup %5257  ;;  %v1522_v3 = vrot.slane %v1514_v58, %v6272_v5  ;;  %v1529_v4 = vrot.slane %v1515_v59, %v6272_v5  ;;  %v1630_v51 = vcombine.low %v1606_v36, %v1622_v38  ;;  %v1631_v52 = vcombine.high %v1606_v36, %v1622_v38 }
 0x88b   : > { %v2978_v8 = vmul.f32 %v5258_v63, %v6458_v14  ;;  %v1632_v53 = vcombine.low %v1613_v37, %v1629_v40  ;;  %v1633_v39 = vcombine.high %v1613_v37, %v1629_v40 }
 0x88c   : > { %v1530_v9 = vcombine.low %v1506_v60, %v1522_v3  ;;  %v1531_v54 = vcombine.high %v1506_v60, %v1522_v3  ;;  %v1546_v10 = vcombine.low %v1513_v2, %v1529_v4  ;;  %v1547_v12 = vcombine.high %v1513_v2, %v1529_v4 }
 0x88d   : > { %v2985_v16 = vmul.f32 %v4627_v6, %v2978_v8 }
 0x88e   : > { %v1538_v17 = vrot.slane %v1530_v9, %v6275_v11  ;;  %v1545_v18 = vrot.slane %v1531_v54, %v6275_v11  ;;  %v1554_v19 = vrot.slane %v1546_v10, %v6275_v11  ;;  %v1561_v21 = vrot.slane %v1547_v12, %v6275_v11 }
 0x88f   : > { %v6499_v26 = vadd.f32 %v4628_v13, %v2985_v16 }
 0x890   : > { %v1634_v14 = vcombine.low %v1538_v17, %v1545_v18  ;;  %v4593_v27 = vcombine.high %v1538_v17, %v1545_v18  ;;  %v1650_v29 = vcombine.low %v1554_v19, %v1561_v21  ;;  %v4594_v30 = vcombine.high %v1554_v19, %v1561_v21 }
 0x891   : > { %v3033_v31 = vpack.c.bf16 %v6499_v26, %v6499_v26 }
 0x892   : > { %v1641_v32 = vrot.slane %v1634_v14, %v6272_v5  ;;  %v1649_v33 = vrot.slane %v4593_v27, %v6272_v5  ;;  %v1657_v34 = vrot.slane %v1650_v29, %v6272_v5  ;;  %v1665_v35 = vrot.slane %v4594_v30, %v6272_v5 }
 0x893   : > { %4893 = vmatmul.mubr.bf16.vlgmr.msra.gmra.mrb[36].mxu1 %v3033_v31 }
 0x894   : > { %v1666_v22 = vcombine.low %v1641_v32, %v1649_v33  ;;  %v1667_v42 = vcombine.high %v1641_v32, %v1649_v33  ;;  %v1682_v43 = vcombine.low %v1657_v34, %v1665_v35  ;;  %v1683_v48 = vcombine.high %v1657_v34, %v1665_v35  ;;  %4904 = vmatprep.mubr.msk.bf16.mxu1 %vm5686_vm0, %v5685_v20 }
 0x896   : > { %v1674_v49 = vrot.slane %v1666_v22, %v6275_v11  ;;  %v1681_v44 = vrot.slane %v1667_v42, %v6275_v11  ;;  %v1690_v50 = vrot.slane %v1682_v43, %v6275_v11  ;;  %v1697_v28 = vrot.slane %v1683_v48, %v6275_v11 }
 0x898   : > { %v1698_v41 = vcombine.low %v1674_v49, %v1690_v50  ;;  %v1699_v55 = vcombine.high %v1674_v49, %v1690_v50  ;;  %v1700_v56 = vcombine.low %v1681_v44, %v1697_v28  ;;  %v1701_v57 = vcombine.high %v1681_v44, %v1697_v28 }
 0x89a   : > { %v1702_v58 = vpack.c.bf16 %v1698_v41, %v1630_v51  ;;  %v1703_v59 = vpack.c.bf16 %v1699_v55, %v1631_v52  ;;  %v1704_v61 = vpack.c.bf16 %v1700_v56, %v1632_v53  ;;  %v1705_v62 = vpack.c.bf16 %v1701_v57, %v1633_v39 }
 0x89c   : > { %1707 = vst.msk [vmem:[#allocation4] sm:$0xff] %vm1706_vm2, %v1702_v58  ;;  %1708 = vst.msk [vmem:[#allocation4 + $0x8] sm:$0xff] %vm1706_vm2, %v1703_v59 }
 0x89d   : > { %1709 = vst.msk [vmem:[#allocation4 + $0x10] sm:$0xff] %vm1706_vm2, %v1704_v61  ;;  %1710 = vst.msk [vmem:[#allocation4 + $0x18] sm:$0xff] %vm1706_vm2, %v1705_v62 }
 0x8a3   : > { %v3009_v63 = vld [vmem:[#allocation4] sm:$0xff]  ;;  %v3010_v60 = vld [vmem:[#allocation4 + $0x8] sm:$0xff] }
 0x8a4   : > { %v3283_v2 = vsel %vm1706_vm2, %v3009_v63, 0  ;;  %v3329_v3 = vsel %vm1706_vm2, %v3010_v60, 0  ;;  %v3011_v51 = vld [vmem:[#allocation4 + $0x10] sm:$0xff]  ;;  %v3012_v52 = vld [vmem:[#allocation4 + $0x18] sm:$0xff]  ;;  %v4639_v63 = vld [vmem:[%s807_s8] ss:$0 sm:$0xff] }
 0x8a5   : > { %4897 = vmatpush3.bf16.xpose.msra.mxu0 %v3283_v2  ;;  %4903 = vmatpush3.bf16.xpose.msra.mxu1 %v3329_v3  ;;  %v3375_v56 = vsel %vm1706_vm2, %v3011_v51, 0  ;;  %v3421_v57 = vsel %vm1706_vm2, %v3012_v52, 0 }
 0x8a6   : > { %4908 = vmatprep.subr.bf16.mxu0 %v5685_v20  ;;  %4914 = vmatprep.subr.bf16.mxu1 %v5685_v20 }
 0x966   : > { %v3116_v4 = vpop.f32.mrb[36].mxu1 }
 0x967   : > { %v3122_v6 = vmul.f32 0.17677669, %v3116_v4  ;;  %v4894_v46 = vpop.f32.mrb[37].mxu1 }
 0x968   : > { %v3119_v7 = vpop.f32.mrb[38].mxu1 }
 0x969   : > { %3127 = vrot.lane.b32.xlu1 %v3122_v6, %s5689_s27  ;;  %3124 = vrot.lane.b32.xlu0 %v3122_v6, %s5687_s6  ;;  %v4895_v8 = vpop.f32.mrb[39].mxu1 }
 0x96d   : > { %3130 = vrot.lane.b32.xlu0 %v3122_v6, %s5688_s0 }
 0x9db   : > { %v3128_v9 = vpop.permute.xlu1 %3127  ;;  %v3125_v54 = vpop.permute.xlu0 %3124 }
 0x9dc   : > { %v3133_v10 = vcombine.low %v3122_v6, %v3128_v9  ;;  %v3134_v12 = vcombine.high %v3122_v6, %v3128_v9 }
 0x9de   : > { %v3141_v17 = vrot.slane %v3133_v10, %v6272_v5  ;;  %v3148_v18 = vrot.slane %v3134_v12, %v6272_v5 }
 0x9df   : > { %v3131_v13 = vpop.permute.xlu0 %3130 }
 0x9e0   : > { %v3149_v15 = vcombine.low %v3125_v54, %v3131_v13  ;;  %v3150_v16 = vcombine.high %v3125_v54, %v3131_v13 }
 0x9e2   : > { %v3157_v19 = vrot.slane %v3149_v15, %v6272_v5  ;;  %v3164_v21 = vrot.slane %v3150_v16, %v6272_v5 }
 0x9e4   : > { %v3165_v23 = vcombine.low %v3141_v17, %v3157_v19  ;;  %v3166_v24 = vcombine.high %v3141_v17, %v3157_v19  ;;  %v3181_v25 = vcombine.low %v3148_v18, %v3164_v21  ;;  %v3182_v14 = vcombine.high %v3148_v18, %v3164_v21 }
 0x9e6   : > { %v3173_v27 = vrot.slane %v3165_v23, %v6275_v11  ;;  %v3180_v29 = vrot.slane %v3166_v24, %v6275_v11  ;;  %v3189_v30 = vrot.slane %v3181_v25, %v6275_v11  ;;  %v3196_v31 = vrot.slane %v3182_v14, %v6275_v11 }
 0x9e8   : > { %v3201_v32 = vcombine.low %v3173_v27, %v3180_v29  ;;  %v4637_v33 = vcombine.high %v3173_v27, %v3180_v29  ;;  %v3217_v34 = vcombine.low %v3189_v30, %v3196_v31  ;;  %v4638_v35 = vcombine.high %v3189_v30, %v3196_v31 }
 0x9ea   : > { %v3208_v36 = vrot.slane %v3201_v32, %v6272_v5  ;;  %v3216_v37 = vrot.slane %v4637_v33, %v6272_v5  ;;  %v3224_v38 = vrot.slane %v3217_v34, %v6272_v5  ;;  %v3232_v40 = vrot.slane %v4638_v35, %v6272_v5 }
 0x9ec   : > { %v3233_v22 = vcombine.low %v3208_v36, %v3216_v37  ;;  %v3249_v42 = vcombine.low %v3224_v38, %v3232_v40  ;;  %v3234_v43 = vcombine.high %v3208_v36, %v3216_v37  ;;  %v3250_v48 = vcombine.high %v3224_v38, %v3232_v40 }
 0x9ee   : > { %v3241_v49 = vrot.slane %v3233_v22, %v6275_v11  ;;  %v3257_v44 = vrot.slane %v3249_v42, %v6275_v11  ;;  %v3248_v41 = vrot.slane %v3234_v43, %v6275_v11  ;;  %v3264_v55 = vrot.slane %v3250_v48, %v6275_v11 }
 0x9f0   : > { %v3265_v50 = vcombine.low %v3241_v49, %v3257_v44  ;;  %v3266_v28 = vcombine.high %v3241_v49, %v3257_v44  ;;  %v3267_v58 = vcombine.low %v3248_v41, %v3264_v55  ;;  %v3268_v59 = vcombine.high %v3248_v41, %v3264_v55 }
 0x9f2   : > { %v3269_v53 = vpack.c.bf16 %v3265_v50, %v3265_v50  ;;  %v3270_v39 = vpack.c.bf16 %v3266_v28, %v3266_v28  ;;  %v3271_v61 = vpack.c.bf16 %v3267_v58, %v3267_v58  ;;  %v3272_v62 = vpack.c.bf16 %v3268_v59, %v3268_v59 }
 0x9f4   : > { %4899 = vmatmul.mubr.msk.bf16.vlgmr.msra.gmra.mrb[12].mxu0 %vm1706_vm2, %v3269_v53  ;;  %4905 = vmatmul.mubr.msk.bf16.vlgmr.msra.gmra.mrb[40].mxu1 %vm1706_vm2, %v3270_v39 }
 0x9f5   : > { %4909 = vmatpush3.bf16.xpose.msra.mxu0 %v3375_v56  ;;  %4915 = vmatpush3.bf16.xpose.msra.mxu1 %v3421_v57 }
 0x9f6   : > { %4910 = vmatprep.mubr.msk.bf16.mxu0 %vm5686_vm0, %v5685_v20  ;;  %4916 = vmatprep.mubr.msk.bf16.mxu1 %vm5686_vm0, %v5685_v20 }
 0x9f7   : > { %4920 = vmatprep.subr.bf16.mxu0 %v5685_v20  ;;  %4926 = vmatprep.subr.bf16.mxu1 %v5685_v20 }
 0x9fc   : > { %4911 = vmatmul.mubr.msk.bf16.vlgmr.msra.gmra.mrb[16].mxu0 %vm1706_vm2, %v3271_v61  ;;  %4917 = vmatmul.mubr.msk.bf16.vlgmr.msra.gmra.mrb[44].mxu1 %vm1706_vm2, %v3272_v62 }
 0x9fd   : > { %4922 = vmatprep.mubr.msk.bf16.mxu0 %vm5686_vm0, %v5685_v20  ;;  %4928 = vmatprep.mubr.msk.bf16.mxu1 %vm5686_vm0, %v5685_v20 }
 0xac7   : > { %v3319_v60 = vpop.f32.mrb[12].mxu0  ;;  %v3365_v2 = vpop.f32.mrb[40].mxu1 }
 0xac8   : > { %v3320_v3 = vadd.f32 %v4639_v63, %v3319_v60  ;;  %v3366_v4 = vadd.f32 %v4639_v63, %v3365_v2  ;;  %v4900_v6 = vpop.f32.mrb[13].mxu0  ;;  %v4906_v46 = vpop.f32.mrb[41].mxu1 }
 0xac9   : > { %v3322_v7 = vpop.f32.mrb[14].mxu0  ;;  %v3368_v8 = vpop.f32.mrb[42].mxu1 }
 0xaca   : > { %v4901_v9 = vpop.f32.mrb[15].mxu0  ;;  %v4907_v54 = vpop.f32.mrb[43].mxu1  ;;  %v3467_v10 = vsel %vm3463_vm8, %v3366_v4, -inf  ;;  %v3464_v12 = vsel %vm3463_vm8, %v3320_v3, -inf }
 0xacb   : > { %3468 = vmax.xlane.f32.xlu0 %v3467_v10  ;;  %3465 = vmax.xlane.f32.xlu1 %v3464_v12 }
 0xacf   : > { %v3411_v13 = vpop.f32.mrb[16].mxu0  ;;  %v3457_v15 = vpop.f32.mrb[44].mxu1 }
 0xad0   : > { %v3412_v16 = vadd.f32 %v4639_v63, %v3411_v13  ;;  %v3458_v17 = vadd.f32 %v4639_v63, %v3457_v15  ;;  %v4912_v18 = vpop.f32.mrb[17].mxu0  ;;  %v4918_v19 = vpop.f32.mrb[45].mxu1 }
 0xad1   : > { %v3414_v21 = vpop.f32.mrb[18].mxu0  ;;  %v3460_v23 = vpop.f32.mrb[46].mxu1 }
 0xad2   : > { %v4913_v24 = vpop.f32.mrb[19].mxu0  ;;  %v4919_v25 = vpop.f32.mrb[47].mxu1  ;;  %v3473_v14 = vsel %vm3463_vm8, %v3458_v17, -inf  ;;  %v3470_v27 = vsel %vm3463_vm8, %v3412_v16, -inf }
 0xad3   : > { %3474 = vmax.xlane.f32.xlu1 %v3473_v14  ;;  %3471 = vmax.xlane.f32.xlu0 %v3470_v27 }
 0xae4   : > { %1715 = vrot.lane.b32.xlu1 %v6341_v47, %s5687_s6 }
 0xae8   : > { %1719 = vrot.lane.b32.xlu1 %v6337_v45, %s5689_s27 }
 0xae9   : > { %1713 = vrot.lane.b32.xlu0 %v6337_v45, %s5687_s6 }
 0xaec   : > { %1725 = vrot.lane.b32.xlu1 %v6337_v45, %s5688_s0 }
 0xaed   : > { %1721 = vrot.lane.b32.xlu0 %v6341_v47, %s5689_s27 }
 0xaf1   : > { %1727 = vrot.lane.b32.xlu0 %v6341_v47, %s5688_s0 }
 0xb58   : > { %v3469_v29 = vpop.xlane.xlu0 %3468  ;;  %v3466_v30 = vpop.xlane.xlu1 %3465 }
 0xb59   : > { %v3477_v31 = vsub.f32 %v3366_v4, %v3469_v29  ;;  %v3476_v32 = vsub.f32 %v3320_v3, %v3466_v30 }
 0xb5b   : > { %v3482_v33 = vmul.f32 1.442695, %v3477_v31  ;;  %v3480_v34 = vmul.f32 1.442695, %v3476_v32 }
 0xb5d   : > { %5259 = vpow2.f32 %v3482_v33 }
 0xb5e   : > { %5261 = vpow2.f32 %v3480_v34 }
 0xb60   : > { %v3475_v35 = vpop.xlane.xlu1 %3474  ;;  %v3472_v36 = vpop.xlane.xlu0 %3471 }
 0xb61   : > { %v3479_v37 = vsub.f32 %v3458_v17, %v3475_v35  ;;  %v3478_v48 = vsub.f32 %v3412_v16, %v3472_v36 }
 0xb63   : > { %v3486_v38 = vmul.f32 1.442695, %v3479_v37  ;;  %v3484_v53 = vmul.f32 1.442695, %v3478_v48 }
 0xb64   : > { %v1716_v40 = vpop.permute.xlu1 %1715  ;;  %v1714_v22 = vpop.permute.xlu0 %1713 }
 0xb65   : > { %5263 = vpow2.f32 %v3486_v38 }
 0xb66   : > { %5265 = vpow2.f32 %v3484_v53 }
 0xb67   : > { %v6580_v42 = vpop.eup %5259 }
 0xb68   : > { %v6582_v43 = vpop.eup %5261  ;;  %v1720_v49 = vpop.permute.xlu1 %1719  ;;  %v3491_v50 = vsel %vm3463_vm8, %v6580_v42, 0.0 }
 0xb69   : > { %v1722_v44 = vpop.permute.xlu0 %1721  ;;  %3492 = vadd.xlane.f32.xlu0 %v3491_v50  ;;  %v1731_v28 = vcombine.low %v6337_v45, %v1720_v49  ;;  %v1732_v51 = vcombine.high %v6337_v45, %v1720_v49  ;;  %v3488_v52 = vsel %vm3463_vm8, %v6582_v43, 0.0 }
 0xb6a   : > { %3489 = vadd.xlane.f32.xlu1 %v3488_v52  ;;  %v1799_v39 = vcombine.low %v6341_v47, %v1722_v44  ;;  %v1800_v41 = vcombine.high %v6341_v47, %v1722_v44 }
 0xb6b   : > { %v1739_v62 = vrot.slane %v1731_v28, %v6272_v5  ;;  %v1746_v63 = vrot.slane %v1732_v51, %v6272_v5 }
 0xb6c   : > { %v1726_v55 = vpop.permute.xlu1 %1725  ;;  %v1807_v4 = vrot.slane %v1799_v39, %v6272_v5  ;;  %v1814_v6 = vrot.slane %v1800_v41, %v6272_v5 }
 0xb6d   : > { %v1728_v56 = vpop.permute.xlu0 %1727  ;;  %v1747_v57 = vcombine.low %v1714_v22, %v1726_v55  ;;  %v1748_v58 = vcombine.high %v1714_v22, %v1726_v55 }
 0xb6e   : > { %v1815_v59 = vcombine.low %v1716_v40, %v1728_v56  ;;  %v1816_v61 = vcombine.high %v1716_v40, %v1728_v56 }
 0xb6f   : > { %v6594_v45 = vpop.eup %5263  ;;  %v1755_v60 = vrot.slane %v1747_v57, %v6272_v5  ;;  %v1762_v2 = vrot.slane %v1748_v58, %v6272_v5 }
 0xb70   : > { %v1823_v3 = vrot.slane %v1815_v59, %v6272_v5  ;;  %v1830_v47 = vrot.slane %v1816_v61, %v6272_v5  ;;  %v3497_v46 = vsel %vm3463_vm8, %v6594_v45, 0.0  ;;  %v6620_v52 = vpop.eup %5265 }
 0xb71   : > { %v1763_v7 = vcombine.low %v1739_v62, %v1755_v60  ;;  %v1764_v8 = vcombine.high %v1739_v62, %v1755_v60  ;;  %v1779_v9 = vcombine.low %v1746_v63, %v1762_v2  ;;  %v1780_v54 = vcombine.high %v1746_v63, %v1762_v2  ;;  %3498 = vadd.xlane.f32.xlu1 %v3497_v46 }
 0xb72   : > { %v1831_v10 = vcombine.low %v1807_v4, %v1823_v3  ;;  %v1832_v12 = vcombine.high %v1807_v4, %v1823_v3  ;;  %v1847_v13 = vcombine.low %v1814_v6, %v1830_v47  ;;  %v1848_v15 = vcombine.high %v1814_v6, %v1830_v47 }
 0xb73   : > { %v1771_v16 = vrot.slane %v1763_v7, %v6275_v11  ;;  %v1778_v17 = vrot.slane %v1764_v8, %v6275_v11  ;;  %v1787_v18 = vrot.slane %v1779_v9, %v6275_v11  ;;  %v1794_v19 = vrot.slane %v1780_v54, %v6275_v11 }
 0xb74   : > { %v1839_v21 = vrot.slane %v1831_v10, %v6275_v11  ;;  %v1846_v23 = vrot.slane %v1832_v12, %v6275_v11  ;;  %v1855_v24 = vrot.slane %v1847_v13, %v6275_v11  ;;  %v1862_v25 = vrot.slane %v1848_v15, %v6275_v11 }
 0xb75   : > { %v1867_v14 = vcombine.low %v1771_v16, %v1778_v17  ;;  %v4595_v27 = vcombine.high %v1771_v16, %v1778_v17  ;;  %v1883_v29 = vcombine.low %v1787_v18, %v1794_v19  ;;  %v4596_v30 = vcombine.high %v1787_v18, %v1794_v19 }
 0xb76   : > { %v1935_v31 = vcombine.low %v1839_v21, %v1846_v23  ;;  %v4597_v32 = vcombine.high %v1839_v21, %v1846_v23  ;;  %v1951_v33 = vcombine.low %v1855_v24, %v1862_v25  ;;  %v4598_v34 = vcombine.high %v1855_v24, %v1862_v25 }
 0xb77   : > { %v1874_v35 = vrot.slane %v1867_v14, %v6272_v5  ;;  %v1882_v36 = vrot.slane %v4595_v27, %v6272_v5  ;;  %v1890_v37 = vrot.slane %v1883_v29, %v6272_v5  ;;  %v1898_v38 = vrot.slane %v4596_v30, %v6272_v5 }
 0xb78   : > { %v1942_v40 = vrot.slane %v1935_v31, %v6272_v5  ;;  %v1950_v22 = vrot.slane %v4597_v32, %v6272_v5  ;;  %v1958_v48 = vrot.slane %v1951_v33, %v6272_v5  ;;  %v1966_v49 = vrot.slane %v4598_v34, %v6272_v5 }
 0xb79   : > { %v1899_v44 = vcombine.low %v1874_v35, %v1882_v36  ;;  %v1900_v50 = vcombine.high %v1874_v35, %v1882_v36  ;;  %v1915_v28 = vcombine.low %v1890_v37, %v1898_v38  ;;  %v1916_v51 = vcombine.high %v1890_v37, %v1898_v38  ;;  %v5193_v36 = vld [vmem:[#allocation11] sm:$0xff]   ;;  %v5195_v37 = vld [vmem:[#allocation11 + $0x10] sm:$0xff]  }
 0xb7a   : > { %v1967_v53 = vcombine.low %v1942_v40, %v1950_v22  ;;  %v1968_v39 = vcombine.high %v1942_v40, %v1950_v22  ;;  %v1983_v41 = vcombine.low %v1958_v48, %v1966_v49  ;;  %v1984_v55 = vcombine.high %v1958_v48, %v1966_v49  ;;  %v5197_v38 = vld [vmem:[#allocation11 + $0x20] sm:$0xff]   ;;  %v5198_v40 = vld [vmem:[#allocation11 + $0x28] sm:$0xff]  }
 0xb7b   : > { %v1907_v56 = vrot.slane %v1899_v44, %v6275_v11  ;;  %v1914_v57 = vrot.slane %v1900_v50, %v6275_v11  ;;  %v1923_v58 = vrot.slane %v1915_v28, %v6275_v11  ;;  %v1930_v59 = vrot.slane %v1916_v51, %v6275_v11 }
 0xb7c   : > { %v1975_v61 = vrot.slane %v1967_v53, %v6275_v11  ;;  %v1982_v62 = vrot.slane %v1968_v39, %v6275_v11  ;;  %v1991_v63 = vrot.slane %v1983_v41, %v6275_v11  ;;  %v1998_v60 = vrot.slane %v1984_v55, %v6275_v11 }
 0xb7d   : > { %v1931_v2 = vcombine.low %v1907_v56, %v1923_v58  ;;  %v1932_v3 = vcombine.high %v1907_v56, %v1923_v58  ;;  %v1933_v47 = vcombine.low %v1914_v57, %v1930_v59  ;;  %v1934_v4 = vcombine.high %v1914_v57, %v1930_v59 }
 0xb7e   : > { %v1999_v6 = vcombine.low %v1975_v61, %v1991_v63  ;;  %v2000_v46 = vcombine.high %v1975_v61, %v1991_v63  ;;  %v2001_v7 = vcombine.low %v1982_v62, %v1998_v60  ;;  %v2002_v8 = vcombine.high %v1982_v62, %v1998_v60 }
 0xb7f   : > { %v3494_v9 = vsel %vm3463_vm8, %v6620_v52, 0.0 }
 0xb80   : > { %v2003_v54 = vpack.c.bf16 %v1999_v6, %v1931_v2  ;;  %v2004_v10 = vpack.c.bf16 %v2000_v46, %v1932_v3  ;;  %v2005_v12 = vpack.c.bf16 %v2001_v7, %v1933_v47  ;;  %v2006_v13 = vpack.c.bf16 %v2002_v8, %v1934_v4  ;;  %3495 = vadd.xlane.f32.xlu0 %v3494_v9  ;;  %v5199_v6 = vld [vmem:[#allocation11 + $0x30] sm:$0xff]  }
 0xb82   : > { %2007 = vst.msk [vmem:[#allocation5] sm:$0xff] %vm1706_vm2, %v2003_v54  ;;  %2008 = vst.msk [vmem:[#allocation5 + $0x8] sm:$0xff] %vm1706_vm2, %v2004_v10 }
 0xb83   : > { %2009 = vst.msk [vmem:[#allocation5 + $0x10] sm:$0xff] %vm1706_vm2, %v2005_v12  ;;  %2010 = vst.msk [vmem:[#allocation5 + $0x18] sm:$0xff] %vm1706_vm2, %v2006_v13 }
 0xb89   : > { %v3013_v15 = vld [vmem:[#allocation5] sm:$0xff]  ;;  %v3014_v16 = vld [vmem:[#allocation5 + $0x8] sm:$0xff] }
 0xb8a   : > { %4921 = vmatpush3.bf16.msra.mxu0 %v3013_v15  ;;  %4927 = vmatpush3.bf16.msra.mxu1 %v3014_v16  ;;  %v3016_v29 = vld [vmem:[#allocation5 + $0x18] sm:$0xff]  ;;  %v3015_v30 = vld [vmem:[#allocation5 + $0x10] sm:$0xff] }
 0xb8b   : > { %4932 = vmatprep.subr.bf16.mxu0 %v5685_v20  ;;  %4938 = vmatprep.subr.bf16.mxu1 %v5685_v20  ;;  %v5200_v15 = vld [vmem:[#allocation11 + $0x38] sm:$0xff]  }
 0xbf6   : > { %v3493_v17 = vpop.xlane.xlu0 %3492 }
 0xbf7   : > { %5267 = vrcp.f32 %v3493_v17  ;;  %v3490_v18 = vpop.xlane.xlu1 %3489 }
 0xbf8   : > { %5269 = vrcp.f32 %v3490_v18 }
 0xbfe   : > { %v3499_v19 = vpop.xlane.xlu1 %3498 }
 0xbff   : > { %5271 = vrcp.f32 %v3499_v19 }
 0xc01   : > { %v5268_v21 = vpop.eup %5267 }
 0xc02   : > { %v3505_v23 = vmul.f32 %v5268_v21, %v6580_v42  ;;  %v5270_v24 = vpop.eup %5269 }
 0xc03   : > { %v3504_v25 = vmul.f32 %v5270_v24, %v6582_v43 }
 0xc04   : > { %v3509_v14 = vpack.c.bf16 %v3505_v23, %v3505_v23 }
 0xc05   : > { %v3508_v27 = vpack.c.bf16 %v3504_v25, %v3504_v25 }
 0xc06   : > { %4929 = vmatmul.mubr.msk.bf16.vlgmr.msra.gmra.mrb[48].mxu1 %vm3463_vm8, %v3509_v14 }
 0xc07   : > { %4939 = vmatpush3.bf16.msra.mxu1 %v3016_v29  ;;  %4940 = vmatprep.mubr.msk.bf16.mxu1 %vm5686_vm0, %v5685_v20 }
 0xc08   : > { %4923 = vmatmul.mubr.msk.bf16.vlgmr.msra.gmra.mrb[20].mxu0 %vm3463_vm8, %v3508_v27 }
 0xc09   : > { %v5272_v31 = vpop.eup %5271  ;;  %4933 = vmatpush3.bf16.msra.mxu0 %v3015_v30  ;;  %4934 = vmatprep.mubr.msk.bf16.mxu0 %vm5686_vm0, %v5685_v20 }
 0xc0a   : > { %v3507_v42 = vmul.f32 %v5272_v31, %v6594_v45  ;;  %4944 = vmatprep.subr.bf16.mxu0 %v5685_v20  ;;  %v5194_v45 = vld [vmem:[#allocation11 + $0x8] sm:$0xff]  }
 0xc0c   : > { %v3511_v43 = vpack.c.bf16 %v3507_v42, %v3507_v42 }
 0xc0d   : > { %v3496_v32 = vpop.xlane.xlu0 %3495 }
 0xc0e   : > { %5273 = vrcp.f32 %v3496_v32  ;;  %4941 = vmatmul.mubr.msk.bf16.vlgmr.msra.gmra.mrb[52].mxu1 %vm3463_vm8, %v3511_v43 }
 0xc0f   : > { %4093 = vmatprep.mubr.bf16.mxu1 %v5684_v0  ;;  %v5196_v0 = vld [vmem:[#allocation11 + $0x18] sm:$0xff]  }
 0xc18   : > { %v5274_v33 = vpop.eup %5273 }
 0xc19   : > { %v3506_v34 = vmul.f32 %v5274_v33, %v6620_v52 }
 0xc1b   : > { %v3510_v35 = vpack.c.bf16 %v3506_v34, %v3506_v34 }
 0xc1d   : > { %4935 = vmatmul.mubr.msk.bf16.vlgmr.msra.gmra.mrb[24].mxu0 %vm3463_vm8, %v3510_v35 }
 0xc1e   : > { %4960 = vmatprep.mubr.msk.bf16.mxu0 %vm5686_vm0, %v5685_v20  ;;  %4945 = vmatpush3.bf16.msra.mxu0 %v5193_v36 }
 0xc1f   : > { %4946 = vmatprep.subr.bf16.mxu0 %v5685_v20 }
 0xc22   : > { %4947 = vmatpush3.bf16.msra.mxu0 %v5194_v45 }
 0xc23   : > { %4948 = vmatprep.subr.bf16.mxu0 %v5685_v20 }
 0xc26   : > { %4949 = vmatpush3.bf16.msra.mxu0 %v5195_v37 }
 0xc27   : > { %4950 = vmatprep.subr.bf16.mxu0 %v5685_v20 }
 0xc2a   : > { %4951 = vmatpush3.bf16.msra.mxu0 %v5196_v0 }
 0xc2b   : > { %4952 = vmatprep.subr.bf16.mxu0 %v5685_v20 }
 0xc2e   : > { %4953 = vmatpush3.bf16.msra.mxu0 %v5197_v38 }
 0xc2f   : > { %4954 = vmatprep.subr.bf16.mxu0 %v5685_v20 }
 0xc32   : > { %4955 = vmatpush3.bf16.msra.mxu0 %v5198_v40 }
 0xc33   : > { %4956 = vmatprep.subr.bf16.mxu0 %v5685_v20 }
 0xc36   : > { %4957 = vmatpush3.bf16.msra.mxu0 %v5199_v6  ;;  %v5226_v6 = vld [vmem:[#allocation14] sm:$0xff]  }
 0xc37   : > { %4958 = vmatprep.subr.bf16.mxu0 %v5685_v20 }
 0xc3a   : > { %4959 = vmatpush3.bf16.msra.mxu0 %v5200_v15  ;;  %v5235_v15 = vld [vmem:[#allocation14 + $0x68] sm:$0xff]  }
 0xcd9   : > { %v3592_v22 = vpop.f32.mrb[48].mxu1 }
 0xcda   : > { %v4930_v48 = vpop.f32.mrb[49].mxu1 }
 0xcdb   : > { %v3549_v49 = vpop.f32.mrb[20].mxu0  ;;  %v3595_v44 = vpop.f32.mrb[50].mxu1 }
 0xcdc   : > { %v4924_v50 = vpop.f32.mrb[21].mxu0  ;;  %v4931_v28 = vpop.f32.mrb[51].mxu1 }
 0xcdd   : > { %v3552_v51 = vpop.f32.mrb[22].mxu0  ;;  %v5201_v50 = vld [vmem:[#allocation13] ss:$8 sps:$4 sm:$0xff]   ;;  %v5203_v28 = vld [vmem:[#allocation13 + $0x4] ss:$8 sps:$4 sm:$0xff]  }
 0xcde   : > { %v4925_v52 = vpop.f32.mrb[23].mxu0  ;;  %v5206_v51 = vld [vmem:[#allocation13 + $0x14] ss:$8 sps:$4 sm:$0xff]   ;;  %4061 = vmatprep.subr.bf16.mxu1 %v5203_v28 }
 0xcdf   : > { %4062 = vmatpush1.bf16.msra.mxu1 %v5201_v50  ;;  %v5204_v52 = vld [vmem:[#allocation13 + $0x10] ss:$8 sps:$4 sm:$0xff]  }
 0xce0   : > { %4063 = vmatprep.subr.bf16.mxu1 %v5206_v51 }
 0xce1   : > { %v3678_v53 = vpop.f32.mrb[52].mxu1 }
 0xce2   : > { %v3700_v39 = vcombine.low %v3592_v22, %v3678_v53  ;;  %v3701_v41 = vcombine.high %v3592_v22, %v3678_v53  ;;  %v4942_v55 = vpop.f32.mrb[53].mxu1  ;;  %v5209_v53 = vld [vmem:[#allocation13 + $0x24] ss:$8 sps:$4 sm:$0xff]  }
 0xce3   : > { %v3681_v56 = vpop.f32.mrb[54].mxu1  ;;  %4064 = vmatpush1.bf16.msra.mxu1 %v5204_v52 }
 0xce4   : > { %v4943_v57 = vpop.f32.mrb[55].mxu1  ;;  %v3708_v62 = vrot.slane %v3700_v39, %v6272_v5  ;;  %v3715_v63 = vrot.slane %v3701_v41, %v6272_v5  ;;  %v5207_v39 = vld [vmem:[#allocation13 + $0x20] ss:$8 sps:$4 sm:$0xff]   ;;  %4065 = vmatprep.subr.bf16.mxu1 %v5209_v53 }
 0xce5   : > { %v5212_v57 = vld [vmem:[#allocation13 + $0x34] ss:$8 sps:$4 sm:$0xff]  }
 0xce7   : > { %4066 = vmatpush1.bf16.msra.mxu1 %v5207_v39 }
 0xce8   : > { %4067 = vmatprep.subr.bf16.mxu1 %v5212_v57 }
 0xcf0   : > { %v3635_v58 = vpop.f32.mrb[24].mxu0 }
 0xcf1   : > { %v3684_v59 = vcombine.low %v3549_v49, %v3635_v58  ;;  %v3685_v61 = vcombine.high %v3549_v49, %v3635_v58  ;;  %v4936_v60 = vpop.f32.mrb[25].mxu0  ;;  %v5210_v58 = vld [vmem:[#allocation13 + $0x30] ss:$8 sps:$4 sm:$0xff]  }
 0xcf2   : > { %v3638_v2 = vpop.f32.mrb[26].mxu0  ;;  %4068 = vmatpush1.bf16.msra.mxu1 %v5210_v58  ;;  %v5221_v60 = vld [vmem:[#allocation13 + $0x64] ss:$8 sps:$4 sm:$0xff]  }
 0xcf3   : > { %v3692_v3 = vrot.slane %v3684_v59, %v6272_v5  ;;  %v3699_v47 = vrot.slane %v3685_v61, %v6272_v5  ;;  %v4937_v4 = vpop.f32.mrb[27].mxu0  ;;  %v5215_v59 = vld [vmem:[#allocation13 + $0x44] ss:$8 sps:$4 sm:$0xff]   ;;  %v5213_v61 = vld [vmem:[#allocation13 + $0x40] ss:$8 sps:$4 sm:$0xff]  }
 0xcf4   : > { %4069 = vmatprep.subr.bf16.mxu1 %v5215_v59  ;;  %v5219_v2 = vld [vmem:[#allocation13 + $0x60] ss:$8 sps:$4 sm:$0xff]  }
 0xcf5   : > { %v3716_v46 = vcombine.low %v3692_v3, %v3708_v62  ;;  %v3717_v7 = vcombine.high %v3692_v3, %v3708_v62  ;;  %v3732_v8 = vcombine.low %v3699_v47, %v3715_v63  ;;  %v3733_v9 = vcombine.high %v3699_v47, %v3715_v63  ;;  %v5218_v62 = vld [vmem:[#allocation13 + $0x54] ss:$8 sps:$4 sm:$0xff]   ;;  %v5216_v63 = vld [vmem:[#allocation13 + $0x50] ss:$8 sps:$4 sm:$0xff]   ;;  %v5225_v4 = vld [vmem:[#allocation14 + $0x40] sm:$0xff]  }
 0xcf6   : > { %4070 = vmatpush1.bf16.msra.mxu1 %v5213_v61  ;;  %v5224_v3 = vld [vmem:[#allocation13 + $0x74] ss:$8 sps:$4 sm:$0xff]   ;;  %v5222_v47 = vld [vmem:[#allocation13 + $0x70] ss:$8 sps:$4 sm:$0xff]   ;;  %4766 = vmatprep.subr.bf16.mxu0 %v5225_v4  ;;  %v4693_v61 = vld [vmem:[#allocation22] ss:$0 sm:$0xff] }
 0xcf7   : > { %v3724_v54 = vrot.slane %v3716_v46, %v6275_v11  ;;  %v3731_v10 = vrot.slane %v3717_v7, %v6275_v11  ;;  %v3740_v12 = vrot.slane %v3732_v8, %v6275_v11  ;;  %v3747_v13 = vrot.slane %v3733_v9, %v6275_v11  ;;  %4071 = vmatprep.subr.bf16.mxu1 %v5218_v62  ;;  %v5227_v46 = vld [vmem:[#allocation14 + $0x48] sm:$0xff]   ;;  %v5229_v8 = vld [vmem:[#allocation14 + $0x50] sm:$0xff]  }
 0xcf8   : > { %v5228_v7 = vld [vmem:[#allocation14 + $0x8] sm:$0xff]   ;;  %v5230_v9 = vld [vmem:[#allocation14 + $0x10] sm:$0xff]  }
 0xcf9   : > { %v3752_v16 = vcombine.low %v3724_v54, %v3731_v10  ;;  %v4648_v17 = vcombine.high %v3724_v54, %v3731_v10  ;;  %v3768_v18 = vcombine.low %v3740_v12, %v3747_v13  ;;  %v4649_v19 = vcombine.high %v3740_v12, %v3747_v13  ;;  %v5231_v54 = vld [vmem:[#allocation14 + $0x58] sm:$0xff]   ;;  %v5233_v12 = vld [vmem:[#allocation14 + $0x60] sm:$0xff]  }
 0xcfa   : > { %4072 = vmatpush1.bf16.msra.mxu1 %v5216_v63  ;;  %v5232_v10 = vld [vmem:[#allocation14 + $0x18] sm:$0xff]   ;;  %v5234_v13 = vld [vmem:[#allocation14 + $0x20] sm:$0xff]   ;;  %v4694_v63 = vld [vmem:[#allocation23] ss:$0 sm:$0xff] }
 0xcfb   : > { %v3759_v21 = vrot.slane %v3752_v16, %v6272_v5  ;;  %v3767_v23 = vrot.slane %v4648_v17, %v6272_v5  ;;  %v3775_v24 = vrot.slane %v3768_v18, %v6272_v5  ;;  %v3783_v25 = vrot.slane %v4649_v19, %v6272_v5  ;;  %4073 = vmatprep.subr.bf16.mxu1 %v5221_v60  ;;  %v5236_v16 = vld [vmem:[#allocation14 + $0x28] sm:$0xff]  }
 0xcfd   : > { %v3785_v14 = vcombine.high %v3759_v21, %v3767_v23  ;;  %v3801_v27 = vcombine.high %v3775_v24, %v3783_v25  ;;  %v3784_v29 = vcombine.low %v3759_v21, %v3767_v23  ;;  %v3800_v30 = vcombine.low %v3775_v24, %v3783_v25  ;;  %v4658_v23 = vld [vmem:[#allocation19] ss:$0 sm:$0xff]  ;;  %v4659_v25 = vld [vmem:[#allocation20] ss:$0 sm:$0xff] }
 0xcfe   : > { %4074 = vmatpush1.bf16.msra.mxu1 %v5219_v2 }
 0xcff   : > { %v3799_v20 = vrot.slane %v3785_v14, %v6275_v11  ;;  %v3815_v31 = vrot.slane %v3801_v27, %v6275_v11  ;;  %v3792_v42 = vrot.slane %v3784_v29, %v6275_v11  ;;  %v3808_v43 = vrot.slane %v3800_v30, %v6275_v11  ;;  %4075 = vmatprep.subr.bf16.mxu1 %v5224_v3  ;;  %v5237_v30 = vld [vmem:[#allocation14 + $0x70] sm:$0xff]  }
 0xd01   : > { %v3818_v32 = vcombine.low %v3799_v20, %v3815_v31  ;;  %v3817_v33 = vcombine.high %v3792_v42, %v3808_v43  ;;  %v3819_v34 = vcombine.high %v3799_v20, %v3815_v31  ;;  %v3816_v35 = vcombine.low %v3792_v42, %v3808_v43  ;;  %v5238_v20 = vld [vmem:[#allocation14 + $0x30] sm:$0xff]   ;;  %v5239_v31 = vld [vmem:[#allocation14 + $0x78] sm:$0xff]  }
 0xd02   : > { %4076 = vmatpush1.bf16.msra.mxu1 %v5222_v47  ;;  %v5240_v42 = vld [vmem:[#allocation14 + $0x38] sm:$0xff]   ;;  %v3973_v43 = vsub.s32 0, %v6269_v1 }
 0xd03   : > { %3825 = vrot.lane.b32.xlu1 %v3818_v32, %s5689_s27  ;;  %3821 = vrot.lane.b32.xlu0 %v3817_v33, %s5688_s0  ;;  %s6764_s27 = sld [smem:[#allocation43_spill]]  ;;  %v3977_v33 = vsub.s32 1, %v6269_v1 }
 0xd07   : > { %3829 = vrot.lane.b32.xlu1 %v3819_v34, %s5687_s6 }
 0xd09   : > { %v3969_v32 = vld [vmem:[%s6764_s27] sm:$0x3] }
 0xd0a   : > { %v3974_v34 = vrot.slane %v3969_v32, %v3973_v43 }
 0xd75   : > { %v3826_v5 = vpop.permute.xlu1 %3825  ;;  %v3822_v36 = vpop.permute.xlu0 %3821 }
 0xd76   : > { %v3832_v45 = vsel %vm1706_vm2, %v3816_v35, %v3822_v36  ;;  %v3978_v35 = vrot.slane %v3969_v32, %v3977_v33 }
 0xd77   : > { %v3833_v0 = vsel %vm2871_vm6, %v3832_v45, %v3826_v5 }
 0xd79   : > { %v3830_v37 = vpop.permute.xlu1 %3829 }
 0xd7a   : > { %v3834_v38 = vsel %vm2873_vm7, %v3833_v0, %v3830_v37 }
 0xd7b   : > { %v3835_v11 = vpack.c.bf16 %v3834_v38, %v3834_v38 }
 0xd7d   : > { %4961 = vmatmul.mubr.bf16.vlgmr.msra.gmra.mrb[28].mxu0 %v3835_v11 }
 0xd7e   : > { %4767 = vmatpush3.bf16.msra.mxu0 %v5226_v6 }
 0xd7f   : > { %4768 = vmatprep.subr.bf16.mxu0 %v5227_v46 }
 0xd82   : > { %4769 = vmatpush3.bf16.msra.mxu0 %v5228_v7 }
 0xd83   : > { %4770 = vmatprep.subr.bf16.mxu0 %v5229_v8 }
 0xd86   : > { %4771 = vmatpush3.bf16.msra.mxu0 %v5230_v9 }
 0xd87   : > { %4772 = vmatprep.subr.bf16.mxu0 %v5231_v54 }
 0xd8a   : > { %4773 = vmatpush3.bf16.msra.mxu0 %v5232_v10 }
 0xd8b   : > { %4774 = vmatprep.subr.bf16.mxu0 %v5233_v12 }
 0xd8e   : > { %4775 = vmatpush3.bf16.msra.mxu0 %v5234_v13 }
 0xd8f   : > { %4776 = vmatprep.subr.bf16.mxu0 %v5235_v15 }
 0xd92   : > { %4777 = vmatpush3.bf16.msra.mxu0 %v5236_v16 }
 0xd93   : > { %4778 = vmatprep.subr.bf16.mxu0 %v5237_v30 }
 0xd96   : > { %4779 = vmatpush3.bf16.msra.mxu0 %v5238_v20 }
 0xd97   : > { %4780 = vmatprep.subr.bf16.mxu0 %v5239_v31 }
 0xd9a   : > { %4781 = vmatpush3.bf16.msra.mxu0 %v5240_v42 }
 0xe50   : > { %v3918_v40 = vpop.f32.mrb[28].mxu0 }
 0xe51   : > { %v3924_v22 = vadd.f32 %v3918_v40, %v6499_v26  ;;  %v4962_v48 = vpop.f32.mrb[29].mxu0 }
 0xe52   : > { %v3921_v49 = vpop.f32.mrb[30].mxu0 }
 0xe53   : > { %3927 = vadd.xlane.f32.xlu0 %v3924_v22  ;;  %v4963_v44 = vpop.f32.mrb[31].mxu0 }
 0xe54   : > { %v4676_v44 = vld [vmem:[%s6765_s23] ss:$0 sm:$0xff] }
 0xee0   : > { %v3928_v41 = vpop.xlane.xlu0 %3927 }
 0xee1   : > { %v3929_v55 = vmul.f32 0.0078125, %v3928_v41 }
 0xee3   : > { %v3930_v56 = vsub.f32 %v3924_v22, %v3929_v55 }
 0xee5   : > { %v3931_v26 = vmul.f32 %v3930_v56, %v3930_v56 }
 0xee7   : > { %3932 = vadd.xlane.f32.xlu1 %v3931_v26 }
 0xf74   : > { %v3933_v17 = vpop.xlane.xlu1 %3932 }
 0xf75   : > { %v3934_v18 = vmul.f32 0.0078125, %v3933_v17 }
 0xf77   : > { %v3935_v19 = vadd.f32 1e-05, %v3934_v18 }
 0xf79   : > { %5275 = vrsqrt.f32 %v3935_v19 }
 0xf83   : > { %v5276_v21 = vpop.eup %5275 }
 0xf84   : > { %v3937_v24 = vmul.f32 %v5276_v21, %v3930_v56 }
 0xf86   : > { %v3944_v14 = vmul.f32 %v4658_v23, %v3937_v24 }
 0xf88   : > { %v3951_v27 = vadd.f32 %v4659_v25, %v3944_v14 }
 0xf8a   : > { %v3952_v29 = vpack.c.bf16 %v3951_v27, %v3951_v27 }
 0xf8c   : > { %4094 = vmatmul.mubr.bf16.vlgmr.msra.gmra.mrb[56].mxu1 %v3952_v29 }
0x105f   : > { %v4095_v5 = vpop.f32.mrb[56].mxu1 }
0x1060   : > { %v4096_v36 = vadd.f32 %v4095_v5, %v3974_v34  ;;  %v4097_v45 = vpop.f32.mrb[57].mxu1 }
0x1061   : > { %v4098_v37 = vadd.f32 %v4097_v45, %v3978_v35  ;;  %v4099_v0 = vpop.f32.mrb[58].mxu1 }
0x1062   : > { %v4102_v38 = vmax.f32 %v4096_v36, 0.0  ;;  %v4100_v11 = vpop.f32.mrb[59].mxu1 }
0x1063   : > { %v4103_v40 = vmax.f32 %v4098_v37, 0.0 }
0x1064   : > { %v4104_v48 = vpack.c.bf16 %v4102_v38, %v4102_v38 }
0x1065   : > { %v4105_v22 = vpack.c.bf16 %v4103_v40, %v4103_v40 }
0x1067   : > { %4273 = vmatprep.mubr.bf16.mxu0 %v4105_v22 }
0x1068   : > { %4274 = vmatmul.mubr.bf16.vlgmr.msra.gmra.mrb[32].mxu0 %v4104_v48 }
0x113b   : > { %v4782_v49 = vpop.f32.mrb[32].mxu0 }
0x113c   : > { %v4783_v1 = vpop.f32.mrb[33].mxu0 }
0x113d   : > { %v4784_v50 = vadd.f32 %v4783_v1, %v4782_v49  ;;  %v4785_v28 = vpop.f32.mrb[34].mxu0 }
0x113e   : > { %v4786_v51 = vpop.f32.mrb[35].mxu0 }
0x113f   : > { %v4276_v52 = vadd.f32 %v4784_v50, %v4676_v44 }
0x1141   : > { %v4281_v53 = vadd.f32 %v4276_v52, %v3951_v27 }
0x1143   : > { %4284 = vadd.xlane.f32.xlu0 %v4281_v53 }
0x11d0   : > { %v4285_v39 = vpop.xlane.xlu0 %4284 }
0x11d1   : > { %v4286_v41 = vmul.f32 0.0078125, %v4285_v39 }
0x11d3   : > { %v4287_v55 = vsub.f32 %v4281_v53, %v4286_v41 }
0x11d5   : > { %v4288_v56 = vmul.f32 %v4287_v55, %v4287_v55 }
0x11d7   : > { %4289 = vadd.xlane.f32.xlu0 %v4288_v56 }
0x1264   : > { %v4290_v26 = vpop.xlane.xlu0 %4289 }
0x1265   : > { %v4291_v57 = vmul.f32 0.0078125, %v4290_v26 }
0x1267   : > { %v4292_v58 = vadd.f32 1e-05, %v4291_v57 }
0x1269   : > { %5277 = vrsqrt.f32 %v4292_v58 }
0x1273   : > { %v5278_v59 = vpop.eup %5277 }
0x1274   : > { %v4294_v62 = vmul.f32 %v5278_v59, %v4287_v55 }
0x1276   : > { %v4301_v60 = vmul.f32 %v4693_v61, %v4294_v62 }
0x1278   : > { %v4308_v2 = vadd.f32 %v4694_v63, %v4301_v60 }
0x127a   : > { %4309 = vst [vmem:[%s814_s28] sm:$0xff] %v4308_v2 }
0x127b PF: > { %s6767_s21 = sld [smem:[#allocation33_spill]]  ;;  %s6768_s0 = smov %s5662_s30 }
0x127c   : > { %s6769_s30 = smov %s6771_s4 }
0x1281   : > { %s36_s20 = sadd.s32 1, %s6767_s21  }
0x1282   : > { %p33_p7 = scmp.ge.s32.totalorder %s36_s20, 4  }
0x1284   :  { %35 = sbr.rel (!%p33_p7) target bundleno = 21 (0x15), region = 186 }
0x128b   :  { %4335 = vsyncpa [#allocation7], 1 }
0x128c   :  { %4337 = vsyncpa [#allocation7 + $0x1], 1 }
0x128d   :  { %4338 = vsyncpa [#allocation9], 1 }
0x128e   :  { %4339 = vsyncpa [#allocation12], 1 }
0x128f   :  { %4340 = vsyncpa [#allocation15], 1 }
0x1290   :  { %4341 = vsyncpa [#allocation18], 1 }
0x1291   :  { %4342 = vsyncpa [#allocation21], 1 }
0x1292   :  { %4343 = vsyncpa [#allocation24], 1 }

// kernel: transformer_decoder_forward.4
= control target key start
LH: loop header
LB: loop body
LE: loop exit
PB: predicated region body
PF: predicated region fallthrough
CT: control target
= control target key end

     0   :  { %s4985_s30 = smov 0   ;;  %s4987_s20 = smov 0   ;;  %s5798_s0 = inlined_call_operand.vmem [shape: f32[2,8,128], index: 0, kind: input, shape index: {}]   ;;  %s5799_s1 = inlined_call_operand.vmem [shape: f32[2,16,128], index: 1, kind: input, shape index: {}]   ;;  %s5800_s2 = inlined_call_operand.vmem [shape: f32[2,1,16], index: 2, kind: input, shape index: {}]   ;;  %s5801_s3 = inlined_call_operand.vmem [shape: bf16[128,128], index: 3, kind: input, shape index: {}]   ;;  %s5802_s4 = inlined_call_operand.vmem [shape: bf16[128,256], index: 4, kind: input, shape index: {}]   ;;  %s5803_s5 = inlined_call_operand.vmem [shape: bf16[128,128], index: 5, kind: input, shape index: {}]   ;;  %s5804_s6 = inlined_call_operand.vmem [shape: bf16[128,128], index: 6, kind: input, shape index: {}]   ;;  %s5805_s7 = inlined_call_operand.vmem [shape: bf16[128,256], index: 7, kind: input, shape index: {}]   ;;  %s5806_s8 = inlined_call_operand.vmem [shape: bf16[128,128], index: 8, kind: input, shape index: {}]   ;;  %s5807_s9 = inlined_call_operand.vmem [shape: bf16[128,256], index: 9, kind: input, shape index: {}]   ;;  %s5808_s10 = inlined_call_operand.vmem [shape: f32[1,256], index: 10, kind: input, shape index: {}]   ;;  %s5809_s11 = inlined_call_operand.vmem [shape: bf16[256,128], index: 11, kind: input, shape index: {}]   ;;  %s5810_s12 = inlined_call_operand.vmem [shape: f32[1,128], index: 12, kind: input, shape index: {}]   ;;  %s5811_s13 = inlined_call_operand.vmem [shape: f32[1,128], index: 13, kind: input, shape index: {}]   ;;  %s5812_s14 = inlined_call_operand.vmem [shape: f32[1,128], index: 14, kind: input, shape index: {}]   ;;  %s5813_s15 = inlined_call_operand.vmem [shape: f32[1,128], index: 15, kind: input, shape index: {}]   ;;  %s5814_s16 = inlined_call_operand.vmem [shape: f32[1,128], index: 16, kind: input, shape index: {}]   ;;  %s5815_s17 = inlined_call_operand.vmem [shape: f32[1,128], index: 17, kind: input, shape index: {}]   ;;  %s5816_s18 = inlined_call_operand.vmem [shape: f32[1,128], index: 18, kind: input, shape index: {}]   ;;  %s5817_s19 = inlined_call_operand.vmem [shape: f32[2,8,128], index: 19, kind: output, shape index: {}]  }
   0x1   :  { %5826 = sst [smem:[#allocation6_spill]] %s5798_s0  ;;  %s4983_s0 = smov 0  }
   0x2   :  { %5827 = sst [smem:[#allocation7_spill]] %s5799_s1 }
   0x3   :  { %5828 = sst [smem:[#allocation8_spill]] %s5800_s2 }
   0x4   :  { %5829 = sst [smem:[#allocation9_spill]] %s5801_s3 }
   0x5   :  { %5830 = sst [smem:[#allocation10_spill]] %s5802_s4 }
   0x6   :  { %5831 = sst [smem:[#allocation11_spill]] %s5805_s7 }
   0x7 LB: > { %s41_s21 = sadd.s32 1, %s4868_s30  ;;  %p4245_p0 = scmp.ge.s32.totalorder %s4872_s20, 1  ;;  %s4872_s20 = sphi %s4987_s20, %s29_s20   ;;  %s4868_s30 = sphi %s4985_s30, %s5843_s30   ;;  %s4864_s0 = sphi %s4983_s0, %s5842_s0  }
   0x8   : > { %p43_p1 = scmp.ge.s32.totalorder %s41_s21, 2  ;;  %p568_p2 = scmp.lt.s32.totalorder %s4872_s20, 3 }
   0xa   : > { %s5845_s21 = smov (%p43_p1, %s41_s21), 0  ;;  %p569_p3 = pnand %p4245_p0, %p568_p2 }
   0xb   : > { %s5832_s4 = sld [smem:[#allocation10_spill]] (!%p569_p3)  ;;  %v4874_v2 = vmov (!%p569_p3), 0   ;;  %p633_p4 = scmp.lt.s32.totalorder (!%p569_p3), %s4864_s0, 1  ;;  %v4875_v20 = vmov (!%p569_p3), 0.0   ;;  %vm4876_vm0 = vmmov (!%p569_p3), 0   ;;  %v811_v60 = vlaneseq (!%p569_p3) }
   0xc   : > { %572 = sbr.rel (%p569_p3) target bundleno = 4404 (0x1134), region = 96  ;;  %787 = vmatprep.mubr.bf16.mxu0 (!%p569_p3), %v4874_v2  ;;  %1236 = vmatprep.mubr.bf16.mxu1 (!%p569_p3), %v4874_v2  ;;  %s5833_s1 = sld [smem:[#allocation6_spill]] (!%p569_p3)  ;;  %v4880_v58 = vmov (!%p569_p3), 1983009808   ;;  %v4881_v61 = vmov (!%p569_p3), 1934713408  }
   0xd   : > { %s5834_s26 = sld [smem:[#allocation9_spill]] (!%p569_p3)  ;;  %s5835_s7 = sld [smem:[#allocation11_spill]] (!%p569_p3)  ;;  %v809_v59 = vunpack.c.l.s4 (!%p569_p3), %v4880_v58  ;;  %v841_v62 = vunpack.c.l.s4 (!%p569_p3), %v4881_v61  ;;  %vm946_vm1 = vcmask (!%p569_p3), 257024   ;;  %vm1543_vm2 = vcmask (!%p569_p3), 261120  }
   0xe   : > { %s5822_s27 = smov (!%p569_p3), 96   ;;  %s5820_s28 = smov (!%p569_p3), 32   ;;  %vm2325_vm4 = vcmask (!%p569_p3), 64512   ;;  %vm2377_vm5 = vcmask (!%p569_p3), 1043456   ;;  %vm2708_vm6 = vcmask (!%p569_p3), 523264   ;;  %vm2710_vm7 = vcmask (!%p569_p3), 785408  }
   0xf   : > { %s5837_s3 = smov (!%p569_p3), 64   ;;  %s5838_s29 = smov (!%p569_p3), 96   ;;  %v810_v63 = vunpack.c.0.s8 (!%p569_p3), %v809_v59  ;;  %vm3300_vm8 = vcmask (!%p569_p3), 130048  }
  0x10   : > { %s5840_s23 = sld [smem:[#allocation8_spill]] (!%p569_p3) }
  0x11   : > { %v4692_v0 = vld [vmem:[%s5832_s4 + $0x4] ss:$8 sps:$4 sm:$0xff] (!%p569_p3)   ;;  %v4694_v1 = vld [vmem:[%s5832_s4] ss:$8 sps:$4 sm:$0xff] (!%p569_p3)   ;;  %v4695_v3 = vld [vmem:[%s5832_s4 + $0x14] ss:$8 sps:$4 sm:$0xff] (!%p569_p3)  }
  0x12   : > { %755 = vmatprep.subr.bf16.mxu0 (!%p569_p3), %v4692_v0  ;;  %v4697_v4 = vld [vmem:[%s5832_s4 + $0x10] ss:$8 sps:$4 sm:$0xff] (!%p569_p3)   ;;  %v4698_v5 = vld [vmem:[%s5832_s4 + $0x24] ss:$8 sps:$4 sm:$0xff] (!%p569_p3)   ;;  %v4700_v6 = vld [vmem:[%s5832_s4 + $0x20] ss:$8 sps:$4 sm:$0xff] (!%p569_p3)  }
  0x13   : > { %756 = vmatpush1.bf16.msra.mxu0 %v4694_v1  ;;  %v4701_v7 = vld [vmem:[%s5832_s4 + $0x34] ss:$8 sps:$4 sm:$0xff]   ;;  %v4703_v8 = vld [vmem:[%s5832_s4 + $0x30] ss:$8 sps:$4 sm:$0xff]   ;;  %v4704_v9 = vld [vmem:[%s5832_s4 + $0x44] ss:$8 sps:$4 sm:$0xff]  }
  0x14   : > { %757 = vmatprep.subr.bf16.mxu0 %v4695_v3  ;;  %s5847_s0 = smov (!%p633_p4, %s4864_s0), 1  ;;  %v4706_v10 = vld [vmem:[%s5832_s4 + $0x40] ss:$8 sps:$4 sm:$0xff]   ;;  %v4707_v11 = vld [vmem:[%s5832_s4 + $0x54] ss:$8 sps:$4 sm:$0xff]   ;;  %v5175_v0 = vshrl.u32 %v811_v60, 7 }
  0x15   : > { %v4709_v12 = vld [vmem:[%s5832_s4 + $0x50] ss:$8 sps:$4 sm:$0xff]   ;;  %v4710_v13 = vld [vmem:[%s5832_s4 + $0x64] ss:$8 sps:$4 sm:$0xff]   ;;  %s5819_s24 = sshll.u32 %s5847_s0, 3 }
  0x16   : > { %v4712_v14 = vld [vmem:[%s5832_s4 + $0x60] ss:$8 sps:$4 sm:$0xff]   ;;  %v4713_v15 = vld [vmem:[%s5832_s4 + $0x74] ss:$8 sps:$4 sm:$0xff]   ;;  %s5060_s22 = scalar_lea.vmem %s5833_s1, %s5819_s24  ;;  %v4715_v16 = vld [vmem:[%s5832_s4 + $0x70] ss:$8 sps:$4 sm:$0xff]  }
  0x17   : > { %758 = vmatpush1.bf16.msra.mxu0 %v4697_v4  ;;  %v657_v17 = vld [vmem:[%s5060_s22] sm:$0xff]  ;;  %v4717_v21 = vld [vmem:[%s5834_s26 + $0x8] sm:$0xff]   ;;  %v4718_v22 = vld [vmem:[%s5834_s26 + $0x10] sm:$0xff]   ;;  %s5824_s4 = smov 64   ;;  %v842_v4 = vunpack.c.0.s8 %v841_v62 }
  0x18   : > { %759 = vmatprep.subr.bf16.mxu0 %v4698_v5  ;;  %v4716_v18 = vld [vmem:[%s5834_s26] sm:$0xff]   ;;  %v658_v19 = vpack.c.bf16 %v657_v17, %v657_v17  ;;  %v4719_v23 = vld [vmem:[%s5834_s26 + $0x18] sm:$0xff]   ;;  %v4721_v25 = vld [vmem:[%s5834_s26 + $0x28] sm:$0xff]   ;;  %v5178_v5 = vsub.s32 %v810_v63, %v5175_v0 }
  0x19   : > { %v4720_v24 = vld [vmem:[%s5834_s26 + $0x20] sm:$0xff]   ;;  %v4722_v26 = vld [vmem:[%s5834_s26 + $0x30] sm:$0xff]   ;;  %v4723_v27 = vld [vmem:[%s5834_s26 + $0x38] sm:$0xff]  }
  0x1a   : > { %v4724_v28 = vld [vmem:[%s5835_s7 + $0x4] ss:$8 sps:$4 sm:$0xff]   ;;  %v4726_v29 = vld [vmem:[%s5835_s7] ss:$8 sps:$4 sm:$0xff]   ;;  %v4727_v30 = vld [vmem:[%s5835_s7 + $0x14] ss:$8 sps:$4 sm:$0xff]  }
  0x1b   : > { %760 = vmatpush1.bf16.msra.mxu0 %v4700_v6  ;;  %1204 = vmatprep.subr.bf16.mxu1 %v4724_v28  ;;  %v4729_v31 = vld [vmem:[%s5835_s7 + $0x10] ss:$8 sps:$4 sm:$0xff]   ;;  %v1112_v32 = vld [vmem:[%s5835_s7 + $0x20] sm:$0xff]  ;;  %v1113_v33 = vld [vmem:[%s5835_s7 + $0x28] sm:$0xff] }
  0x1c   : > { %761 = vmatprep.subr.bf16.mxu0 %v4701_v7  ;;  %1205 = vmatpush1.bf16.msra.mxu1 %v4726_v29  ;;  %v4730_v34 = vld [vmem:[%s5835_s7 + $0x24] ss:$8 sps:$4 sm:$0xff]   ;;  %v4274_v35 = vcombine.low %v1112_v32, %v1113_v33  ;;  %v4732_v36 = vld [vmem:[%s5835_s7 + $0x34] ss:$8 sps:$4 sm:$0xff]   ;;  %v4734_v37 = vld [vmem:[%s5835_s7 + $0x30] ss:$8 sps:$4 sm:$0xff]  }
  0x1d   : > { %1206 = vmatprep.subr.bf16.mxu1 %v4727_v30  ;;  %v4735_v38 = vld [vmem:[%s5835_s7 + $0x44] ss:$8 sps:$4 sm:$0xff]   ;;  %v4737_v39 = vld [vmem:[%s5835_s7 + $0x40] ss:$8 sps:$4 sm:$0xff]   ;;  %v4738_v42 = vld [vmem:[%s5835_s7 + $0x54] ss:$8 sps:$4 sm:$0xff]  }
  0x1e   : > { %v4740_v44 = vld [vmem:[%s5835_s7 + $0x50] ss:$8 sps:$4 sm:$0xff]   ;;  %v4741_v46 = vld [vmem:[%s5835_s7 + $0x64] ss:$8 sps:$4 sm:$0xff]   ;;  %v4743_v47 = vld [vmem:[%s5835_s7 + $0x60] ss:$8 sps:$4 sm:$0xff]  }
  0x1f   : > { %762 = vmatpush1.bf16.msra.mxu0 %v4703_v8  ;;  %v4744_v48 = vld [vmem:[%s5835_s7 + $0x74] ss:$8 sps:$4 sm:$0xff]   ;;  %v4746_v49 = vld [vmem:[%s5835_s7 + $0x70] ss:$8 sps:$4 sm:$0xff]   ;;  %s644_s7 = scalar_lea.vmem %s5840_s23, %s5847_s0 }
  0x20   : > { %763 = vmatprep.subr.bf16.mxu0 %v4704_v9  ;;  %1207 = vmatpush1.bf16.msra.mxu1 %v4729_v31 }
  0x21   : > { %1208 = vmatprep.subr.bf16.mxu1 %v4730_v34 }
  0x23   : > { %764 = vmatpush1.bf16.msra.mxu0 %v4706_v10 }
  0x24   : > { %765 = vmatprep.subr.bf16.mxu0 %v4707_v11  ;;  %1209 = vmatpush1.bf16.msra.mxu1 %v4274_v35  ;;  %v5181_v11 = vsub.s32 %v842_v4, %v5175_v0 }
  0x25   : > { %1210 = vmatprep.subr.bf16.mxu1 %v4732_v36 }
  0x27   : > { %766 = vmatpush1.bf16.msra.mxu0 %v4709_v12 }
  0x28   : > { %767 = vmatprep.subr.bf16.mxu0 %v4710_v13  ;;  %1211 = vmatpush1.bf16.msra.mxu1 %v4734_v37 }
  0x29   : > { %1212 = vmatprep.subr.bf16.mxu1 %v4735_v38 }
  0x2b   : > { %768 = vmatpush1.bf16.msra.mxu0 %v4712_v14 }
  0x2c   : > { %769 = vmatprep.subr.bf16.mxu0 %v4713_v15  ;;  %1213 = vmatpush1.bf16.msra.mxu1 %v4737_v39 }
  0x2d   : > { %1214 = vmatprep.subr.bf16.mxu1 %v4738_v42 }
  0x2f   : > { %770 = vmatpush1.bf16.msra.mxu0 %v4715_v16 }
  0x30   : > { %4483 = vmatprep.subr.bf16.mxu0 %v4875_v20  ;;  %1215 = vmatpush1.bf16.msra.mxu1 %v4740_v44 }
  0x31   : > { %1216 = vmatprep.subr.bf16.mxu1 %v4741_v46 }
  0x32   : > { %788 = vmatmul.mubr.bf16.vlgmr.msra.gmra.mrb[0].mxu0 %v658_v19 }
  0x33   : > { %4484 = vmatpush3.bf16.msra.mxu0 %v4716_v18  ;;  %4499 = vmatprep.mubr.msk.bf16.mxu0 %vm4876_vm0, %v4875_v20 }
  0x34   : > { %4485 = vmatprep.subr.bf16.mxu0 %v4875_v20  ;;  %1217 = vmatpush1.bf16.msra.mxu1 %v4743_v47 }
  0x35   : > { %1218 = vmatprep.subr.bf16.mxu1 %v4744_v48 }
  0x37   : > { %4486 = vmatpush3.bf16.msra.mxu0 %v4717_v21 }
  0x38   : > { %4487 = vmatprep.subr.bf16.mxu0 %v4875_v20  ;;  %1219 = vmatpush1.bf16.msra.mxu1 %v4746_v49 }
  0x39   : > { %4503 = vmatprep.subr.bf16.mxu1 %v4875_v20 }
  0x3b   : > { %4488 = vmatpush3.bf16.msra.mxu0 %v4718_v22 }
  0x3c   : > { %4489 = vmatprep.subr.bf16.mxu0 %v4875_v20 }
  0x3f   : > { %4490 = vmatpush3.bf16.msra.mxu0 %v4719_v23 }
  0x40   : > { %4491 = vmatprep.subr.bf16.mxu0 %v4875_v20 }
  0x43   : > { %4492 = vmatpush3.bf16.msra.mxu0 %v4720_v24 }
  0x44   : > { %4493 = vmatprep.subr.bf16.mxu0 %v4875_v20 }
  0x47   : > { %4494 = vmatpush3.bf16.msra.mxu0 %v4721_v25 }
  0x48   : > { %4495 = vmatprep.subr.bf16.mxu0 %v4875_v20 }
  0x4b   : > { %4496 = vmatpush3.bf16.msra.mxu0 %v4722_v26 }
  0x4c   : > { %4497 = vmatprep.subr.bf16.mxu0 %v4875_v20 }
  0x4f   : > { %4498 = vmatpush3.bf16.msra.mxu0 %v4723_v27 }
  0x50   : > { %4551 = vmatprep.subr.bf16.mxu0 %v4875_v20 }
  0x52   : > { %4500 = vmatmul.mubr.bf16.vlgmr.msra.gmra.mrb[4].mxu0 %v658_v19 }
  0x53   : > { %4567 = vmatprep.mubr.msk.bf16.mxu0 %vm4876_vm0, %v4875_v20 }
 0x105   : > { %v789_v40 = vpop.f32.mrb[0].mxu0 }
 0x106   : > { %797 = vrot.lane.b32.xlu0 %v789_v40, %s5822_s27  ;;  %v5137_v41 = vpop.f32.mrb[1].mxu0  ;;  %803 = vrot.lane.b32.xlu1 %v789_v40, %s5820_s28  ;;  %s4392_s27 = sshll.u32 %s5847_s0, 4 }
 0x107   : > { %v793_v43 = vpop.f32.mrb[2].mxu0 }
 0x108   : > { %v794_v45 = vpop.f32.mrb[3].mxu0 }
 0x10a   : > { %800 = vrot.lane.b32.xlu0 %v789_v40, %s5824_s4  ;;  %s5836_s4 = sld [smem:[#allocation7_spill]] }
 0x110   : > { %s641_s28 = scalar_lea.vmem %s5836_s4, %s4392_s27  ;;  %s5839_s27 = smov 32  }
 0x111   : > { %v1105_v50 = vld [vmem:[%s641_s28] sm:$0xff]  ;;  %v1106_v51 = vld [vmem:[%s641_s28 + $0x8] sm:$0xff] }
 0x112   : > { %v1107_v52 = vpack.c.bf16 %v1106_v51, %v1105_v50 }
 0x114   : > { %1237 = vmatmul.mubr.bf16.vlgmr.msra.gmra.mrb[0].mxu1 %v1107_v52 }
 0x115   : > { %4505 = vmatprep.mubr.msk.bf16.mxu1 %vm4876_vm0, %v4875_v20 }
 0x125   : > { %v1983_v53 = vpop.f32.mrb[4].mxu0 }
 0x126   : > { %v5166_v54 = vmul.f32 0.17677669, %v1983_v53  ;;  %v4501_v55 = vpop.f32.mrb[5].mxu0 }
 0x127   : > { %v1986_v56 = vpop.f32.mrb[6].mxu0 }
 0x128   : > { %1994 = vrot.lane.b32.xlu0 %v5166_v54, %s5837_s3  ;;  %1991 = vrot.lane.b32.xlu1 %v5166_v54, %s5838_s29  ;;  %v4502_v57 = vpop.f32.mrb[7].mxu0 }
 0x12c   : > { %1997 = vrot.lane.b32.xlu1 %v5166_v54, %s5839_s27 }
 0x178   : > { %v798_v1 = vpop.permute.xlu0 %797  ;;  %v804_v3 = vpop.permute.xlu1 %803 }
 0x179   : > { %v822_v6 = vcombine.low %v798_v1, %v804_v3  ;;  %v823_v7 = vcombine.high %v798_v1, %v804_v3 }
 0x17b   : > { %v830_v12 = vrot.slane %v822_v6, %v5178_v5  ;;  %v837_v13 = vrot.slane %v823_v7, %v5178_v5 }
 0x17c   : > { %v801_v8 = vpop.permute.xlu0 %800 }
 0x17d   : > { %v806_v9 = vcombine.low %v789_v40, %v801_v8  ;;  %v807_v10 = vcombine.high %v789_v40, %v801_v8 }
 0x17f   : > { %v814_v14 = vrot.slane %v806_v9, %v5178_v5  ;;  %v821_v15 = vrot.slane %v807_v10, %v5178_v5 }
 0x181   : > { %v838_v16 = vcombine.low %v814_v14, %v830_v12  ;;  %v839_v17 = vcombine.high %v814_v14, %v830_v12  ;;  %v854_v18 = vcombine.low %v821_v15, %v837_v13  ;;  %v855_v19 = vcombine.high %v821_v15, %v837_v13 }
 0x183   : > { %v846_v21 = vrot.slane %v838_v16, %v5181_v11  ;;  %v853_v22 = vrot.slane %v839_v17, %v5181_v11  ;;  %v862_v23 = vrot.slane %v854_v18, %v5181_v11  ;;  %v869_v24 = vrot.slane %v855_v19, %v5181_v11 }
 0x185   : > { %v874_v25 = vcombine.low %v846_v21, %v853_v22  ;;  %v4266_v26 = vcombine.high %v846_v21, %v853_v22  ;;  %v890_v27 = vcombine.low %v862_v23, %v869_v24  ;;  %v4267_v28 = vcombine.high %v862_v23, %v869_v24 }
 0x187   : > { %v881_v29 = vrot.slane %v874_v25, %v5178_v5  ;;  %v889_v30 = vrot.slane %v4266_v26, %v5178_v5  ;;  %v897_v31 = vrot.slane %v890_v27, %v5178_v5  ;;  %v905_v32 = vrot.slane %v4267_v28, %v5178_v5 }
 0x189   : > { %v906_v33 = vcombine.low %v881_v29, %v889_v30  ;;  %v907_v34 = vcombine.high %v881_v29, %v889_v30  ;;  %v922_v35 = vcombine.low %v897_v31, %v905_v32  ;;  %v923_v36 = vcombine.high %v897_v31, %v905_v32 }
 0x18b   : > { %v914_v37 = vrot.slane %v906_v33, %v5181_v11  ;;  %v921_v38 = vrot.slane %v907_v34, %v5181_v11  ;;  %v930_v39 = vrot.slane %v922_v35, %v5181_v11  ;;  %v937_v40 = vrot.slane %v923_v36, %v5181_v11 }
 0x18d   : > { %v938_v42 = vcombine.low %v914_v37, %v930_v39  ;;  %v939_v43 = vcombine.high %v914_v37, %v930_v39  ;;  %v940_v44 = vcombine.low %v921_v38, %v937_v40  ;;  %v941_v45 = vcombine.high %v921_v38, %v937_v40 }
 0x18f   : > { %v942_v46 = vpack.c.bf16 %v938_v42, %v938_v42  ;;  %v943_v47 = vpack.c.bf16 %v939_v43, %v939_v43  ;;  %v944_v48 = vpack.c.bf16 %v940_v44, %v940_v44  ;;  %v945_v49 = vpack.c.bf16 %v941_v45, %v941_v45 }
 0x191   : > { %947 = vst.msk [vmem:[#allocation2] sm:$0xf] %vm946_vm1, %v942_v46  ;;  %948 = vst.msk [vmem:[#allocation2 + $0x4] sm:$0xf] %vm946_vm1, %v943_v47 }
 0x192   : > { %949 = vst.msk [vmem:[#allocation2 + $0x8] sm:$0xf] %vm946_vm1, %v944_v48  ;;  %950 = vst.msk [vmem:[#allocation2 + $0xc] sm:$0xf] %vm946_vm1, %v945_v49  ;;  %v1856_v48 = vand.u32 127, %v811_v60 }
 0x193   : > { %v4882_v49 = vmov -1e+30  }
 0x194   : > { %vm1857_vm3 = vcmp.ge.s32.totalorder %v5175_v0, %v1856_v48 }
 0x198   : > { %v1876_v50 = vld [vmem:[#allocation2] sm:$0xf]  ;;  %v1877_v26 = vld [vmem:[#allocation2 + $0x4] sm:$0xf] }
 0x199   : > { %v2145_v51 = vsel %vm1543_vm2, %v1876_v50, 0  ;;  %v2191_v28 = vsel %vm1543_vm2, %v1877_v26, 0  ;;  %v1878_v32 = vld [vmem:[#allocation2 + $0x8] sm:$0xf]  ;;  %v1879_v38 = vld [vmem:[#allocation2 + $0xc] sm:$0xf] }
 0x19a   : > { %4504 = vmatpush3.bf16.xpose.msra.mxu1 %v2145_v51  ;;  %v1995_v52 = vpop.permute.xlu0 %1994  ;;  %v1992_v53 = vpop.permute.xlu1 %1991  ;;  %v2237_v36 = vsel %vm1543_vm2, %v1878_v32, 0  ;;  %v2283_v40 = vsel %vm1543_vm2, %v1879_v38, 0  ;;  %v1858_v50 = vsel %vm1857_vm3, 0.0, %v4882_v49 }
 0x19b   : > { %4509 = vmatprep.subr.bf16.mxu1 %v4875_v20  ;;  %v2000_v55 = vcombine.low %v5166_v54, %v1995_v52  ;;  %v2001_v56 = vcombine.high %v5166_v54, %v1995_v52 }
 0x19d   : > { %v2008_v61 = vrot.slane %v2000_v55, %v5178_v5  ;;  %v2015_v62 = vrot.slane %v2001_v56, %v5178_v5 }
 0x19e   : > { %v1998_v57 = vpop.permute.xlu1 %1997 }
 0x19f   : > { %v2016_v58 = vcombine.low %v1992_v53, %v1998_v57  ;;  %v2017_v59 = vcombine.high %v1992_v53, %v1998_v57 }
 0x1a1   : > { %v2024_v63 = vrot.slane %v2016_v58, %v5178_v5  ;;  %v2031_v1 = vrot.slane %v2017_v59, %v5178_v5 }
 0x1a3   : > { %v2032_v3 = vcombine.low %v2008_v61, %v2024_v63  ;;  %v2033_v4 = vcombine.high %v2008_v61, %v2024_v63  ;;  %v2048_v6 = vcombine.low %v2015_v62, %v2031_v1  ;;  %v2049_v7 = vcombine.high %v2015_v62, %v2031_v1 }
 0x1a5   : > { %v2040_v8 = vrot.slane %v2032_v3, %v5181_v11  ;;  %v2047_v9 = vrot.slane %v2033_v4, %v5181_v11  ;;  %v2056_v54 = vrot.slane %v2048_v6, %v5181_v11  ;;  %v2063_v10 = vrot.slane %v2049_v7, %v5181_v11 }
 0x1a7   : > { %v2068_v12 = vcombine.low %v2040_v8, %v2047_v9  ;;  %v4302_v13 = vcombine.high %v2040_v8, %v2047_v9  ;;  %v2084_v14 = vcombine.low %v2056_v54, %v2063_v10  ;;  %v4303_v15 = vcombine.high %v2056_v54, %v2063_v10 }
 0x1a9   : > { %v2075_v16 = vrot.slane %v2068_v12, %v5178_v5  ;;  %v2083_v17 = vrot.slane %v4302_v13, %v5178_v5  ;;  %v2091_v18 = vrot.slane %v2084_v14, %v5178_v5  ;;  %v2099_v19 = vrot.slane %v4303_v15, %v5178_v5 }
 0x1ab   : > { %v2100_v21 = vcombine.low %v2075_v16, %v2083_v17  ;;  %v2116_v22 = vcombine.low %v2091_v18, %v2099_v19  ;;  %v2101_v29 = vcombine.high %v2075_v16, %v2083_v17  ;;  %v2117_v30 = vcombine.high %v2091_v18, %v2099_v19 }
 0x1ad   : > { %v2108_v23 = vrot.slane %v2100_v21, %v5181_v11  ;;  %v2124_v24 = vrot.slane %v2116_v22, %v5181_v11  ;;  %v2115_v34 = vrot.slane %v2101_v29, %v5181_v11  ;;  %v2131_v35 = vrot.slane %v2117_v30, %v5181_v11 }
 0x1af   : > { %v2132_v25 = vcombine.low %v2108_v23, %v2124_v24  ;;  %v2133_v31 = vcombine.high %v2108_v23, %v2124_v24  ;;  %v2134_v37 = vcombine.low %v2115_v34, %v2131_v35  ;;  %v2135_v42 = vcombine.high %v2115_v34, %v2131_v35 }
 0x1b1   : > { %v2136_v27 = vpack.c.bf16 %v2132_v25, %v2132_v25  ;;  %v2137_v33 = vpack.c.bf16 %v2133_v31, %v2133_v31  ;;  %v2138_v39 = vpack.c.bf16 %v2134_v37, %v2134_v37  ;;  %v2139_v43 = vpack.c.bf16 %v2135_v42, %v2135_v42 }
 0x1b3   : > { %4506 = vmatmul.mubr.msk.bf16.vlgmr.msra.gmra.mrb[4].mxu1 %vm1543_vm2, %v2136_v27 }
 0x1b4   : > { %4510 = vmatpush3.bf16.xpose.msra.mxu1 %v2191_v28  ;;  %4511 = vmatprep.mubr.msk.bf16.mxu1 %vm4876_vm0, %v4875_v20 }
 0x1b5   : > { %4515 = vmatprep.subr.bf16.mxu1 %v4875_v20 }
 0x1bb   : > { %4512 = vmatmul.mubr.msk.bf16.vlgmr.msra.gmra.mrb[8].mxu1 %vm1543_vm2, %v2137_v33 }
 0x1bc   : > { %4516 = vmatpush3.bf16.xpose.msra.mxu1 %v2237_v36  ;;  %4517 = vmatprep.mubr.msk.bf16.mxu1 %vm4876_vm0, %v4875_v20 }
 0x1bd   : > { %4521 = vmatprep.subr.bf16.mxu1 %v4875_v20 }
 0x1c3   : > { %4518 = vmatmul.mubr.msk.bf16.vlgmr.msra.gmra.mrb[12].mxu1 %vm1543_vm2, %v2138_v39 }
 0x1c4   : > { %4522 = vmatpush3.bf16.xpose.msra.mxu1 %v2283_v40  ;;  %4523 = vmatprep.mubr.msk.bf16.mxu1 %vm4876_vm0, %v4875_v20 }
 0x1c5   : > { %4527 = vmatprep.subr.bf16.mxu1 %v4875_v20 }
 0x1cb   : > { %4524 = vmatmul.mubr.msk.bf16.vlgmr.msra.gmra.mrb[16].mxu1 %vm1543_vm2, %v2139_v43 }
 0x1cc   : > { %4529 = vmatprep.mubr.msk.bf16.mxu1 %vm4876_vm0, %v4875_v20 }
 0x1e7   : > { %v5241_v44 = vpop.f32.mrb[0].mxu1 }
 0x1e8   : > { %v5243_v45 = vpop.f32.mrb[1].mxu1 }
 0x1e9   : > { %v5245_v46 = vpop.f32.mrb[2].mxu1 }
 0x1ea   : > { %v5247_v47 = vpop.f32.mrb[3].mxu1 }
 0x286   : > { %v2181_v51 = vpop.f32.mrb[4].mxu1 }
 0x287   : > { %v2182_v52 = vadd.f32 %v2181_v51, %v1858_v50  ;;  %v4507_v53 = vpop.f32.mrb[5].mxu1 }
 0x288   : > { %v2184_v55 = vpop.f32.mrb[6].mxu1 }
 0x289   : > { %v4508_v56 = vpop.f32.mrb[7].mxu1  ;;  %v2326_v57 = vsel %vm2325_vm4, %v2182_v52, -inf }
 0x28a   : > { %2327 = vmax.xlane.f32.xlu0 %v2326_v57 }
 0x28e   : > { %v2227_v58 = vpop.f32.mrb[8].mxu1 }
 0x28f   : > { %v2228_v59 = vadd.f32 %v2227_v58, %v1858_v50  ;;  %v4513_v61 = vpop.f32.mrb[9].mxu1 }
 0x290   : > { %v2230_v62 = vpop.f32.mrb[10].mxu1 }
 0x291   : > { %v4514_v63 = vpop.f32.mrb[11].mxu1  ;;  %v2329_v60 = vsel %vm2325_vm4, %v2228_v59, -inf }
 0x292   : > { %2330 = vmax.xlane.f32.xlu1 %v2329_v60 }
 0x296   : > { %v2273_v1 = vpop.f32.mrb[12].mxu1 }
 0x297   : > { %v2274_v3 = vadd.f32 %v2273_v1, %v1858_v50  ;;  %v4519_v4 = vpop.f32.mrb[13].mxu1 }
 0x298   : > { %v2276_v6 = vpop.f32.mrb[14].mxu1 }
 0x299   : > { %v4520_v7 = vpop.f32.mrb[15].mxu1  ;;  %v2332_v8 = vsel %vm2325_vm4, %v2274_v3, -inf }
 0x29a   : > { %2333 = vmax.xlane.f32.xlu0 %v2332_v8 }
 0x29e   : > { %v2319_v9 = vpop.f32.mrb[16].mxu1 }
 0x29f   : > { %v2320_v54 = vadd.f32 %v2319_v9, %v1858_v50  ;;  %v4525_v10 = vpop.f32.mrb[17].mxu1 }
 0x2a0   : > { %v2322_v12 = vpop.f32.mrb[18].mxu1 }
 0x2a1   : > { %v4526_v13 = vpop.f32.mrb[19].mxu1  ;;  %v2335_v14 = vsel %vm2325_vm4, %v2320_v54, -inf }
 0x2a2   : > { %2336 = vmax.xlane.f32.xlu0 %v2335_v14 }
 0x2a3   : > { %952 = vrot.lane.b32.xlu1 %v5137_v41, %s5838_s29 }
 0x2a7   : > { %958 = vrot.lane.b32.xlu1 %v5137_v41, %s5839_s27 }
 0x2b8   : > { %955 = vrot.lane.b32.xlu0 %v5137_v41, %s5837_s3 }
 0x317   : > { %v2328_v15 = vpop.xlane.xlu0 %2327 }
 0x318   : > { %v2338_v16 = vsub.f32 %v2182_v52, %v2328_v15 }
 0x31a   : > { %v2342_v17 = vmul.f32 1.442695, %v2338_v16 }
 0x31c   : > { %4811 = vpow2.f32 %v2342_v17 }
 0x31f   : > { %v2331_v18 = vpop.xlane.xlu1 %2330 }
 0x320   : > { %v2339_v19 = vsub.f32 %v2228_v59, %v2331_v18 }
 0x322   : > { %v2344_v21 = vmul.f32 1.442695, %v2339_v19 }
 0x323   : > { %v953_v26 = vpop.permute.xlu1 %952 }
 0x324   : > { %4813 = vpow2.f32 %v2344_v21 }
 0x326   : > { %v5261_v22 = vpop.eup %4811 }
 0x327   : > { %v2334_v23 = vpop.xlane.xlu0 %2333  ;;  %v2350_v24 = vsel %vm2325_vm4, %v5261_v22, 0.0  ;;  %v959_v29 = vpop.permute.xlu1 %958 }
 0x328   : > { %v2340_v25 = vsub.f32 %v2274_v3, %v2334_v23  ;;  %2351 = vadd.xlane.f32.xlu1 %v2350_v24  ;;  %v977_v33 = vcombine.low %v953_v26, %v959_v29  ;;  %v978_v34 = vcombine.high %v953_v26, %v959_v29 }
 0x32a   : > { %v2346_v27 = vmul.f32 1.442695, %v2340_v25  ;;  %v985_v40 = vrot.slane %v977_v33, %v5178_v5  ;;  %v992_v42 = vrot.slane %v978_v34, %v5178_v5 }
 0x32c   : > { %4815 = vpow2.f32 %v2346_v27 }
 0x32e   : > { %v5265_v28 = vpop.eup %4813 }
 0x32f   : > { %v2337_v30 = vpop.xlane.xlu0 %2336  ;;  %v2353_v31 = vsel %vm2325_vm4, %v5265_v28, 0.0 }
 0x330   : > { %v2341_v32 = vsub.f32 %v2320_v54, %v2337_v30  ;;  %2354 = vadd.xlane.f32.xlu0 %v2353_v31 }
 0x332   : > { %v2348_v35 = vmul.f32 1.442695, %v2341_v32 }
 0x333   : > { %v956_v36 = vpop.permute.xlu0 %955 }
 0x334   : > { %4817 = vpow2.f32 %v2348_v35  ;;  %v961_v37 = vcombine.low %v5137_v41, %v956_v36  ;;  %v962_v38 = vcombine.high %v5137_v41, %v956_v36 }
 0x336   : > { %v5271_v39 = vpop.eup %4815  ;;  %v969_v43 = vrot.slane %v961_v37, %v5178_v5  ;;  %v976_v48 = vrot.slane %v962_v38, %v5178_v5 }
 0x337   : > { %v2356_v49 = vsel %vm2325_vm4, %v5271_v39, 0.0 }
 0x338   : > { %v993_v50 = vcombine.low %v969_v43, %v985_v40  ;;  %v994_v51 = vcombine.high %v969_v43, %v985_v40  ;;  %v1009_v52 = vcombine.low %v976_v48, %v992_v42  ;;  %v1010_v53 = vcombine.high %v976_v48, %v992_v42  ;;  %2357 = vadd.xlane.f32.xlu0 %v2356_v49 }
 0x33a   : > { %v1001_v41 = vrot.slane %v993_v50, %v5181_v11  ;;  %v1008_v55 = vrot.slane %v994_v51, %v5181_v11  ;;  %v1017_v56 = vrot.slane %v1009_v52, %v5181_v11  ;;  %v1024_v57 = vrot.slane %v1010_v53, %v5181_v11 }
 0x33c   : > { %v1029_v58 = vcombine.low %v1001_v41, %v1008_v55  ;;  %v4268_v59 = vcombine.high %v1001_v41, %v1008_v55  ;;  %v1045_v61 = vcombine.low %v1017_v56, %v1024_v57  ;;  %v4269_v62 = vcombine.high %v1017_v56, %v1024_v57  ;;  %v4748_v41 = vld [vmem:[%s5803_s5 + $0x8] sm:$0xff]   ;;  %v4749_v55 = vld [vmem:[%s5803_s5 + $0x10] sm:$0xff]   ;;  %v4750_v56 = vld [vmem:[%s5803_s5 + $0x18] sm:$0xff]  }
 0x33d   : > { %v4751_v57 = vld [vmem:[%s5803_s5 + $0x20] sm:$0xff]  }
 0x33e   : > { %v5283_v63 = vpop.eup %4817  ;;  %v1036_v60 = vrot.slane %v1029_v58, %v5178_v5  ;;  %v1044_v1 = vrot.slane %v4268_v59, %v5178_v5  ;;  %v1052_v3 = vrot.slane %v1045_v61, %v5178_v5  ;;  %v1060_v4 = vrot.slane %v4269_v62, %v5178_v5  ;;  %v4752_v58 = vld [vmem:[%s5803_s5 + $0x28] sm:$0xff]  }
 0x33f   : > { %v2359_v6 = vsel %vm2325_vm4, %v5283_v63, 0.0 }
 0x340   : > { %v1061_v7 = vcombine.low %v1036_v60, %v1044_v1  ;;  %v1062_v8 = vcombine.high %v1036_v60, %v1044_v1  ;;  %v1077_v9 = vcombine.low %v1052_v3, %v1060_v4  ;;  %v1078_v54 = vcombine.high %v1052_v3, %v1060_v4  ;;  %2360 = vadd.xlane.f32.xlu1 %v2359_v6 }
 0x342   : > { %v1069_v10 = vrot.slane %v1061_v7, %v5181_v11  ;;  %v1076_v12 = vrot.slane %v1062_v8, %v5181_v11  ;;  %v1085_v13 = vrot.slane %v1077_v9, %v5181_v11  ;;  %v1092_v14 = vrot.slane %v1078_v54, %v5181_v11 }
 0x344   : > { %v1093_v15 = vcombine.low %v1069_v10, %v1085_v13  ;;  %v1094_v16 = vcombine.high %v1069_v10, %v1085_v13  ;;  %v1095_v17 = vcombine.low %v1076_v12, %v1092_v14  ;;  %v1096_v18 = vcombine.high %v1076_v12, %v1092_v14 }
 0x346   : > { %v1097_v19 = vpack.c.bf16 %v1093_v15, %v1093_v15  ;;  %v1098_v21 = vpack.c.bf16 %v1094_v16, %v1094_v16  ;;  %v1099_v23 = vpack.c.bf16 %v1095_v17, %v1095_v17  ;;  %v1100_v24 = vpack.c.bf16 %v1096_v18, %v1096_v18 }
 0x348   : > { %1101 = vst.msk [vmem:[#allocation3] sm:$0xf] %vm946_vm1, %v1097_v19  ;;  %1102 = vst.msk [vmem:[#allocation3 + $0x4] sm:$0xf] %vm946_vm1, %v1098_v21 }
 0x349   : > { %1103 = vst.msk [vmem:[#allocation3 + $0x8] sm:$0xf] %vm946_vm1, %v1099_v23  ;;  %1104 = vst.msk [vmem:[#allocation3 + $0xc] sm:$0xf] %vm946_vm1, %v1100_v24 }
 0x34f   : > { %v1880_v25 = vld [vmem:[#allocation3] sm:$0xf]  ;;  %v1881_v32 = vld [vmem:[#allocation3 + $0x4] sm:$0xf] }
 0x350   : > { %v2379_v26 = vsel %vm2377_vm5, %v1880_v25, 0  ;;  %v2425_v34 = vsel %vm2377_vm5, %v1881_v32, 0  ;;  %v1882_v38 = vld [vmem:[#allocation3 + $0x8] sm:$0xf]  ;;  %v1883_v49 = vld [vmem:[#allocation3 + $0xc] sm:$0xf] }
 0x351   : > { %4528 = vmatpush3.bf16.msra.mxu1 %v2379_v26  ;;  %v2471_v42 = vsel %vm2377_vm5, %v1882_v38, 0  ;;  %v4754_v38 = vld [vmem:[%s5803_s5 + $0x38] sm:$0xff]  }
 0x352   : > { %4533 = vmatprep.subr.bf16.mxu1 %v4875_v20 }
 0x3b5   : > { %v2352_v27 = vpop.xlane.xlu1 %2351 }
 0x3b6   : > { %4819 = vrcp.f32 %v2352_v27 }
 0x3bd   : > { %v2355_v29 = vpop.xlane.xlu0 %2354 }
 0x3be   : > { %4821 = vrcp.f32 %v2355_v29  ;;  %v4753_v29 = vld [vmem:[%s5803_s5 + $0x30] sm:$0xff]  }
 0x3c0   : > { %v4820_v30 = vpop.eup %4819 }
 0x3c1   : > { %v2366_v31 = vmul.f32 %v4820_v30, %v5261_v22 }
 0x3c3   : > { %v2370_v33 = vpack.c.bf16 %v2366_v31, %v2366_v31 }
 0x3c5   : > { %4530 = vmatmul.mubr.msk.bf16.vlgmr.msra.gmra.mrb[20].mxu1 %vm2325_vm4, %v2370_v33  ;;  %v2358_v35 = vpop.xlane.xlu0 %2357 }
 0x3c6   : > { %4534 = vmatpush3.bf16.msra.mxu1 %v2425_v34  ;;  %4823 = vrcp.f32 %v2358_v35  ;;  %4535 = vmatprep.mubr.msk.bf16.mxu1 %vm4876_vm0, %v4875_v20 }
 0x3c7   : > { %4539 = vmatprep.subr.bf16.mxu1 %v4875_v20 }
 0x3c8   : > { %v4822_v36 = vpop.eup %4821 }
 0x3c9   : > { %v2367_v37 = vmul.f32 %v4822_v36, %v5265_v28  ;;  %v2517_v28 = vsel %vm2377_vm5, %v1883_v49, 0 }
 0x3cb   : > { %v2371_v40 = vpack.c.bf16 %v2367_v37, %v2367_v37 }
 0x3cd   : > { %v2361_v22 = vpop.xlane.xlu1 %2360  ;;  %4536 = vmatmul.mubr.msk.bf16.vlgmr.msra.gmra.mrb[24].mxu1 %vm2325_vm4, %v2371_v40 }
 0x3ce   : > { %4825 = vrcp.f32 %v2361_v22  ;;  %4540 = vmatpush3.bf16.msra.mxu1 %v2471_v42  ;;  %4541 = vmatprep.mubr.msk.bf16.mxu1 %vm4876_vm0, %v4875_v20 }
 0x3cf   : > { %4545 = vmatprep.subr.bf16.mxu1 %v4875_v20 }
 0x3d0   : > { %v4824_v43 = vpop.eup %4823 }
 0x3d1   : > { %v2368_v48 = vmul.f32 %v4824_v43, %v5271_v39  ;;  %v4747_v39 = vld [vmem:[%s5803_s5] sm:$0xff]  }
 0x3d2   : > { %4552 = vmatpush3.bf16.msra.mxu0 %v4747_v39 }
 0x3d3   : > { %v2372_v50 = vpack.c.bf16 %v2368_v48, %v2368_v48  ;;  %4553 = vmatprep.subr.bf16.mxu0 %v4875_v20 }
 0x3d5   : > { %4542 = vmatmul.mubr.msk.bf16.vlgmr.msra.gmra.mrb[28].mxu1 %vm2325_vm4, %v2372_v50 }
 0x3d6   : > { %4546 = vmatpush3.bf16.msra.mxu1 %v2517_v28  ;;  %4547 = vmatprep.mubr.msk.bf16.mxu1 %vm4876_vm0, %v4875_v20 }
 0x3d7   : > { %4571 = vmatprep.subr.bf16.mxu1 %v4875_v20  ;;  %4554 = vmatpush3.bf16.msra.mxu0 %v4748_v41 }
 0x3d8   : > { %v4826_v51 = vpop.eup %4825  ;;  %4555 = vmatprep.subr.bf16.mxu0 %v4875_v20 }
 0x3d9   : > { %v2369_v52 = vmul.f32 %v4826_v51, %v5283_v63 }
 0x3db   : > { %v2373_v53 = vpack.c.bf16 %v2369_v52, %v2369_v52  ;;  %4556 = vmatpush3.bf16.msra.mxu0 %v4749_v55 }
 0x3dc   : > { %4557 = vmatprep.subr.bf16.mxu0 %v4875_v20 }
 0x3dd   : > { %4548 = vmatmul.mubr.msk.bf16.vlgmr.msra.gmra.mrb[32].mxu1 %vm2325_vm4, %v2373_v53 }
 0x3de   : > { %4587 = vmatprep.mubr.msk.bf16.mxu1 %vm4876_vm0, %v4875_v20 }
 0x3df   : > { %4558 = vmatpush3.bf16.msra.mxu0 %v4750_v56 }
 0x3e0   : > { %4559 = vmatprep.subr.bf16.mxu0 %v4875_v20 }
 0x3e3   : > { %4560 = vmatpush3.bf16.msra.mxu0 %v4751_v57 }
 0x3e4   : > { %4561 = vmatprep.subr.bf16.mxu0 %v4875_v20 }
 0x3e7   : > { %4562 = vmatpush3.bf16.msra.mxu0 %v4752_v58 }
 0x3e8   : > { %4563 = vmatprep.subr.bf16.mxu0 %v4875_v20 }
 0x3eb   : > { %4564 = vmatpush3.bf16.msra.mxu0 %v4753_v29 }
 0x3ec   : > { %4565 = vmatprep.subr.bf16.mxu0 %v4875_v20 }
 0x3ef   : > { %4566 = vmatpush3.bf16.msra.mxu0 %v4754_v38 }
 0x3f0   : > { %4591 = vmatprep.subr.bf16.mxu0 %v4875_v20 }
 0x498   : > { %v2415_v59 = vpop.f32.mrb[20].mxu1 }
 0x499   : > { %v4531_v61 = vpop.f32.mrb[21].mxu1 }
 0x49a   : > { %v2418_v62 = vpop.f32.mrb[22].mxu1 }
 0x49b   : > { %v4532_v63 = vpop.f32.mrb[23].mxu1 }
 0x4a0   : > { %v2461_v60 = vpop.f32.mrb[24].mxu1 }
 0x4a1   : > { %v4537_v1 = vpop.f32.mrb[25].mxu1 }
 0x4a2   : > { %v2464_v3 = vpop.f32.mrb[26].mxu1 }
 0x4a3   : > { %v4538_v4 = vpop.f32.mrb[27].mxu1 }
 0x4a4   : > { %v4849_v4 = vld [vmem:[%s5060_s22] sm:$0xff] }
 0x4a8   : > { %v2507_v6 = vpop.f32.mrb[28].mxu1 }
 0x4a9   : > { %v2559_v7 = vcombine.low %v2415_v59, %v2507_v6  ;;  %v2560_v8 = vcombine.high %v2415_v59, %v2507_v6  ;;  %v4543_v9 = vpop.f32.mrb[29].mxu1 }
 0x4aa   : > { %v2510_v54 = vpop.f32.mrb[30].mxu1 }
 0x4ab   : > { %v4544_v10 = vpop.f32.mrb[31].mxu1  ;;  %v2567_v17 = vrot.slane %v2559_v7, %v5178_v5  ;;  %v2574_v18 = vrot.slane %v2560_v8, %v5178_v5  ;;  %v4755_v54 = vld [vmem:[%s5804_s6] sm:$0xff]  }
 0x4ac   : > { %4572 = vmatpush3.bf16.msra.mxu1 %v4755_v54  ;;  %v4756_v10 = vld [vmem:[%s5804_s6 + $0x8] sm:$0xff]  }
 0x4ad   : > { %4573 = vmatprep.subr.bf16.mxu1 %v4875_v20 }
 0x4b0   : > { %v2553_v12 = vpop.f32.mrb[32].mxu1  ;;  %4574 = vmatpush3.bf16.msra.mxu1 %v4756_v10 }
 0x4b1   : > { %v2575_v13 = vcombine.low %v2461_v60, %v2553_v12  ;;  %v2576_v14 = vcombine.high %v2461_v60, %v2553_v12  ;;  %v4549_v15 = vpop.f32.mrb[33].mxu1  ;;  %4575 = vmatprep.subr.bf16.mxu1 %v4875_v20 }
 0x4b2   : > { %v2556_v16 = vpop.f32.mrb[34].mxu1 }
 0x4b3   : > { %v2583_v19 = vrot.slane %v2575_v13, %v5178_v5  ;;  %v2590_v21 = vrot.slane %v2576_v14, %v5178_v5  ;;  %v4550_v23 = vpop.f32.mrb[35].mxu1  ;;  %v4757_v16 = vld [vmem:[%s5804_s6 + $0x10] sm:$0xff]  }
 0x4b4   : > { %4576 = vmatpush3.bf16.msra.mxu1 %v4757_v16  ;;  %v4762_v23 = vld [vmem:[%s5804_s6 + $0x38] sm:$0xff]  }
 0x4b5   : > { %v2591_v24 = vcombine.low %v2567_v17, %v2583_v19  ;;  %v2592_v25 = vcombine.high %v2567_v17, %v2583_v19  ;;  %v2607_v26 = vcombine.low %v2574_v18, %v2590_v21  ;;  %v2608_v27 = vcombine.high %v2574_v18, %v2590_v21  ;;  %4577 = vmatprep.subr.bf16.mxu1 %v4875_v20  ;;  %v4758_v17 = vld [vmem:[%s5804_s6 + $0x18] sm:$0xff]   ;;  %v4759_v18 = vld [vmem:[%s5804_s6 + $0x20] sm:$0xff]   ;;  %v4760_v19 = vld [vmem:[%s5804_s6 + $0x28] sm:$0xff]  }
 0x4b6   : > { %v4761_v21 = vld [vmem:[%s5804_s6 + $0x30] sm:$0xff]  }
 0x4b7   : > { %v2599_v30 = vrot.slane %v2591_v24, %v5181_v11  ;;  %v2606_v31 = vrot.slane %v2592_v25, %v5181_v11  ;;  %v2615_v32 = vrot.slane %v2607_v26, %v5181_v11  ;;  %v2622_v33 = vrot.slane %v2608_v27, %v5181_v11 }
 0x4b8   : > { %4578 = vmatpush3.bf16.msra.mxu1 %v4758_v17 }
 0x4b9   : > { %v2627_v34 = vcombine.low %v2599_v30, %v2606_v31  ;;  %v4312_v35 = vcombine.high %v2599_v30, %v2606_v31  ;;  %v2643_v36 = vcombine.low %v2615_v32, %v2622_v33  ;;  %v4313_v37 = vcombine.high %v2615_v32, %v2622_v33  ;;  %4579 = vmatprep.subr.bf16.mxu1 %v4875_v20 }
 0x4bb   : > { %v2634_v40 = vrot.slane %v2627_v34, %v5178_v5  ;;  %v2642_v22 = vrot.slane %v4312_v35, %v5178_v5  ;;  %v2650_v42 = vrot.slane %v2643_v36, %v5178_v5  ;;  %v2658_v43 = vrot.slane %v4313_v37, %v5178_v5 }
 0x4bc   : > { %4580 = vmatpush3.bf16.msra.mxu1 %v4759_v18 }
 0x4bd   : > { %v2660_v48 = vcombine.high %v2634_v40, %v2642_v22  ;;  %v2676_v49 = vcombine.high %v2650_v42, %v2658_v43  ;;  %v2659_v50 = vcombine.low %v2634_v40, %v2642_v22  ;;  %v2675_v28 = vcombine.low %v2650_v42, %v2658_v43  ;;  %4581 = vmatprep.subr.bf16.mxu1 %v4875_v20 }
 0x4bf   : > { %v2674_v51 = vrot.slane %v2660_v48, %v5181_v11  ;;  %v2690_v52 = vrot.slane %v2676_v49, %v5181_v11  ;;  %v2667_v53 = vrot.slane %v2659_v50, %v5181_v11  ;;  %v2683_v39 = vrot.slane %v2675_v28, %v5181_v11 }
 0x4c0   : > { %4582 = vmatpush3.bf16.msra.mxu1 %v4760_v19 }
 0x4c1   : > { %v2693_v41 = vcombine.low %v2674_v51, %v2690_v52  ;;  %v2692_v55 = vcombine.high %v2667_v53, %v2683_v39  ;;  %v2694_v56 = vcombine.high %v2674_v51, %v2690_v52  ;;  %v2691_v57 = vcombine.low %v2667_v53, %v2683_v39  ;;  %4583 = vmatprep.subr.bf16.mxu1 %v4875_v20 }
 0x4c3   : > { %2700 = vrot.lane.b32.xlu1 %v2693_v41, %s5837_s3  ;;  %2696 = vrot.lane.b32.xlu0 %v2692_v55, %s5839_s27 }
 0x4c4   : > { %4584 = vmatpush3.bf16.msra.mxu1 %v4761_v21 }
 0x4c5   : > { %4585 = vmatprep.subr.bf16.mxu1 %v4875_v20 }
 0x4c7   : > { %2704 = vrot.lane.b32.xlu1 %v2694_v56, %s5838_s29 }
 0x4c8   : > { %4586 = vmatpush3.bf16.msra.mxu1 %v4762_v23 }
 0x4c9   : > { %4597 = vmatprep.subr.bf16.mxu1 %v4875_v20 }
 0x535   : > { %v2701_v58 = vpop.permute.xlu1 %2700  ;;  %v2697_v59 = vpop.permute.xlu0 %2696 }
 0x536   : > { %v2707_v61 = vsel %vm1543_vm2, %v2691_v57, %v2697_v59 }
 0x537   : > { %v2709_v63 = vsel %vm2708_vm6, %v2707_v61, %v2701_v58 }
 0x539   : > { %v2705_v62 = vpop.permute.xlu1 %2704 }
 0x53a   : > { %v2711_v60 = vsel %vm2710_vm7, %v2709_v63, %v2705_v62 }
 0x53b   : > { %v2712_v1 = vpack.c.bf16 %v2711_v60, %v2711_v60 }
 0x53d   : > { %4568 = vmatmul.mubr.bf16.vlgmr.msra.gmra.mrb[8].mxu0 %v2712_v1 }
 0x53e   : > { %4593 = vmatprep.mubr.msk.bf16.mxu0 %vm4876_vm0, %v4875_v20 }
 0x610   : > { %v2795_v3 = vpop.f32.mrb[8].mxu0 }
 0x611   : > { %v2801_v6 = vadd.f32 %v4849_v4, %v2795_v3  ;;  %v4569_v7 = vpop.f32.mrb[9].mxu0 }
 0x612   : > { %v2798_v8 = vpop.f32.mrb[10].mxu0 }
 0x613   : > { %2804 = vadd.xlane.f32.xlu0 %v2801_v6  ;;  %v4570_v9 = vpop.f32.mrb[11].mxu0 }
 0x629   : > { %1249 = vrot.lane.b32.xlu0 %v5241_v44, %s5838_s29 }
 0x62d   : > { %1255 = vrot.lane.b32.xlu0 %v5241_v44, %s5837_s3 }
 0x631   : > { %1261 = vrot.lane.b32.xlu0 %v5241_v44, %s5839_s27 }
 0x6a0   : > { %v2805_v12 = vpop.xlane.xlu0 %2804 }
 0x6a1   : > { %v2807_v13 = vmul.f32 0.0078125, %v2805_v12 }
 0x6a3   : > { %v5394_v14 = vsub.f32 %v2801_v6, %v2807_v13  ;;  %v4323_v13 = vld [vmem:[%s5812_s14] ss:$0 sm:$0xff] }
 0x6a4   : > { %v1250_v24 = vpop.permute.xlu0 %1249 }
 0x6a5   : > { %v2809_v15 = vmul.f32 %v5394_v14, %v5394_v14 }
 0x6a7   : > { %2810 = vadd.xlane.f32.xlu1 %v2809_v15 }
 0x6a8   : > { %v1256_v25 = vpop.permute.xlu0 %1255 }
 0x6a9   : > { %v1267_v29 = vcombine.low %v5241_v44, %v1256_v25  ;;  %v1268_v31 = vcombine.high %v5241_v44, %v1256_v25 }
 0x6ab   : > { %v1275_v33 = vrot.slane %v1267_v29, %v5178_v5  ;;  %v1282_v37 = vrot.slane %v1268_v31, %v5178_v5 }
 0x6ac   : > { %v1262_v26 = vpop.permute.xlu0 %1261 }
 0x6ad   : > { %v1283_v27 = vcombine.low %v1250_v24, %v1262_v26  ;;  %v1284_v30 = vcombine.high %v1250_v24, %v1262_v26 }
 0x6af   : > { %v1291_v32 = vrot.slane %v1283_v27, %v5178_v5  ;;  %v1298_v34 = vrot.slane %v1284_v30, %v5178_v5 }
 0x6b1   : > { %v1299_v38 = vcombine.low %v1275_v33, %v1291_v32  ;;  %v1300_v40 = vcombine.high %v1275_v33, %v1291_v32  ;;  %v1315_v42 = vcombine.low %v1282_v37, %v1298_v34  ;;  %v1316_v43 = vcombine.high %v1282_v37, %v1298_v34 }
 0x6b3   : > { %v1307_v49 = vrot.slane %v1299_v38, %v5181_v11  ;;  %v1314_v44 = vrot.slane %v1300_v40, %v5181_v11  ;;  %v1323_v50 = vrot.slane %v1315_v42, %v5181_v11  ;;  %v1330_v28 = vrot.slane %v1316_v43, %v5181_v11 }
 0x6b5   : > { %v1403_v52 = vcombine.low %v1307_v49, %v1314_v44  ;;  %v4286_v53 = vcombine.high %v1307_v49, %v1314_v44  ;;  %v1419_v55 = vcombine.low %v1323_v50, %v1330_v28  ;;  %v4287_v56 = vcombine.high %v1323_v50, %v1330_v28 }
 0x6b7   : > { %v1410_v61 = vrot.slane %v1403_v52, %v5178_v5  ;;  %v1418_v62 = vrot.slane %v4286_v53, %v5178_v5  ;;  %v1426_v6 = vrot.slane %v1419_v55, %v5178_v5  ;;  %v1434_v7 = vrot.slane %v4287_v56, %v5178_v5 }
 0x6b8   : > { %1251 = vrot.lane.b32.xlu1 %v5245_v46, %s5838_s29 }
 0x6b9   : > { %v1435_v15 = vcombine.low %v1410_v61, %v1418_v62  ;;  %v1436_v23 = vcombine.high %v1410_v61, %v1418_v62  ;;  %v1452_v24 = vcombine.high %v1426_v6, %v1434_v7 }
 0x6bb   : > { %v1450_v37 = vrot.slane %v1436_v23, %v5181_v11  ;;  %v1466_v40 = vrot.slane %v1452_v24, %v5181_v11 }
 0x6bc   : > { %1257 = vrot.lane.b32.xlu1 %v5245_v46, %s5837_s3 }
 0x6bd   : > { %v1469_v53 = vcombine.low %v1450_v37, %v1466_v40 }
 0x6c0   : > { %1263 = vrot.lane.b32.xlu1 %v5245_v46, %s5839_s27 }
 0x734   : > { %v2811_v35 = vpop.xlane.xlu1 %2810 }
 0x735   : > { %v2812_v36 = vmul.f32 0.0078125, %v2811_v35 }
 0x737   : > { %v2813_v22 = vadd.f32 1e-05, %v2812_v36  ;;  %v1443_v36 = vrot.slane %v1435_v15, %v5181_v11 }
 0x738   : > { %v1252_v48 = vpop.permute.xlu1 %1251 }
 0x739   : > { %4827 = vrsqrt.f32 %v2813_v22 }
 0x73c   : > { %v1258_v51 = vpop.permute.xlu1 %1257 }
 0x73d   : > { %v1335_v39 = vcombine.low %v5245_v46, %v1258_v51  ;;  %v1336_v41 = vcombine.high %v5245_v46, %v1258_v51  ;;  %v4322_v46 = vld [vmem:[%s5811_s13] ss:$0 sm:$0xff] }
 0x73f   : > { %v1343_v60 = vrot.slane %v1335_v39, %v5178_v5  ;;  %v1350_v1 = vrot.slane %v1336_v41, %v5178_v5  ;;  %v1470_v39 = vcombine.high %v1450_v37, %v1466_v40 }
 0x740   : > { %v1264_v57 = vpop.permute.xlu1 %1263 }
 0x741   : > { %v1351_v58 = vcombine.low %v1252_v48, %v1264_v57  ;;  %v1352_v59 = vcombine.high %v1252_v48, %v1264_v57 }
 0x743   : > { %v4828_v63 = vpop.eup %4827  ;;  %v1359_v3 = vrot.slane %v1351_v58, %v5178_v5  ;;  %v1366_v4 = vrot.slane %v1352_v59, %v5178_v5 }
 0x744   : > { %v2815_v8 = vmul.f32 %v4828_v63, %v5394_v14  ;;  %v1451_v14 = vcombine.low %v1426_v6, %v1434_v7 }
 0x745   : > { %v1367_v9 = vcombine.low %v1343_v60, %v1359_v3  ;;  %v1368_v54 = vcombine.high %v1343_v60, %v1359_v3  ;;  %v1383_v10 = vcombine.low %v1350_v1, %v1366_v4  ;;  %v1384_v12 = vcombine.high %v1350_v1, %v1366_v4 }
 0x746   : > { %v2822_v16 = vmul.f32 %v4322_v46, %v2815_v8  ;;  %v1459_v38 = vrot.slane %v1451_v14, %v5181_v11 }
 0x747   : > { %v1375_v17 = vrot.slane %v1367_v9, %v5181_v11  ;;  %v1382_v18 = vrot.slane %v1368_v54, %v5181_v11  ;;  %v1391_v19 = vrot.slane %v1383_v10, %v5181_v11  ;;  %v1398_v21 = vrot.slane %v1384_v12, %v5181_v11 }
 0x748   : > { %v5459_v25 = vadd.f32 %v4323_v13, %v2822_v16  ;;  %v1467_v51 = vcombine.low %v1443_v36, %v1459_v38  ;;  %v1468_v52 = vcombine.high %v1443_v36, %v1459_v38 }
 0x749   : > { %v1471_v26 = vcombine.low %v1375_v17, %v1382_v18  ;;  %v4288_v27 = vcombine.high %v1375_v17, %v1382_v18  ;;  %v1487_v29 = vcombine.low %v1391_v19, %v1398_v21  ;;  %v4289_v30 = vcombine.high %v1391_v19, %v1398_v21 }
 0x74a   : > { %v2870_v31 = vpack.c.bf16 %v5459_v25, %v5459_v25 }
 0x74b   : > { %v1478_v32 = vrot.slane %v1471_v26, %v5178_v5  ;;  %v1486_v33 = vrot.slane %v4288_v27, %v5178_v5  ;;  %v1494_v34 = vrot.slane %v1487_v29, %v5178_v5  ;;  %v1502_v35 = vrot.slane %v4289_v30, %v5178_v5 }
 0x74c   : > { %4588 = vmatmul.mubr.bf16.vlgmr.msra.gmra.mrb[36].mxu1 %v2870_v31 }
 0x74d   : > { %v1503_v22 = vcombine.low %v1478_v32, %v1486_v33  ;;  %v1504_v42 = vcombine.high %v1478_v32, %v1486_v33  ;;  %v1519_v43 = vcombine.low %v1494_v34, %v1502_v35  ;;  %v1520_v48 = vcombine.high %v1494_v34, %v1502_v35  ;;  %4599 = vmatprep.mubr.msk.bf16.mxu1 %vm4876_vm0, %v4875_v20 }
 0x74f   : > { %v1511_v49 = vrot.slane %v1503_v22, %v5181_v11  ;;  %v1518_v44 = vrot.slane %v1504_v42, %v5181_v11  ;;  %v1527_v50 = vrot.slane %v1519_v43, %v5181_v11  ;;  %v1534_v28 = vrot.slane %v1520_v48, %v5181_v11 }
 0x751   : > { %v1535_v41 = vcombine.low %v1511_v49, %v1527_v50  ;;  %v1536_v55 = vcombine.high %v1511_v49, %v1527_v50  ;;  %v1537_v56 = vcombine.low %v1518_v44, %v1534_v28  ;;  %v1538_v57 = vcombine.high %v1518_v44, %v1534_v28 }
 0x753   : > { %v1539_v58 = vpack.c.bf16 %v1535_v41, %v1467_v51  ;;  %v1540_v59 = vpack.c.bf16 %v1536_v55, %v1468_v52  ;;  %v1541_v61 = vpack.c.bf16 %v1537_v56, %v1469_v53  ;;  %v1542_v62 = vpack.c.bf16 %v1538_v57, %v1470_v39 }
 0x755   : > { %1544 = vst.msk [vmem:[#allocation4] sm:$0xff] %vm1543_vm2, %v1539_v58  ;;  %1545 = vst.msk [vmem:[#allocation4 + $0x8] sm:$0xff] %vm1543_vm2, %v1540_v59 }
 0x756   : > { %1546 = vst.msk [vmem:[#allocation4 + $0x10] sm:$0xff] %vm1543_vm2, %v1541_v61  ;;  %1547 = vst.msk [vmem:[#allocation4 + $0x18] sm:$0xff] %vm1543_vm2, %v1542_v62 }
 0x75c   : > { %v2846_v63 = vld [vmem:[#allocation4] sm:$0xff]  ;;  %v2847_v60 = vld [vmem:[#allocation4 + $0x8] sm:$0xff] }
 0x75d   : > { %v3120_v1 = vsel %vm1543_vm2, %v2846_v63, 0  ;;  %v3166_v3 = vsel %vm1543_vm2, %v2847_v60, 0  ;;  %v2848_v51 = vld [vmem:[#allocation4 + $0x10] sm:$0xff]  ;;  %v2849_v52 = vld [vmem:[#allocation4 + $0x18] sm:$0xff]  ;;  %v4334_v63 = vld [vmem:[%s644_s7] ss:$0 sm:$0xff] }
 0x75e   : > { %4592 = vmatpush3.bf16.xpose.msra.mxu0 %v3120_v1  ;;  %4598 = vmatpush3.bf16.xpose.msra.mxu1 %v3166_v3  ;;  %v3212_v56 = vsel %vm1543_vm2, %v2848_v51, 0  ;;  %v3258_v57 = vsel %vm1543_vm2, %v2849_v52, 0  ;;  %s5841_s7 = sshll.u32 %s5847_s0, 3 }
 0x75f   : > { %4603 = vmatprep.subr.bf16.mxu0 %v4875_v20  ;;  %4609 = vmatprep.subr.bf16.mxu1 %v4875_v20  ;;  %s651_s28 = scalar_lea.vmem %s5817_s19, %s5841_s7 }
 0x81f   : > { %v2953_v4 = vpop.f32.mrb[36].mxu1 }
 0x820   : > { %v2959_v46 = vmul.f32 0.17677669, %v2953_v4  ;;  %v4589_v6 = vpop.f32.mrb[37].mxu1 }
 0x821   : > { %v2956_v7 = vpop.f32.mrb[38].mxu1 }
 0x822   : > { %2964 = vrot.lane.b32.xlu1 %v2959_v46, %s5837_s3  ;;  %2961 = vrot.lane.b32.xlu0 %v2959_v46, %s5838_s29  ;;  %v4590_v8 = vpop.f32.mrb[39].mxu1 }
 0x826   : > { %2967 = vrot.lane.b32.xlu0 %v2959_v46, %s5839_s27 }
 0x894   : > { %v2965_v9 = vpop.permute.xlu1 %2964  ;;  %v2962_v54 = vpop.permute.xlu0 %2961 }
 0x895   : > { %v2970_v10 = vcombine.low %v2959_v46, %v2965_v9  ;;  %v2971_v12 = vcombine.high %v2959_v46, %v2965_v9 }
 0x897   : > { %v2978_v17 = vrot.slane %v2970_v10, %v5178_v5  ;;  %v2985_v18 = vrot.slane %v2971_v12, %v5178_v5 }
 0x898   : > { %v2968_v13 = vpop.permute.xlu0 %2967 }
 0x899   : > { %v2986_v15 = vcombine.low %v2962_v54, %v2968_v13  ;;  %v2987_v16 = vcombine.high %v2962_v54, %v2968_v13 }
 0x89b   : > { %v2994_v19 = vrot.slane %v2986_v15, %v5178_v5  ;;  %v3001_v21 = vrot.slane %v2987_v16, %v5178_v5 }
 0x89d   : > { %v3002_v23 = vcombine.low %v2978_v17, %v2994_v19  ;;  %v3003_v14 = vcombine.high %v2978_v17, %v2994_v19  ;;  %v3018_v24 = vcombine.low %v2985_v18, %v3001_v21  ;;  %v3019_v26 = vcombine.high %v2985_v18, %v3001_v21 }
 0x89f   : > { %v3010_v27 = vrot.slane %v3002_v23, %v5181_v11  ;;  %v3017_v29 = vrot.slane %v3003_v14, %v5181_v11  ;;  %v3026_v30 = vrot.slane %v3018_v24, %v5181_v11  ;;  %v3033_v31 = vrot.slane %v3019_v26, %v5181_v11 }
 0x8a1   : > { %v3038_v32 = vcombine.low %v3010_v27, %v3017_v29  ;;  %v4332_v33 = vcombine.high %v3010_v27, %v3017_v29  ;;  %v3054_v34 = vcombine.low %v3026_v30, %v3033_v31  ;;  %v4333_v35 = vcombine.high %v3026_v30, %v3033_v31 }
 0x8a3   : > { %v3045_v36 = vrot.slane %v3038_v32, %v5178_v5  ;;  %v3053_v37 = vrot.slane %v4332_v33, %v5178_v5  ;;  %v3061_v38 = vrot.slane %v3054_v34, %v5178_v5  ;;  %v3069_v40 = vrot.slane %v4333_v35, %v5178_v5 }
 0x8a5   : > { %v3070_v22 = vcombine.low %v3045_v36, %v3053_v37  ;;  %v3086_v42 = vcombine.low %v3061_v38, %v3069_v40  ;;  %v3071_v43 = vcombine.high %v3045_v36, %v3053_v37  ;;  %v3087_v48 = vcombine.high %v3061_v38, %v3069_v40 }
 0x8a7   : > { %v3078_v49 = vrot.slane %v3070_v22, %v5181_v11  ;;  %v3094_v44 = vrot.slane %v3086_v42, %v5181_v11  ;;  %v3085_v41 = vrot.slane %v3071_v43, %v5181_v11  ;;  %v3101_v55 = vrot.slane %v3087_v48, %v5181_v11 }
 0x8a9   : > { %v3102_v50 = vcombine.low %v3078_v49, %v3094_v44  ;;  %v3103_v28 = vcombine.high %v3078_v49, %v3094_v44  ;;  %v3104_v58 = vcombine.low %v3085_v41, %v3101_v55  ;;  %v3105_v59 = vcombine.high %v3085_v41, %v3101_v55 }
 0x8ab   : > { %v3106_v53 = vpack.c.bf16 %v3102_v50, %v3102_v50  ;;  %v3107_v39 = vpack.c.bf16 %v3103_v28, %v3103_v28  ;;  %v3108_v61 = vpack.c.bf16 %v3104_v58, %v3104_v58  ;;  %v3109_v62 = vpack.c.bf16 %v3105_v59, %v3105_v59 }
 0x8ad   : > { %4594 = vmatmul.mubr.msk.bf16.vlgmr.msra.gmra.mrb[12].mxu0 %vm1543_vm2, %v3106_v53  ;;  %4600 = vmatmul.mubr.msk.bf16.vlgmr.msra.gmra.mrb[40].mxu1 %vm1543_vm2, %v3107_v39 }
 0x8ae   : > { %4604 = vmatpush3.bf16.xpose.msra.mxu0 %v3212_v56  ;;  %4610 = vmatpush3.bf16.xpose.msra.mxu1 %v3258_v57 }
 0x8af   : > { %4605 = vmatprep.mubr.msk.bf16.mxu0 %vm4876_vm0, %v4875_v20  ;;  %4611 = vmatprep.mubr.msk.bf16.mxu1 %vm4876_vm0, %v4875_v20 }
 0x8b0   : > { %4615 = vmatprep.subr.bf16.mxu0 %v4875_v20  ;;  %4621 = vmatprep.subr.bf16.mxu1 %v4875_v20 }
 0x8b5   : > { %4606 = vmatmul.mubr.msk.bf16.vlgmr.msra.gmra.mrb[16].mxu0 %vm1543_vm2, %v3108_v61  ;;  %4612 = vmatmul.mubr.msk.bf16.vlgmr.msra.gmra.mrb[44].mxu1 %vm1543_vm2, %v3109_v62 }
 0x8b6   : > { %4617 = vmatprep.mubr.msk.bf16.mxu0 %vm4876_vm0, %v4875_v20  ;;  %4623 = vmatprep.mubr.msk.bf16.mxu1 %vm4876_vm0, %v4875_v20 }
 0x980   : > { %v3156_v60 = vpop.f32.mrb[12].mxu0  ;;  %v3202_v1 = vpop.f32.mrb[40].mxu1 }
 0x981   : > { %v3157_v3 = vadd.f32 %v4334_v63, %v3156_v60  ;;  %v3203_v4 = vadd.f32 %v4334_v63, %v3202_v1  ;;  %v4595_v46 = vpop.f32.mrb[13].mxu0  ;;  %v4601_v6 = vpop.f32.mrb[41].mxu1 }
 0x982   : > { %v3159_v7 = vpop.f32.mrb[14].mxu0  ;;  %v3205_v8 = vpop.f32.mrb[42].mxu1 }
 0x983   : > { %v4596_v9 = vpop.f32.mrb[15].mxu0  ;;  %v4602_v54 = vpop.f32.mrb[43].mxu1  ;;  %v3304_v10 = vsel %vm3300_vm8, %v3203_v4, -inf  ;;  %v3301_v12 = vsel %vm3300_vm8, %v3157_v3, -inf }
 0x984   : > { %3305 = vmax.xlane.f32.xlu0 %v3304_v10  ;;  %3302 = vmax.xlane.f32.xlu1 %v3301_v12 }
 0x988   : > { %v3248_v13 = vpop.f32.mrb[16].mxu0  ;;  %v3294_v15 = vpop.f32.mrb[44].mxu1 }
 0x989   : > { %v3249_v16 = vadd.f32 %v4334_v63, %v3248_v13  ;;  %v3295_v17 = vadd.f32 %v4334_v63, %v3294_v15  ;;  %v4607_v18 = vpop.f32.mrb[17].mxu0  ;;  %v4613_v19 = vpop.f32.mrb[45].mxu1 }
 0x98a   : > { %v3251_v21 = vpop.f32.mrb[18].mxu0  ;;  %v3297_v23 = vpop.f32.mrb[46].mxu1 }
 0x98b   : > { %v4608_v14 = vpop.f32.mrb[19].mxu0  ;;  %v4614_v24 = vpop.f32.mrb[47].mxu1  ;;  %v3310_v26 = vsel %vm3300_vm8, %v3295_v17, -inf  ;;  %v3307_v27 = vsel %vm3300_vm8, %v3249_v16, -inf }
 0x98c   : > { %3311 = vmax.xlane.f32.xlu1 %v3310_v26  ;;  %3308 = vmax.xlane.f32.xlu0 %v3307_v27 }
 0x99d   : > { %1552 = vrot.lane.b32.xlu1 %v5247_v47, %s5838_s29 }
 0x9a1   : > { %1556 = vrot.lane.b32.xlu1 %v5243_v45, %s5837_s3 }
 0x9a2   : > { %1550 = vrot.lane.b32.xlu0 %v5243_v45, %s5838_s29 }
 0x9a5   : > { %1562 = vrot.lane.b32.xlu1 %v5243_v45, %s5839_s27 }
 0x9a6   : > { %1558 = vrot.lane.b32.xlu0 %v5247_v47, %s5837_s3 }
 0x9aa   : > { %1564 = vrot.lane.b32.xlu0 %v5247_v47, %s5839_s27 }
 0xa11   : > { %v3306_v29 = vpop.xlane.xlu0 %3305  ;;  %v3303_v30 = vpop.xlane.xlu1 %3302 }
 0xa12   : > { %v3314_v31 = vsub.f32 %v3203_v4, %v3306_v29  ;;  %v3313_v32 = vsub.f32 %v3157_v3, %v3303_v30 }
 0xa14   : > { %v3319_v33 = vmul.f32 1.442695, %v3314_v31  ;;  %v3317_v34 = vmul.f32 1.442695, %v3313_v32 }
 0xa16   : > { %4829 = vpow2.f32 %v3319_v33 }
 0xa17   : > { %4831 = vpow2.f32 %v3317_v34 }
 0xa19   : > { %v3312_v35 = vpop.xlane.xlu1 %3311  ;;  %v3309_v36 = vpop.xlane.xlu0 %3308 }
 0xa1a   : > { %v3316_v37 = vsub.f32 %v3295_v17, %v3312_v35  ;;  %v3315_v48 = vsub.f32 %v3249_v16, %v3309_v36 }
 0xa1c   : > { %v3323_v38 = vmul.f32 1.442695, %v3316_v37  ;;  %v3321_v53 = vmul.f32 1.442695, %v3315_v48 }
 0xa1d   : > { %v1553_v40 = vpop.permute.xlu1 %1552  ;;  %v1551_v22 = vpop.permute.xlu0 %1550 }
 0xa1e   : > { %4833 = vpow2.f32 %v3323_v38 }
 0xa1f   : > { %4835 = vpow2.f32 %v3321_v53 }
 0xa20   : > { %v5540_v42 = vpop.eup %4829 }
 0xa21   : > { %v5542_v43 = vpop.eup %4831  ;;  %v1557_v49 = vpop.permute.xlu1 %1556  ;;  %v3328_v50 = vsel %vm3300_vm8, %v5540_v42, 0.0 }
 0xa22   : > { %v1559_v44 = vpop.permute.xlu0 %1558  ;;  %3329 = vadd.xlane.f32.xlu0 %v3328_v50  ;;  %v1568_v28 = vcombine.low %v5243_v45, %v1557_v49  ;;  %v1569_v51 = vcombine.high %v5243_v45, %v1557_v49  ;;  %v3325_v52 = vsel %vm3300_vm8, %v5542_v43, 0.0 }
 0xa23   : > { %3326 = vadd.xlane.f32.xlu1 %v3325_v52  ;;  %v1636_v39 = vcombine.low %v5247_v47, %v1559_v44  ;;  %v1637_v41 = vcombine.high %v5247_v47, %v1559_v44 }
 0xa24   : > { %v1576_v62 = vrot.slane %v1568_v28, %v5178_v5  ;;  %v1583_v63 = vrot.slane %v1569_v51, %v5178_v5 }
 0xa25   : > { %v1563_v55 = vpop.permute.xlu1 %1562  ;;  %v1644_v4 = vrot.slane %v1636_v39, %v5178_v5  ;;  %v1651_v46 = vrot.slane %v1637_v41, %v5178_v5 }
 0xa26   : > { %v1565_v56 = vpop.permute.xlu0 %1564  ;;  %v1584_v57 = vcombine.low %v1551_v22, %v1563_v55  ;;  %v1585_v58 = vcombine.high %v1551_v22, %v1563_v55 }
 0xa27   : > { %v1652_v59 = vcombine.low %v1553_v40, %v1565_v56  ;;  %v1653_v61 = vcombine.high %v1553_v40, %v1565_v56 }
 0xa28   : > { %v5554_v45 = vpop.eup %4833  ;;  %v1592_v60 = vrot.slane %v1584_v57, %v5178_v5  ;;  %v1599_v1 = vrot.slane %v1585_v58, %v5178_v5 }
 0xa29   : > { %v1660_v3 = vrot.slane %v1652_v59, %v5178_v5  ;;  %v1667_v47 = vrot.slane %v1653_v61, %v5178_v5  ;;  %v3334_v6 = vsel %vm3300_vm8, %v5554_v45, 0.0  ;;  %v5580_v52 = vpop.eup %4835 }
 0xa2a   : > { %v1600_v7 = vcombine.low %v1576_v62, %v1592_v60  ;;  %v1601_v8 = vcombine.high %v1576_v62, %v1592_v60  ;;  %v1616_v9 = vcombine.low %v1583_v63, %v1599_v1  ;;  %v1617_v54 = vcombine.high %v1583_v63, %v1599_v1  ;;  %3335 = vadd.xlane.f32.xlu1 %v3334_v6 }
 0xa2b   : > { %v1668_v10 = vcombine.low %v1644_v4, %v1660_v3  ;;  %v1669_v12 = vcombine.high %v1644_v4, %v1660_v3  ;;  %v1684_v13 = vcombine.low %v1651_v46, %v1667_v47  ;;  %v1685_v15 = vcombine.high %v1651_v46, %v1667_v47 }
 0xa2c   : > { %v1608_v16 = vrot.slane %v1600_v7, %v5181_v11  ;;  %v1615_v17 = vrot.slane %v1601_v8, %v5181_v11  ;;  %v1624_v18 = vrot.slane %v1616_v9, %v5181_v11  ;;  %v1631_v19 = vrot.slane %v1617_v54, %v5181_v11 }
 0xa2d   : > { %v1676_v21 = vrot.slane %v1668_v10, %v5181_v11  ;;  %v1683_v23 = vrot.slane %v1669_v12, %v5181_v11  ;;  %v1692_v14 = vrot.slane %v1684_v13, %v5181_v11  ;;  %v1699_v24 = vrot.slane %v1685_v15, %v5181_v11 }
 0xa2e   : > { %v1704_v26 = vcombine.low %v1608_v16, %v1615_v17  ;;  %v4290_v27 = vcombine.high %v1608_v16, %v1615_v17  ;;  %v1720_v29 = vcombine.low %v1624_v18, %v1631_v19  ;;  %v4291_v30 = vcombine.high %v1624_v18, %v1631_v19 }
 0xa2f   : > { %v1772_v31 = vcombine.low %v1676_v21, %v1683_v23  ;;  %v4292_v32 = vcombine.high %v1676_v21, %v1683_v23  ;;  %v1788_v33 = vcombine.low %v1692_v14, %v1699_v24  ;;  %v4293_v34 = vcombine.high %v1692_v14, %v1699_v24 }
 0xa30   : > { %v1711_v35 = vrot.slane %v1704_v26, %v5178_v5  ;;  %v1719_v36 = vrot.slane %v4290_v27, %v5178_v5  ;;  %v1727_v37 = vrot.slane %v1720_v29, %v5178_v5  ;;  %v1735_v38 = vrot.slane %v4291_v30, %v5178_v5 }
 0xa31   : > { %v1779_v40 = vrot.slane %v1772_v31, %v5178_v5  ;;  %v1787_v22 = vrot.slane %v4292_v32, %v5178_v5  ;;  %v1795_v48 = vrot.slane %v1788_v33, %v5178_v5  ;;  %v1803_v49 = vrot.slane %v4293_v34, %v5178_v5 }
 0xa32   : > { %v1736_v44 = vcombine.low %v1711_v35, %v1719_v36  ;;  %v1737_v50 = vcombine.high %v1711_v35, %v1719_v36  ;;  %v1752_v28 = vcombine.low %v1727_v37, %v1735_v38  ;;  %v1753_v51 = vcombine.high %v1727_v37, %v1735_v38  ;;  %v4764_v36 = vld [vmem:[%s5806_s8 + $0x8] sm:$0xff]   ;;  %v4766_v37 = vld [vmem:[%s5806_s8 + $0x18] sm:$0xff]   ;;  %v4767_v38 = vld [vmem:[%s5806_s8 + $0x20] sm:$0xff]  }
 0xa33   : > { %v1804_v53 = vcombine.low %v1779_v40, %v1787_v22  ;;  %v1805_v39 = vcombine.high %v1779_v40, %v1787_v22  ;;  %v1820_v41 = vcombine.low %v1795_v48, %v1803_v49  ;;  %v1821_v55 = vcombine.high %v1795_v48, %v1803_v49  ;;  %v4768_v40 = vld [vmem:[%s5806_s8 + $0x28] sm:$0xff]  }
 0xa34   : > { %v1744_v56 = vrot.slane %v1736_v44, %v5181_v11  ;;  %v1751_v57 = vrot.slane %v1737_v50, %v5181_v11  ;;  %v1760_v58 = vrot.slane %v1752_v28, %v5181_v11  ;;  %v1767_v59 = vrot.slane %v1753_v51, %v5181_v11 }
 0xa35   : > { %v1812_v61 = vrot.slane %v1804_v53, %v5181_v11  ;;  %v1819_v62 = vrot.slane %v1805_v39, %v5181_v11  ;;  %v1828_v63 = vrot.slane %v1820_v41, %v5181_v11  ;;  %v1835_v60 = vrot.slane %v1821_v55, %v5181_v11 }
 0xa36   : > { %v1768_v1 = vcombine.low %v1744_v56, %v1760_v58  ;;  %v1769_v3 = vcombine.high %v1744_v56, %v1760_v58  ;;  %v1770_v47 = vcombine.low %v1751_v57, %v1767_v59  ;;  %v1771_v4 = vcombine.high %v1751_v57, %v1767_v59 }
 0xa37   : > { %v1836_v46 = vcombine.low %v1812_v61, %v1828_v63  ;;  %v1837_v6 = vcombine.high %v1812_v61, %v1828_v63  ;;  %v1838_v7 = vcombine.low %v1819_v62, %v1835_v60  ;;  %v1839_v8 = vcombine.high %v1819_v62, %v1835_v60 }
 0xa38   : > { %v3331_v9 = vsel %vm3300_vm8, %v5580_v52, 0.0 }
 0xa39   : > { %v1840_v54 = vpack.c.bf16 %v1836_v46, %v1768_v1  ;;  %v1841_v10 = vpack.c.bf16 %v1837_v6, %v1769_v3  ;;  %v1842_v12 = vpack.c.bf16 %v1838_v7, %v1770_v47  ;;  %v1843_v13 = vpack.c.bf16 %v1839_v8, %v1771_v4  ;;  %3332 = vadd.xlane.f32.xlu0 %v3331_v9  ;;  %v4769_v46 = vld [vmem:[%s5806_s8 + $0x30] sm:$0xff]  }
 0xa3b   : > { %1844 = vst.msk [vmem:[#allocation5] sm:$0xff] %vm1543_vm2, %v1840_v54  ;;  %1845 = vst.msk [vmem:[#allocation5 + $0x8] sm:$0xff] %vm1543_vm2, %v1841_v10 }
 0xa3c   : > { %1846 = vst.msk [vmem:[#allocation5 + $0x10] sm:$0xff] %vm1543_vm2, %v1842_v12  ;;  %1847 = vst.msk [vmem:[#allocation5 + $0x18] sm:$0xff] %vm1543_vm2, %v1843_v13 }
 0xa42   : > { %v2850_v15 = vld [vmem:[#allocation5] sm:$0xff]  ;;  %v2851_v16 = vld [vmem:[#allocation5 + $0x8] sm:$0xff] }
 0xa43   : > { %4616 = vmatpush3.bf16.msra.mxu0 %v2850_v15  ;;  %4622 = vmatpush3.bf16.msra.mxu1 %v2851_v16  ;;  %v2853_v29 = vld [vmem:[#allocation5 + $0x18] sm:$0xff]  ;;  %v2852_v30 = vld [vmem:[#allocation5 + $0x10] sm:$0xff] }
 0xa44   : > { %4627 = vmatprep.subr.bf16.mxu0 %v4875_v20  ;;  %4633 = vmatprep.subr.bf16.mxu1 %v4875_v20  ;;  %v4770_v15 = vld [vmem:[%s5806_s8 + $0x38] sm:$0xff]  }
 0xaaf   : > { %v3330_v17 = vpop.xlane.xlu0 %3329 }
 0xab0   : > { %4837 = vrcp.f32 %v3330_v17  ;;  %v3327_v18 = vpop.xlane.xlu1 %3326 }
 0xab1   : > { %4839 = vrcp.f32 %v3327_v18 }
 0xab7   : > { %v3336_v19 = vpop.xlane.xlu1 %3335 }
 0xab8   : > { %4841 = vrcp.f32 %v3336_v19 }
 0xaba   : > { %v4838_v21 = vpop.eup %4837 }
 0xabb   : > { %v3342_v23 = vmul.f32 %v4838_v21, %v5540_v42  ;;  %v4840_v14 = vpop.eup %4839 }
 0xabc   : > { %v3341_v24 = vmul.f32 %v4840_v14, %v5542_v43 }
 0xabd   : > { %v3346_v26 = vpack.c.bf16 %v3342_v23, %v3342_v23 }
 0xabe   : > { %v3345_v27 = vpack.c.bf16 %v3341_v24, %v3341_v24 }
 0xabf   : > { %4624 = vmatmul.mubr.msk.bf16.vlgmr.msra.gmra.mrb[48].mxu1 %vm3300_vm8, %v3346_v26 }
 0xac0   : > { %4634 = vmatpush3.bf16.msra.mxu1 %v2853_v29  ;;  %4635 = vmatprep.mubr.msk.bf16.mxu1 %vm4876_vm0, %v4875_v20 }
 0xac1   : > { %4618 = vmatmul.mubr.msk.bf16.vlgmr.msra.gmra.mrb[20].mxu0 %vm3300_vm8, %v3345_v27 }
 0xac2   : > { %v4842_v31 = vpop.eup %4841  ;;  %4628 = vmatpush3.bf16.msra.mxu0 %v2852_v30  ;;  %4629 = vmatprep.mubr.msk.bf16.mxu0 %vm4876_vm0, %v4875_v20 }
 0xac3   : > { %v3344_v42 = vmul.f32 %v4842_v31, %v5554_v45  ;;  %4639 = vmatprep.subr.bf16.mxu0 %v4875_v20  ;;  %v4763_v45 = vld [vmem:[%s5806_s8] sm:$0xff]  }
 0xac5   : > { %v3348_v43 = vpack.c.bf16 %v3344_v42, %v3344_v42 }
 0xac6   : > { %v3333_v32 = vpop.xlane.xlu0 %3332 }
 0xac7   : > { %4843 = vrcp.f32 %v3333_v32  ;;  %4636 = vmatmul.mubr.msk.bf16.vlgmr.msra.gmra.mrb[52].mxu1 %vm3300_vm8, %v3348_v43 }
 0xac8   : > { %3930 = vmatprep.mubr.bf16.mxu1 %v4874_v2  ;;  %v4765_v2 = vld [vmem:[%s5806_s8 + $0x10] sm:$0xff]  }
 0xad1   : > { %v4844_v33 = vpop.eup %4843 }
 0xad2   : > { %v3343_v34 = vmul.f32 %v4844_v33, %v5580_v52 }
 0xad4   : > { %v3347_v35 = vpack.c.bf16 %v3343_v34, %v3343_v34 }
 0xad6   : > { %4630 = vmatmul.mubr.msk.bf16.vlgmr.msra.gmra.mrb[24].mxu0 %vm3300_vm8, %v3347_v35 }
 0xad7   : > { %4655 = vmatprep.mubr.msk.bf16.mxu0 %vm4876_vm0, %v4875_v20  ;;  %4640 = vmatpush3.bf16.msra.mxu0 %v4763_v45 }
 0xad8   : > { %4641 = vmatprep.subr.bf16.mxu0 %v4875_v20 }
 0xadb   : > { %4642 = vmatpush3.bf16.msra.mxu0 %v4764_v36 }
 0xadc   : > { %4643 = vmatprep.subr.bf16.mxu0 %v4875_v20 }
 0xadf   : > { %4644 = vmatpush3.bf16.msra.mxu0 %v4765_v2 }
 0xae0   : > { %4645 = vmatprep.subr.bf16.mxu0 %v4875_v20 }
 0xae3   : > { %4646 = vmatpush3.bf16.msra.mxu0 %v4766_v37 }
 0xae4   : > { %4647 = vmatprep.subr.bf16.mxu0 %v4875_v20 }
 0xae7   : > { %4648 = vmatpush3.bf16.msra.mxu0 %v4767_v38 }
 0xae8   : > { %4649 = vmatprep.subr.bf16.mxu0 %v4875_v20 }
 0xaeb   : > { %4650 = vmatpush3.bf16.msra.mxu0 %v4768_v40 }
 0xaec   : > { %4651 = vmatprep.subr.bf16.mxu0 %v4875_v20 }
 0xaef   : > { %4652 = vmatpush3.bf16.msra.mxu0 %v4769_v46  ;;  %v4796_v46 = vld [vmem:[%s5809_s11] sm:$0xff]  }
 0xaf0   : > { %4653 = vmatprep.subr.bf16.mxu0 %v4875_v20 }
 0xaf3   : > { %4654 = vmatpush3.bf16.msra.mxu0 %v4770_v15  ;;  %v4805_v15 = vld [vmem:[%s5809_s11 + $0x68] sm:$0xff]  }
 0xb92   : > { %v3429_v22 = vpop.f32.mrb[48].mxu1 }
 0xb93   : > { %v4625_v48 = vpop.f32.mrb[49].mxu1 }
 0xb94   : > { %v3386_v49 = vpop.f32.mrb[20].mxu0  ;;  %v3432_v44 = vpop.f32.mrb[50].mxu1 }
 0xb95   : > { %v4619_v50 = vpop.f32.mrb[21].mxu0  ;;  %v4626_v28 = vpop.f32.mrb[51].mxu1 }
 0xb96   : > { %v3389_v51 = vpop.f32.mrb[22].mxu0  ;;  %v4771_v50 = vld [vmem:[%s5807_s9] ss:$8 sps:$4 sm:$0xff]   ;;  %v4773_v28 = vld [vmem:[%s5807_s9 + $0x4] ss:$8 sps:$4 sm:$0xff]  }
 0xb97   : > { %v4620_v52 = vpop.f32.mrb[23].mxu0  ;;  %v4776_v51 = vld [vmem:[%s5807_s9 + $0x14] ss:$8 sps:$4 sm:$0xff]   ;;  %3898 = vmatprep.subr.bf16.mxu1 %v4773_v28 }
 0xb98   : > { %3899 = vmatpush1.bf16.msra.mxu1 %v4771_v50  ;;  %v4779_v52 = vld [vmem:[%s5807_s9 + $0x24] ss:$8 sps:$4 sm:$0xff]  }
 0xb99   : > { %3900 = vmatprep.subr.bf16.mxu1 %v4776_v51 }
 0xb9a   : > { %v3515_v53 = vpop.f32.mrb[52].mxu1 }
 0xb9b   : > { %v3537_v39 = vcombine.low %v3429_v22, %v3515_v53  ;;  %v3538_v41 = vcombine.high %v3429_v22, %v3515_v53  ;;  %v4637_v55 = vpop.f32.mrb[53].mxu1  ;;  %v4777_v53 = vld [vmem:[%s5807_s9 + $0x20] ss:$8 sps:$4 sm:$0xff]  }
 0xb9c   : > { %v3518_v56 = vpop.f32.mrb[54].mxu1 }
 0xb9d   : > { %v4638_v57 = vpop.f32.mrb[55].mxu1  ;;  %v3545_v62 = vrot.slane %v3537_v39, %v5178_v5  ;;  %v3552_v63 = vrot.slane %v3538_v41, %v5178_v5 }
 0xb9e   : > { %v4782_v57 = vld [vmem:[%s5807_s9 + $0x34] ss:$8 sps:$4 sm:$0xff]  }
 0xba9   : > { %v3472_v58 = vpop.f32.mrb[24].mxu0 }
 0xbaa   : > { %v3521_v59 = vcombine.low %v3386_v49, %v3472_v58  ;;  %v3522_v61 = vcombine.high %v3386_v49, %v3472_v58  ;;  %v4631_v60 = vpop.f32.mrb[25].mxu0  ;;  %v4780_v58 = vld [vmem:[%s5807_s9 + $0x30] ss:$8 sps:$4 sm:$0xff]  }
 0xbab   : > { %v3475_v1 = vpop.f32.mrb[26].mxu0  ;;  %v4791_v60 = vld [vmem:[%s5807_s9 + $0x64] ss:$8 sps:$4 sm:$0xff]  }
 0xbac   : > { %v3529_v3 = vrot.slane %v3521_v59, %v5178_v5  ;;  %v3536_v47 = vrot.slane %v3522_v61, %v5178_v5  ;;  %v4632_v4 = vpop.f32.mrb[27].mxu0  ;;  %v4785_v59 = vld [vmem:[%s5807_s9 + $0x44] ss:$8 sps:$4 sm:$0xff]   ;;  %v4783_v61 = vld [vmem:[%s5807_s9 + $0x40] ss:$8 sps:$4 sm:$0xff]  }
 0xbad   : > { %v4789_v1 = vld [vmem:[%s5807_s9 + $0x60] ss:$8 sps:$4 sm:$0xff]  }
 0xbae   : > { %v3553_v6 = vcombine.low %v3529_v3, %v3545_v62  ;;  %v3554_v7 = vcombine.high %v3529_v3, %v3545_v62  ;;  %v3569_v8 = vcombine.low %v3536_v47, %v3552_v63  ;;  %v3570_v9 = vcombine.high %v3536_v47, %v3552_v63  ;;  %v4788_v62 = vld [vmem:[%s5807_s9 + $0x54] ss:$8 sps:$4 sm:$0xff]   ;;  %v4786_v63 = vld [vmem:[%s5807_s9 + $0x50] ss:$8 sps:$4 sm:$0xff]   ;;  %v4795_v4 = vld [vmem:[%s5809_s11 + $0x40] sm:$0xff]  }
 0xbaf   : > { %v4794_v3 = vld [vmem:[%s5807_s9 + $0x74] ss:$8 sps:$4 sm:$0xff]   ;;  %v4792_v47 = vld [vmem:[%s5807_s9 + $0x70] ss:$8 sps:$4 sm:$0xff]   ;;  %4461 = vmatprep.subr.bf16.mxu0 %v4795_v4 }
 0xbb0   : > { %v3561_v54 = vrot.slane %v3553_v6, %v5181_v11  ;;  %v3568_v10 = vrot.slane %v3554_v7, %v5181_v11  ;;  %v3577_v12 = vrot.slane %v3569_v8, %v5181_v11  ;;  %v3584_v13 = vrot.slane %v3570_v9, %v5181_v11  ;;  %v4797_v6 = vld [vmem:[%s5809_s11 + $0x48] sm:$0xff]   ;;  %v4799_v8 = vld [vmem:[%s5809_s11 + $0x50] sm:$0xff]  }
 0xbb1   : > { %v4798_v7 = vld [vmem:[%s5809_s11 + $0x8] sm:$0xff]   ;;  %v4800_v9 = vld [vmem:[%s5809_s11 + $0x10] sm:$0xff]  }
 0xbb2   : > { %v3589_v16 = vcombine.low %v3561_v54, %v3568_v10  ;;  %v4343_v17 = vcombine.high %v3561_v54, %v3568_v10  ;;  %v3605_v18 = vcombine.low %v3577_v12, %v3584_v13  ;;  %v4344_v19 = vcombine.high %v3577_v12, %v3584_v13  ;;  %v4801_v54 = vld [vmem:[%s5809_s11 + $0x58] sm:$0xff]   ;;  %v4803_v12 = vld [vmem:[%s5809_s11 + $0x60] sm:$0xff]  }
 0xbb3   : > { %v4802_v10 = vld [vmem:[%s5809_s11 + $0x18] sm:$0xff]   ;;  %v4804_v13 = vld [vmem:[%s5809_s11 + $0x20] sm:$0xff]  }
 0xbb4   : > { %v3596_v21 = vrot.slane %v3589_v16, %v5178_v5  ;;  %v3604_v23 = vrot.slane %v4343_v17, %v5178_v5  ;;  %v3612_v14 = vrot.slane %v3605_v18, %v5178_v5  ;;  %v3620_v24 = vrot.slane %v4344_v19, %v5178_v5  ;;  %v4806_v16 = vld [vmem:[%s5809_s11 + $0x28] sm:$0xff]  }
 0xbb6   : > { %v3622_v26 = vcombine.high %v3596_v21, %v3604_v23  ;;  %v3638_v27 = vcombine.high %v3612_v14, %v3620_v24  ;;  %v3621_v20 = vcombine.low %v3596_v21, %v3604_v23  ;;  %v3637_v29 = vcombine.low %v3612_v14, %v3620_v24  ;;  %v4353_v23 = vld [vmem:[%s5813_s15] ss:$0 sm:$0xff] }
 0xbb7   : > { %v4354_v24 = vld [vmem:[%s5814_s16] ss:$0 sm:$0xff] }
 0xbb8   : > { %v3636_v30 = vrot.slane %v3622_v26, %v5181_v11  ;;  %v3652_v31 = vrot.slane %v3638_v27, %v5181_v11  ;;  %v3629_v42 = vrot.slane %v3621_v20, %v5181_v11  ;;  %v3645_v43 = vrot.slane %v3637_v29, %v5181_v11  ;;  %v4807_v29 = vld [vmem:[%s5809_s11 + $0x70] sm:$0xff]  }
 0xbba   : > { %v3655_v32 = vcombine.low %v3636_v30, %v3652_v31  ;;  %v3654_v33 = vcombine.high %v3629_v42, %v3645_v43  ;;  %v3656_v34 = vcombine.high %v3636_v30, %v3652_v31  ;;  %v3653_v35 = vcombine.low %v3629_v42, %v3645_v43  ;;  %v4808_v30 = vld [vmem:[%s5809_s11 + $0x30] sm:$0xff]   ;;  %v4809_v31 = vld [vmem:[%s5809_s11 + $0x78] sm:$0xff]  }
 0xbbb   : > { %v4810_v42 = vld [vmem:[%s5809_s11 + $0x38] sm:$0xff]   ;;  %v3810_v43 = vsub.s32 0, %v5175_v0 }
 0xbbc   : > { %3662 = vrot.lane.b32.xlu1 %v3655_v32, %s5837_s3  ;;  %3658 = vrot.lane.b32.xlu0 %v3654_v33, %s5839_s27  ;;  %v3806_v32 = vld [vmem:[%s5808_s10] sm:$0x3]  ;;  %v3814_v33 = vsub.s32 1, %v5175_v0 }
 0xbc0   : > { %3666 = vrot.lane.b32.xlu1 %v3656_v34, %s5838_s29  ;;  %v3811_v34 = vrot.slane %v3806_v32, %v3810_v43 }
 0xc2e   : > { %v3663_v5 = vpop.permute.xlu1 %3662  ;;  %v3659_v45 = vpop.permute.xlu0 %3658 }
 0xc2f   : > { %v3669_v36 = vsel %vm1543_vm2, %v3653_v35, %v3659_v45  ;;  %v3815_v35 = vrot.slane %v3806_v32, %v3814_v33 }
 0xc30   : > { %v3670_v37 = vsel %vm2708_vm6, %v3669_v36, %v3663_v5 }
 0xc32   : > { %v3667_v2 = vpop.permute.xlu1 %3666 }
 0xc33   : > { %v3671_v38 = vsel %vm2710_vm7, %v3670_v37, %v3667_v2 }
 0xc34   : > { %v3672_v11 = vpack.c.bf16 %v3671_v38, %v3671_v38 }
 0xc36   : > { %4656 = vmatmul.mubr.bf16.vlgmr.msra.gmra.mrb[28].mxu0 %v3672_v11 }
 0xc37   : > { %4462 = vmatpush3.bf16.msra.mxu0 %v4796_v46 }
 0xc38   : > { %4463 = vmatprep.subr.bf16.mxu0 %v4797_v6 }
 0xc3b   : > { %4464 = vmatpush3.bf16.msra.mxu0 %v4798_v7 }
 0xc3c   : > { %4465 = vmatprep.subr.bf16.mxu0 %v4799_v8 }
 0xc3f   : > { %4466 = vmatpush3.bf16.msra.mxu0 %v4800_v9 }
 0xc40   : > { %4467 = vmatprep.subr.bf16.mxu0 %v4801_v54 }
 0xc43   : > { %4468 = vmatpush3.bf16.msra.mxu0 %v4802_v10 }
 0xc44   : > { %4469 = vmatprep.subr.bf16.mxu0 %v4803_v12 }
 0xc47   : > { %4470 = vmatpush3.bf16.msra.mxu0 %v4804_v13 }
 0xc48   : > { %4471 = vmatprep.subr.bf16.mxu0 %v4805_v15 }
 0xc4b   : > { %4472 = vmatpush3.bf16.msra.mxu0 %v4806_v16 }
 0xc4c   : > { %4473 = vmatprep.subr.bf16.mxu0 %v4807_v29 }
 0xc4f   : > { %4474 = vmatpush3.bf16.msra.mxu0 %v4808_v30 }
 0xc50   : > { %4475 = vmatprep.subr.bf16.mxu0 %v4809_v31 }
 0xc53   : > { %4476 = vmatpush3.bf16.msra.mxu0 %v4810_v42 }
 0xd09   : > { %v3755_v40 = vpop.f32.mrb[28].mxu0 }
 0xd0a   : > { %v3761_v22 = vadd.f32 %v3755_v40, %v5459_v25  ;;  %v4657_v48 = vpop.f32.mrb[29].mxu0  ;;  %v4774_v25 = vld [vmem:[%s5807_s9 + $0x10] ss:$8 sps:$4 sm:$0xff]  }
 0xd0b   : > { %v3758_v49 = vpop.f32.mrb[30].mxu0  ;;  %3901 = vmatpush1.bf16.msra.mxu1 %v4774_v25 }
 0xd0c   : > { %3764 = vadd.xlane.f32.xlu0 %v3761_v22  ;;  %v4658_v44 = vpop.f32.mrb[31].mxu0  ;;  %3902 = vmatprep.subr.bf16.mxu1 %v4779_v52 }
 0xd0d   : > { %v4371_v44 = vld [vmem:[%s5810_s12] ss:$0 sm:$0xff] }
 0xd0f   : > { %3903 = vmatpush1.bf16.msra.mxu1 %v4777_v53 }
 0xd10   : > { %3904 = vmatprep.subr.bf16.mxu1 %v4782_v57 }
 0xd13   : > { %3905 = vmatpush1.bf16.msra.mxu1 %v4780_v58 }
 0xd14   : > { %3906 = vmatprep.subr.bf16.mxu1 %v4785_v59 }
 0xd17   : > { %3907 = vmatpush1.bf16.msra.mxu1 %v4783_v61  ;;  %v4388_v61 = vld [vmem:[%s5815_s17] ss:$0 sm:$0xff] }
 0xd18   : > { %3908 = vmatprep.subr.bf16.mxu1 %v4788_v62 }
 0xd1b   : > { %3909 = vmatpush1.bf16.msra.mxu1 %v4786_v63  ;;  %v4389_v63 = vld [vmem:[%s5816_s18] ss:$0 sm:$0xff] }
 0xd1c   : > { %3910 = vmatprep.subr.bf16.mxu1 %v4791_v60 }
 0xd1f   : > { %3911 = vmatpush1.bf16.msra.mxu1 %v4789_v1 }
 0xd20   : > { %3912 = vmatprep.subr.bf16.mxu1 %v4794_v3 }
 0xd23   : > { %3913 = vmatpush1.bf16.msra.mxu1 %v4792_v47 }
 0xd99   : > { %v3765_v39 = vpop.xlane.xlu0 %3764 }
 0xd9a   : > { %v3766_v41 = vmul.f32 0.0078125, %v3765_v39 }
 0xd9c   : > { %v3767_v55 = vsub.f32 %v3761_v22, %v3766_v41 }
 0xd9e   : > { %v3768_v56 = vmul.f32 %v3767_v55, %v3767_v55 }
 0xda0   : > { %3769 = vadd.xlane.f32.xlu1 %v3768_v56 }
 0xe2d   : > { %v3770_v17 = vpop.xlane.xlu1 %3769 }
 0xe2e   : > { %v3771_v18 = vmul.f32 0.0078125, %v3770_v17 }
 0xe30   : > { %v3772_v19 = vadd.f32 1e-05, %v3771_v18 }
 0xe32   : > { %4845 = vrsqrt.f32 %v3772_v19 }
 0xe3c   : > { %v4846_v21 = vpop.eup %4845 }
 0xe3d   : > { %v3774_v14 = vmul.f32 %v4846_v21, %v3767_v55 }
 0xe3f   : > { %v3781_v26 = vmul.f32 %v4353_v23, %v3774_v14 }
 0xe41   : > { %v3788_v27 = vadd.f32 %v4354_v24, %v3781_v26 }
 0xe43   : > { %v3789_v20 = vpack.c.bf16 %v3788_v27, %v3788_v27 }
 0xe45   : > { %3931 = vmatmul.mubr.bf16.vlgmr.msra.gmra.mrb[56].mxu1 %v3789_v20 }
 0xf18   : > { %v3932_v5 = vpop.f32.mrb[56].mxu1 }
 0xf19   : > { %v3933_v45 = vadd.f32 %v3932_v5, %v3811_v34  ;;  %v3934_v36 = vpop.f32.mrb[57].mxu1 }
 0xf1a   : > { %v3935_v2 = vadd.f32 %v3934_v36, %v3815_v35  ;;  %v3936_v37 = vpop.f32.mrb[58].mxu1 }
 0xf1b   : > { %v3939_v38 = vmax.f32 %v3933_v45, 0.0  ;;  %v3937_v11 = vpop.f32.mrb[59].mxu1 }
 0xf1c   : > { %v3940_v40 = vmax.f32 %v3935_v2, 0.0 }
 0xf1d   : > { %v3941_v48 = vpack.c.bf16 %v3939_v38, %v3939_v38 }
 0xf1e   : > { %v3942_v22 = vpack.c.bf16 %v3940_v40, %v3940_v40 }
 0xf20   : > { %4110 = vmatprep.mubr.bf16.mxu0 %v3942_v22 }
 0xf21   : > { %4111 = vmatmul.mubr.bf16.vlgmr.msra.gmra.mrb[32].mxu0 %v3941_v48 }
 0xff4   : > { %v4477_v49 = vpop.f32.mrb[32].mxu0 }
 0xff5   : > { %v4478_v0 = vpop.f32.mrb[33].mxu0 }
 0xff6   : > { %v4479_v50 = vadd.f32 %v4478_v0, %v4477_v49  ;;  %v4480_v28 = vpop.f32.mrb[34].mxu0 }
 0xff7   : > { %v4481_v51 = vpop.f32.mrb[35].mxu0 }
 0xff8   : > { %v4113_v25 = vadd.f32 %v4479_v50, %v4371_v44 }
 0xffa   : > { %v4118_v52 = vadd.f32 %v4113_v25, %v3788_v27 }
 0xffc   : > { %4121 = vadd.xlane.f32.xlu0 %v4118_v52 }
0x1089   : > { %v4122_v53 = vpop.xlane.xlu0 %4121 }
0x108a   : > { %v4123_v39 = vmul.f32 0.0078125, %v4122_v53 }
0x108c   : > { %v4124_v41 = vsub.f32 %v4118_v52, %v4123_v39 }
0x108e   : > { %v4125_v55 = vmul.f32 %v4124_v41, %v4124_v41 }
0x1090   : > { %4126 = vadd.xlane.f32.xlu0 %v4125_v55 }
0x111d   : > { %v4127_v56 = vpop.xlane.xlu0 %4126 }
0x111e   : > { %v4128_v57 = vmul.f32 0.0078125, %v4127_v56 }
0x1120   : > { %v4129_v58 = vadd.f32 1e-05, %v4128_v57 }
0x1122   : > { %4847 = vrsqrt.f32 %v4129_v58 }
0x112c   : > { %v4848_v59 = vpop.eup %4847 }
0x112d   : > { %v4131_v62 = vmul.f32 %v4848_v59, %v4124_v41 }
0x112f   : > { %v4138_v60 = vmul.f32 %v4388_v61, %v4131_v62 }
0x1131   : > { %v4145_v1 = vadd.f32 %v4389_v63, %v4138_v60 }
0x1133   : > { %4146 = vst [vmem:[%s651_s28] sm:$0xff] %v4145_v1 }
0x1134 PF: > { %s29_s20 = sadd.s32 1, %s4872_s20   ;;  %s5842_s0 = smov %s4868_s30 }
0x1135   : > { %p26_p5 = scmp.ge.s32.totalorder %s29_s20, 4   ;;  %s5843_s30 = smov %s5845_s21 }
0x1137   :  { %28 = sbr.rel (!%p26_p5) target bundleno = 7 (0x7), region = 137 }

</bundles_post_ra>
